<compile_context>
chip_gen: v7x
topology: tpu7x:2x2x1
jax: 0.10.0
libtpu: 0.0.40
codegen_flags: <defaults>
</compile_context>

<pallas_src>
import math
from functools import partial

import jax
import jax.numpy as jnp
from jax import lax
from jax.experimental import pallas as pl
from jax.experimental.pallas import tpu as pltpu

BF16 = jnp.bfloat16
F32 = jnp.float32
PROJ_W = 128  # lane-padded width of the fused projection output


def _bdot(a, b):
    """bf16 MXU matmul with f32 accumulation."""
    return jnp.dot(a.astype(BF16), b.astype(BF16), preferred_element_type=F32)


def _row_tile(M, target=512):
    """Largest row-tile (multiple of 8) that divides M, capped at `target`."""
    if M <= target:
        return M
    t = target - (target % 8)
    while t >= 8:
        if M % t == 0:
            return t
        t -= 8
    return M


def _time_chunk(T, target=16):
    if T <= target:
        return T
    for tc in range(target, 0, -1):
        if T % tc == 0:
            return tc
    return 1


def _choose_synth_tile(N, block_size):
    """Tile width for the harmonic synth: large, multiple of 128*block_size."""
    unit = 128 * block_size
    if N <= 4096 or N % unit != 0:
        return N
    nt = unit
    while nt * 2 <= 4096 and N % (nt * 2) == 0:
        nt *= 2
    return nt


def _const_spec(arr):
    nd = arr.ndim
    return pl.BlockSpec(arr.shape, lambda i, _n=nd: (0,) * _n)


# ----------------------------------------------------------------------------
# Kernel 1: fused 4x input MLPs (block-diag Linear + per-block LayerNorm +
#           LeakyReLU) x3, with the GRU input projection fused on the end.
#           Row-tiled over M, "parallel".
# ----------------------------------------------------------------------------
def _in_mlps_gru_kernel(x_ref, w1_ref, w2_ref, w3_ref, aux_ref, s_ref, e_ref,
                        wih_ref, bih_ref, o_ref):
    S = s_ref[...]     # [D, 4]  block-mean reduce matrix (1/H in own block)
    E = e_ref[...]     # [4, D]  block broadcast matrix (0/1)

    def layer(x, w_ref, r):
        b = aux_ref[r:r + 1, :]
        g = aux_ref[r + 1:r + 2, :]
        be = aux_ref[r + 2:r + 3, :]
        y = _bdot(x, w_ref[...]) + b
        # thin-reduce per-block LayerNorm statistics (f32, tiny matmuls)
        mean = jnp.dot(jnp.dot(y, S, preferred_element_type=F32), E,
                       preferred_element_type=F32)
        d = y - mean
        var = jnp.dot(jnp.dot(d * d, S, preferred_element_type=F32), E,
                      preferred_element_type=F32)
        yn = d * lax.rsqrt(var + 1e-5) * g + be
        return jnp.where(yn >= 0, yn, 0.01 * yn)       # LeakyReLU(0.01)

    h = layer(x_ref[...], w1_ref, 0)
    h = layer(h, w2_ref, 3)
    h = layer(h, w3_ref, 6)
    # fused GRU input projection (lane-padded to 128 columns)
    o_ref[...] = _bdot(h, wih_ref[...]) + bih_ref[...]


def pallas_in_mlps_gru(x, w1, w2, w3, aux, S, E, wih_p, bih_p):
    M = x.shape[0]
    GIN = wih_p.shape[1]
    tm = _row_tile(M)
    return pl.pallas_call(
        _in_mlps_gru_kernel,
        out_shape=jax.ShapeDtypeStruct((M, GIN), F32),
        grid=(M // tm,),
        in_specs=[pl.BlockSpec((tm, x.shape[1]), lambda i: (i, 0)),
                  _const_spec(w1), _const_spec(w2), _const_spec(w3),
                  _const_spec(aux), _const_spec(S), _const_spec(E),
                  _const_spec(wih_p), _const_spec(bih_p)],
        out_specs=pl.BlockSpec((tm, GIN), lambda i: (i, 0)),
        compiler_params=pltpu.CompilerParams(dimension_semantics=("parallel",)),
    )(x, w1, w2, w3, aux, S, E, wih_p, bih_p)


# ----------------------------------------------------------------------------
# Kernel 2: GRU recurrence. Grid over T/Tc chunks ("arbitrary"), hidden state
#           in VMEM scratch, batch pre-padded to >= 8 sublanes, input
#           projection already applied (only the h-dependent matmul remains).
# ----------------------------------------------------------------------------
def _gru_kernel(x_ref, whh_ref, bhh_ref, o_ref, h_ref):
    @pl.when(pl.program_id(0) == 0)
    def _():
        h_ref[...] = jnp.zeros_like(h_ref)

    H = h_ref.shape[-1]
    Tc = x_ref.shape[0]
    whh = whh_ref[...]
    bhh = bhh_ref[...]

    h = h_ref[...]
    for i in range(Tc):                         # static unrolled inner loop
        xt = x_ref[i]                           # [Bp, GIN] (padded; cols >=3H unused)
        gh = jnp.dot(h, whh, preferred_element_type=F32) + bhh      # f32 recurrent
        xr, xz, xn = xt[:, 0:H], xt[:, H:2 * H], xt[:, 2 * H:3 * H]
        hr, hz, hn = gh[:, 0:H], gh[:, H:2 * H], gh[:, 2 * H:3 * H]
        r = jax.nn.sigmoid(xr + hr)
        zg = jax.nn.sigmoid(xz + hz)
        n = jnp.tanh(xn + r * hn)
        h = (1.0 - zg) * n + zg * h
        o_ref[i] = h
    h_ref[...] = h


def pallas_gru(x_tbd, whh_t, bhh):
    T, Bp, GIN = x_tbd.shape
    H = whh_t.shape[0]
    Tc = _time_chunk(T)
    return pl.pallas_call(
        _gru_kernel,
        out_shape=jax.ShapeDtypeStruct((T, Bp, H), F32),
        grid=(T // Tc,),
        in_specs=[pl.BlockSpec((Tc, Bp, GIN), lambda t: (t, 0, 0)),
                  _const_spec(whh_t), _const_spec(bhh)],
        out_specs=pl.BlockSpec((Tc, Bp, H), lambda t: (t, 0, 0)),
        scratch_shapes=[pltpu.VMEM((Bp, H), F32)],
        compiler_params=pltpu.CompilerParams(dimension_semantics=("arbitrary",)),
    )(x_tbd, whh_t, bhh)


# ----------------------------------------------------------------------------
# Kernel 3: fused out_mlp (3x Linear+LN+LeakyReLU) + all three projections
#           (lane-padded to 128) + scale_function. Row-tiled, "parallel".
#           scale_function(x) = 2*sigmoid(x)**log(10) + 1e-7, proj1 shifted -5.
# ----------------------------------------------------------------------------
def _out_proj_kernel(x_ref, w1_ref, w2_ref, w3_ref, aux_ref, pw_ref, paux_ref,
                     o_ref):
    def layer(x, w_ref, r):
        b = aux_ref[r:r + 1, :]
        g = aux_ref[r + 1:r + 2, :]
        be = aux_ref[r + 2:r + 3, :]
        y = _bdot(x, w_ref[...]) + b
        mean = jnp.mean(y, axis=-1, keepdims=True)
        d = y - mean
        var = jnp.mean(d * d, axis=-1, keepdims=True)
        yn = d * lax.rsqrt(var + 1e-5) * g + be
        return jnp.where(yn >= 0, yn, 0.01 * yn)

    h = layer(x_ref[...], w1_ref, 0)
    h = layer(h, w2_ref, 3)
    h = layer(h, w3_ref, 6)
    y = _bdot(h, pw_ref[...]) + paux_ref[0:1, :] + paux_ref[1:2, :]
    # sigmoid(y)**log(10) = exp(log(10) * logsigmoid(y)), stable softplus form
    logsig = -(jnp.maximum(-y, 0.0) + jnp.log(1.0 + jnp.exp(-jnp.abs(y))))
    o_ref[...] = 2.0 * jnp.exp(math.log(10.0) * logsig) + 1e-7


def pallas_out_proj(x, w1, w2, w3, aux, pw, paux):
    M = x.shape[0]
    D = pw.shape[1]
    tm = _row_tile(M)
    return pl.pallas_call(
        _out_proj_kernel,
        out_shape=jax.ShapeDtypeStruct((M, D), F32),
        grid=(M // tm,),
        in_specs=[pl.BlockSpec((tm, x.shape[1]), lambda i: (i, 0)),
                  _const_spec(w1), _const_spec(w2), _const_spec(w3),
                  _const_spec(aux), _const_spec(pw), _const_spec(paux)],
        out_specs=pl.BlockSpec((tm, D), lambda i: (i, 0)),
        compiler_params=pltpu.CompilerParams(dimension_semantics=("parallel",)),
    )(x, w1, w2, w3, aux, pw, paux)


# ----------------------------------------------------------------------------
# Kernel 4: fused encoder conv1(k=3,pad=1)+ReLU -> conv2+ReLU -> [mu|logvar]
#           Batch folded into rows (one big im2col matmul per conv); cross-
#           batch boundaries masked in-kernel via roll + row%T masks.
#           mu/logvar matmul kept f32.
# ----------------------------------------------------------------------------
def pallas_encoder(mel_flat, T, w1f, w2f, wmv, baux):
    R, Cin = mel_flat.shape
    C2 = w2f.shape[1]

    def kernel(x_ref, w1_ref, w2_ref, wmv_ref, baux_ref, o_ref):
        xb = x_ref[...]                                   # [R, Cin]
        rvec = lax.broadcasted_iota(jnp.int32, (R, 1), 0) % T

        def shift_prev(v):      # v[r-1] within each batch item, zero at frame 0
            return jnp.where(rvec >= 1, pltpu.roll(v, 1, 0), 0.0)

        def shift_next(v):      # v[r+1] within each batch item, zero at frame T-1
            return jnp.where(rvec <= T - 2, pltpu.roll(v, R - 1, 0), 0.0)

        b1 = baux_ref[0:1, :]
        b2 = baux_ref[1:2, 0:C2]
        bmv = baux_ref[2:3, 0:2]

        # conv1 as one im2col matmul: [R, 3*Cin] @ [3*Cin, 32]
        xcat = jnp.concatenate([shift_prev(xb), xb, shift_next(xb)], axis=-1)
        z1 = jnp.maximum(_bdot(xcat, w1_ref[...]) + b1, 0.0)          # [R, 32]

        # conv2 as one im2col matmul: [R, 96] @ [96, 8]
        zcat = jnp.concatenate([shift_prev(z1), z1, shift_next(z1)], axis=-1)
        z2 = jnp.maximum(_bdot(zcat, w2_ref[...]) + b2, 0.0)          # [R, 8]

        # mu/logvar kept in f32 (feeds exp(0.5*logvar))
        o_ref[...] = jnp.dot(z2, wmv_ref[...], preferred_element_type=F32) + bmv

    # TODO(synk): at very large B*T this single-block encoder should be row-tiled
    # with 1-row halos; at DDSP frame rates the whole slab fits VMEM comfortably.
    return pl.pallas_call(
        kernel,
        out_shape=jax.ShapeDtypeStruct((R, 2), F32),
        grid=(1,),
        in_specs=[pl.BlockSpec((R, Cin), lambda i: (0, 0)),
                  _const_spec(w1f), _const_spec(w2f),
                  _const_spec(wmv), _const_spec(baux)],
        out_specs=pl.BlockSpec((R, 2), lambda i: (0, 0)),
        compiler_params=pltpu.CompilerParams(dimension_semantics=("arbitrary",)),
    )(mel_flat, w1f, w2f, wmv, baux)


# ----------------------------------------------------------------------------
# Kernel 5: harmonic additive synth, lane-dense [B, N] output, Chebyshev sine.
#           Frame-rate amplitudes [H, B, T] (H leading) are upsampled to
#           sample rate INSIDE the kernel with an exact 0/1 f32 matmul.
# ----------------------------------------------------------------------------
def _harm_kernel(om_ref, amp_ref, r_ref, o_ref):
    w = om_ref[...]                       # [B, nt]
    H = amp_ref.shape[0]
    R = r_ref[...]                        # [F, nt]  0/1 frame->sample expansion

    def amp_up(k):                        # clean leading-axis tap, exact upsample
        return jnp.dot(amp_ref[k], R, preferred_element_type=F32)    # [B, nt]

    c2 = 2.0 * jnp.cos(w)
    s_pp = jnp.zeros_like(w)              # sin(0*w)
    s_p = jnp.sin(w)                      # sin(1*w)
    acc = s_p * amp_up(0)
    for k in range(2, H + 1):             # sin(kw) = 2cos(w)sin((k-1)w) - sin((k-2)w)
        s_c = c2 * s_p - s_pp
        acc = acc + s_c * amp_up(k - 1)
        s_pp, s_p = s_p, s_c
    o_ref[...] = acc


def pallas_harmonic_synth(omega, amp_hbt, rmat):
    B, N = omega.shape
    Hn, _, T = amp_hbt.shape
    F, nt = rmat.shape
    return pl.pallas_call(
        _harm_kernel,
        out_shape=jax.ShapeDtypeStruct((B, N), F32),
        grid=(N // nt,),
        in_specs=[pl.BlockSpec((B, nt), lambda i: (0, i)),
                  pl.BlockSpec((Hn, B, F), lambda i: (0, 0, i)),
                  _const_spec(rmat)],
        out_specs=pl.BlockSpec((B, nt), lambda i: (0, i)),
        compiler_params=pltpu.CompilerParams(dimension_semantics=("parallel",)),
    )(omega, amp_hbt, rmat)


# ----------------------------------------------------------------------------
# DDSP helpers kept in plain JAX (FFT-based ops, glue)
# ----------------------------------------------------------------------------
def remove_above_nyquist(amplitudes, pitch, sampling_rate):
    n_harm = amplitudes.shape[-1]
    pitches = pitch * jnp.arange(1, n_harm + 1, dtype=F32)
    aa = (pitches < sampling_rate / 2.0).astype(F32) + 1e-4
    return amplitudes * aa


def fft_convolve(signal, kernel):
    signal = jnp.pad(signal, [(0, 0)] * (signal.ndim - 1) + [(0, signal.shape[-1])])
    kernel = jnp.pad(kernel, [(0, 0)] * (kernel.ndim - 1) + [(kernel.shape[-1], 0)])
    output = jnp.fft.irfft(jnp.fft.rfft(signal) * jnp.fft.rfft(kernel))
    return output[..., output.shape[-1] // 2:]


def amp_to_impulse_response(amp, target_size):
    ir = jnp.fft.irfft(amp.astype(jnp.complex64), axis=-1)
    filter_size = ir.shape[-1]
    ir = jnp.roll(ir, filter_size // 2, axis=-1)
    n = jnp.arange(filter_size, dtype=F32)
    win = 0.5 - 0.5 * jnp.cos(2.0 * jnp.pi * n / filter_size)
    ir = ir * win
    pad = int(target_size) - filter_size
    if pad > 0:
        ir = jnp.pad(ir, [(0, 0)] * (ir.ndim - 1) + [(0, pad)])
    return jnp.roll(ir, -(filter_size // 2), axis=-1)


def transient_synth_frame(amps, freqs, sampling_rate, block_size):
    # TODO(synk): transient_synth_frame is not defined in the provided source; using a
    # per-frame sinusoid burst amp*sin(2*pi*f*t) over block_size samples as a stand-in.
    B, T, _ = amps.shape
    t = jnp.arange(block_size, dtype=F32) / float(sampling_rate)
    sig = amps * jnp.sin(2.0 * jnp.pi * freqs * t[None, None, :])
    return sig.reshape(B, T * block_size, 1)


def reverb_forward(p, x, sampling_rate):
    noise, decay, wet = p['rev_noise'], p['rev_decay'], p['rev_wet']
    length = noise.shape[0]
    lenx = x.shape[1]
    t = (jnp.arange(length, dtype=F32) / float(sampling_rate)).reshape(1, length, 1)
    env = jnp.exp(-jax.nn.softplus(-decay) * t * 500.0)
    impulse = noise[None] * env * jax.nn.sigmoid(wet)
    impulse = impulse.at[:, 0, :].set(1.0)
    impulse = jnp.pad(impulse, ((0, 0), (0, lenx - length), (0, 0)))
    return fft_convolve(x[..., 0], impulse[..., 0])[..., None]


# ----------------------------------------------------------------------------
# Parameter initialization (deterministic, synthetic; stored in fused layout)
# ----------------------------------------------------------------------------
def init_params(key, hidden, n_harmonic, n_bands, sampling_rate):
    H = hidden
    D = 4 * H
    GIN = ((3 * H + 127) // 128) * 128        # lane-padded GRU-input-projection width
    keys = iter(jax.random.split(key, 64))

    def unif(shape, scale):
        return jax.random.uniform(next(keys), shape, minval=-scale, maxval=scale, dtype=F32)

    # ---- encoder (im2col weights) ----
    enc = {}
    enc['w1f'] = jax.random.normal(next(keys), (3 * 128, 32), F32) / math.sqrt(3 * 128)
    enc['w2f'] = jax.random.normal(next(keys), (3 * 32, 8), F32) / math.sqrt(3 * 32)
    enc['wmv'] = jnp.concatenate([unif((8, 1), 1 / math.sqrt(8)),
                                  unif((8, 1), 1 / math.sqrt(8))], axis=-1)      # [8,2]
    baux = jnp.zeros((3, 32), F32)
    baux = baux.at[2, 0:2].set(unif((2,), 1 / math.sqrt(8)))
    enc['baux'] = baux

    dec = {}
    # ---- fused input MLPs (block-diagonal weights, per-block LayerNorm) ----
    w1 = jnp.zeros((4, D), F32)
    w2 = jnp.zeros((D, D), F32)
    w3 = jnp.zeros((D, D), F32)
    aux = jnp.zeros((9, D), F32)
    aux = aux.at[1, :].set(1.0).at[4, :].set(1.0).at[7, :].set(1.0)   # LN gammas
    s = 1.0 / math.sqrt(H)
    for i in range(4):
        sl = slice(i * H, (i + 1) * H)
        w1 = w1.at[i, sl].set(unif((H,), 1.0))
        w2 = w2.at[sl, sl].set(unif((H, H), s))
        w3 = w3.at[sl, sl].set(unif((H, H), s))
        aux = aux.at[0, sl].set(unif((H,), 1.0))
        aux = aux.at[3, sl].set(unif((H,), s))
        aux = aux.at[6, sl].set(unif((H,), s))
    dec['in_w1'], dec['in_w2'], dec['in_w3'], dec['in_aux'] = w1, w2, w3, aux

    # thin-reduce LayerNorm matrices (block-sum / block-broadcast)
    blk = jnp.arange(D) // H
    dec['ln_S'] = ((blk[:, None] == jnp.arange(4)[None, :]).astype(F32) / H)  # [D,4]
    dec['ln_E'] = (jnp.arange(4)[:, None] == blk[None, :]).astype(F32)        # [4,D]

    # ---- GRU: W_ih lane-padded [D, GIN] (fused into kernel 1); W_hh [H, 3H] ----
    wih_p = jnp.zeros((D, GIN), F32).at[:, :3 * H].set(unif((D, 3 * H), s))
    bih_p = jnp.zeros((1, GIN), F32).at[:, :3 * H].set(unif((1, 3 * H), s))
    dec['gru_wih_p'], dec['gru_bih_p'] = wih_p, bih_p
    dec['gru_whh'] = unif((H, 3 * H), s)      # pre-transposed [H, 3H]
    dec['gru_bhh'] = unif((1, 3 * H), s)

    # ---- out_mlp ----
    dec['out_w1'] = unif((H + 4, H), 1 / math.sqrt(H + 4))
    dec['out_w2'] = unif((H, H), s)
    dec['out_w3'] = unif((H, H), s)
    oaux = jnp.zeros((9, H), F32)
    oaux = oaux.at[0, :].set(unif((H,), 1 / math.sqrt(H + 4))).at[1, :].set(1.0)
    oaux = oaux.at[3, :].set(unif((H,), s)).at[4, :].set(1.0)
    oaux = oaux.at[6, :].set(unif((H,), s)).at[7, :].set(1.0)
    dec['out_aux'] = oaux

    # ---- fused projections (lane-padded to 128 columns) ----
    n0, n1, n2 = n_harmonic + 1, n_bands, 2
    assert n0 + n1 + n2 <= PROJ_W
    pw = jnp.zeros((H, PROJ_W), F32)
    pw = pw.at[:, 0:n0].set(unif((H, n0), s))
    pw = pw.at[:, n0:n0 + n1].set(unif((H, n1), s))
    pw = pw.at[:, n0 + n1:n0 + n1 + n2].set(unif((H, n2), s))
    paux = jnp.zeros((2, PROJ_W), F32)
    paux = paux.at[0, 0:n0].set(unif((n0,), s))
    paux = paux.at[0, n0:n0 + n1].set(unif((n1,), s))
    paux = paux.at[0, n0 + n1:n0 + n1 + n2].set(unif((n2,), s))
    paux = paux.at[1, n0:n0 + n1].set(-5.0)        # the "- 5" of scale_function(proj1(h) - 5)
    dec['proj_w'], dec['proj_aux'] = pw, paux

    # ---- reverb ----
    dec['rev_noise'] = jax.random.uniform(next(keys), (sampling_rate, 1), dtype=F32) * 2.0 - 1.0
    dec['rev_decay'] = jnp.float32(5.0)
    dec['rev_wet'] = jnp.float32(0.0)
    return {'encoder': enc, 'decoder': dec}


# ----------------------------------------------------------------------------
# Model forward passes
# ----------------------------------------------------------------------------
def encoder_forward(p, melspecs, eps_key):
    B, T, Cin = melspecs.shape
    enc_out = pallas_encoder(melspecs.reshape(B * T, Cin), T,
                             p['w1f'], p['w2f'], p['wmv'], p['baux'])
    enc_out = enc_out.reshape(B, T, 2)
    mu = enc_out[..., 0:1]
    logvar = enc_out[..., 1:2]
    std = jnp.exp(0.5 * logvar)
    eps = jax.random.normal(eps_key, std.shape, F32)
    return mu + eps * std, mu, logvar


def decoder_forward(p, pitch, confidence, loudness, onset, z,
                    n_harmonic, n_bands, sampling_rate, block_size, noise_key):
    B, T, _ = pitch.shape
    H = p['out_w2'].shape[0]

    # fused 4x input MLPs + GRU input projection -> [B*T, GIN]
    x4 = jnp.concatenate([pitch, loudness, onset, z], axis=-1).reshape(B * T, 4)
    xp = pallas_in_mlps_gru(x4, p['in_w1'], p['in_w2'], p['in_w3'], p['in_aux'],
                            p['ln_S'], p['ln_E'], p['gru_wih_p'], p['gru_bih_p'])
    GIN = xp.shape[-1]

    # time-major, batch padded to a multiple of 8 sublanes for the serial kernel
    Bp = ((B + 7) // 8) * 8
    xp_t = jnp.swapaxes(xp.reshape(B, T, GIN), 0, 1)            # [T, B, GIN]
    if Bp != B:
        xp_t = jnp.pad(xp_t, ((0, 0), (0, Bp - B), (0, 0)))
    gru_out = pallas_gru(xp_t, p['gru_whh'], p['gru_bhh'])[:, :B, :]   # [T, B, H]
    gru_out = jnp.swapaxes(gru_out, 0, 1)                              # [B, T, H]

    # fused out_mlp + projections + scale_function (lane-dense [M,128])
    hid2 = jnp.concatenate([gru_out, pitch, loudness, onset, z],
                           axis=-1).reshape(B * T, H + 4)
    proj = pallas_out_proj(hid2, p['out_w1'], p['out_w2'], p['out_w3'],
                           p['out_aux'], p['proj_w'], p['proj_aux'])
    proj = proj.reshape(B, T, PROJ_W)
    n0 = n_harmonic + 1
    param0 = proj[..., :n0]
    param1 = proj[..., n0:n0 + n_bands]
    tparam = proj[..., n0 + n_bands:n0 + n_bands + 2]

    # harmonic branch (frame-rate amps; upsampling happens inside the kernel)
    total_amp = param0[..., :1] * confidence
    amplitudes = param0[..., 1:]
    amplitudes = remove_above_nyquist(amplitudes, pitch, sampling_rate)
    amplitudes = amplitudes / jnp.sum(amplitudes, axis=-1, keepdims=True)
    amplitudes = amplitudes * total_amp                                  # [B,T,Hn]
    amp_hbt = jnp.transpose(amplitudes, (2, 0, 1))                       # [Hn,B,T]

    N = T * block_size
    pitch_up = jnp.repeat(pitch[..., 0], block_size, axis=-1)            # [B,N]
    # TODO(synk): f32 cumsum accumulates phase error over very long signals;
    # per-frame phase accumulation with mod-2pi wrapping would fix it.
    omega = jnp.cumsum(2.0 * math.pi * pitch_up / float(sampling_rate), axis=-1)

    nt = _choose_synth_tile(N, block_size)
    F = nt // block_size
    rmat = (jnp.arange(F)[:, None] ==
            (jnp.arange(nt)[None, :] // block_size)).astype(F32)         # [F,nt]
    harmonic = pallas_harmonic_synth(omega, amp_hbt, rmat)[..., None]    # [B,N,1]

    # filtered-noise branch (FFT ops stay in XLA)
    impulse = amp_to_impulse_response(param1, block_size)                # [B,T,block]
    # TODO(synk): eval path uses torch.manual_seed(0); exact PyTorch RNG bits are not reproducible in JAX.
    noise = jax.random.uniform(noise_key, (B, T, block_size), dtype=F32) * 2.0 - 1.0
    noise = fft_convolve(noise, impulse).reshape(B, -1, 1)               # [B,N,1]

    # transient branch
    transient = transient_synth_frame(tparam[..., :1], tparam[..., 1:],
                                      sampling_rate, block_size)         # [B,N,1]

    signal = harmonic + noise + transient
    signal = reverb_forward(p, signal, sampling_rate)
    return signal, harmonic, noise, transient


@partial(jax.jit, static_argnames=("n_harmonic", "n_bands", "sampling_rate", "block_size"))
def ddsp_vae_forward(params, pitch, confidence, melspecs, loudness, onset, key, *,
                     n_harmonic, n_bands, sampling_rate, block_size):
    k_eps, k_noise = jax.random.split(key)
    z, mu, logvar = encoder_forward(params['encoder'], melspecs, k_eps)
    recon, harmonic, noise, transient = decoder_forward(
        params['decoder'], pitch, confidence, loudness, onset, z,
        n_harmonic, n_bands, sampling_rate, block_size, k_noise)
    return recon, harmonic, noise, transient, mu, logvar


# ----------------------------------------------------------------------------
if __name__ == "__main__":
    B, T = 2, 8
    hidden_size = 32
    n_harmonic = 15
    n_bands = 9                 # filter_size = 2*(n_bands-1) = 16 = block_size
    sampling_rate = 64          # reverb length; signal length T*block = 128 >= 64
    block_size = 16

    root = jax.random.PRNGKey(0)
    kp, k1, k2, k3, k4, k5, krun = jax.random.split(root, 7)

    params = init_params(kp, hidden_size, n_harmonic, n_bands, sampling_rate)

    pitch = jax.random.uniform(k1, (B, T, 1), F32) * 20.0 + 5.0
    confidence = jax.random.uniform(k2, (B, T, 1), F32)
    melspecs = jax.random.normal(k3, (B, T, 128), F32)
    loudness = jax.random.normal(k4, (B, T, 1), F32)
    onset = jax.random.uniform(k5, (B, T, 1), F32)

    outs = ddsp_vae_forward(params, pitch, confidence, melspecs, loudness, onset, krun,
                            n_harmonic=n_harmonic, n_bands=n_bands,
                            sampling_rate=sampling_rate, block_size=block_size)
    recon, harmonic, noise, transient, mu, logvar = outs
    for o in outs:
        jax.block_until_ready(o)

    assert recon.shape == (B, T * block_size, 1)
    assert harmonic.shape == (B, T * block_size, 1)
    assert noise.shape == (B, T * block_size, 1)
    assert transient.shape == (B, T * block_size, 1)
    assert mu.shape == (B, T, 1) and logvar.shape == (B, T, 1)
    assert bool(jnp.all(jnp.isfinite(recon)))
    assert bool(jnp.all(jnp.isfinite(harmonic)))

    print("KERNEL_OK")
</pallas_src>

<mosaic_0001>
module attributes {stable_mosaic.version = 11 : i64} {
  func.func @kernel(%arg0: i32, %arg1: memref<16x128xf32, #tpu.memory_space<vmem>>, %arg2: memref<384x32xf32, #tpu.memory_space<vmem>>, %arg3: memref<96x8xf32, #tpu.memory_space<vmem>>, %arg4: memref<8x2xf32, #tpu.memory_space<vmem>>, %arg5: memref<3x32xf32, #tpu.memory_space<vmem>>, %arg6: memref<16x2xf32, #tpu.memory_space<vmem>>) attributes {dimension_semantics = [#tpu.dimension_semantics<arbitrary>], iteration_bounds = array<i64: 1>, scalar_prefetch = 0 : i64, scratch_operands = 0 : i64, tpu.core_type = #tpu.core_type<tc>, window_params = [{pipeline_mode = #tpu.pipeline_mode<synchronous>, transform_indices = @transform_0, window_bounds = array<i64: 16, 128>}, {pipeline_mode = #tpu.pipeline_mode<synchronous>, transform_indices = @transform_1, window_bounds = array<i64: 384, 32>}, {pipeline_mode = #tpu.pipeline_mode<synchronous>, transform_indices = @transform_2, window_bounds = array<i64: 96, 8>}, {pipeline_mode = #tpu.pipeline_mode<synchronous>, transform_indices = @transform_3, window_bounds = array<i64: 8, 2>}, {pipeline_mode = #tpu.pipeline_mode<synchronous>, transform_indices = @transform_4, window_bounds = array<i64: 3, 32>}, {pipeline_mode = #tpu.pipeline_mode<synchronous>, transform_indices = @transform_5, window_bounds = array<i64: 16, 2>}]} {
    %c0 = arith.constant 0 : index
    %c0_0 = arith.constant 0 : index
    %0 = vector.load %arg1[%c0, %c0_0] : memref<16x128xf32, #tpu.memory_space<vmem>>, vector<16x128xf32>
    %1 = tpu.iota {dimensions = array<i32: 0>} : vector<16x1xi32>
    %c8_i32 = arith.constant 8 : i32
    %c0_i32 = arith.constant 0 : i32
    %2 = arith.cmpi eq, %c8_i32, %c0_i32 : i32
    %c1_i32 = arith.constant 1 : i32
    %3 = arith.select %2, %c1_i32, %c8_i32 : i32
    %4 = vector.broadcast %3 : i32 to vector<16x1xi32>
    %5 = arith.remsi %1, %4 : vector<16x1xi32>
    %c0_i32_1 = arith.constant 0 : i32
    %6 = vector.broadcast %c0_i32_1 : i32 to vector<16x1xi32>
    %7 = arith.cmpi ne, %5, %6 : vector<16x1xi32>
    %c0_i32_2 = arith.constant 0 : i32
    %8 = vector.broadcast %c0_i32_2 : i32 to vector<16x1xi32>
    %9 = arith.cmpi slt, %5, %8 : vector<16x1xi32>
    %c0_i32_3 = arith.constant 0 : i32
    %10 = arith.cmpi slt, %3, %c0_i32_3 : i32
    %11 = vector.broadcast %10 : i1 to vector<16x1xi1>
    %12 = vector.broadcast %11 : vector<16x1xi1> to vector<16x1xi1>
    %13 = arith.xori %9, %12 : vector<16x1xi1>
    %14 = arith.andi %13, %7 : vector<16x1xi1>
    %15 = vector.broadcast %3 : i32 to vector<16x1xi32>
    %16 = arith.addi %5, %15 : vector<16x1xi32>
    %17 = arith.select %14, %16, %5 : vector<16x1xi1>, vector<16x1xi32>
    %c0_4 = arith.constant 0 : index
    %c0_5 = arith.constant 0 : index
    %18 = vector.load %arg5[%c0_4, %c0_5] : memref<3x32xf32, #tpu.memory_space<vmem>>, vector<1x32xf32>
    %c1 = arith.constant 1 : index
    %c0_6 = arith.constant 0 : index
    %19 = vector.load %arg5[%c1, %c0_6] : memref<3x32xf32, #tpu.memory_space<vmem>>, vector<1x8xf32>
    %c2 = arith.constant 2 : index
    %c0_7 = arith.constant 0 : index
    %20 = vector.load %arg5[%c2, %c0_7] : memref<3x32xf32, #tpu.memory_space<vmem>>, vector<1x2xf32>
    %c1_i32_8 = arith.constant 1 : i32
    %21 = vector.broadcast %c1_i32_8 : i32 to vector<16x1xi32>
    %22 = arith.cmpi sge, %17, %21 : vector<16x1xi32>
    %c1_i32_9 = arith.constant 1 : i32
    %23 = tpu.dynamic_rotate %0 by %c1_i32_9 dim 0 : vector<16x128xf32>, i32 -> vector<16x128xf32>
    %cst = arith.constant 0.000000e+00 : f32
    %24 = vector.shape_cast %22 : vector<16x1xi1> to vector<16x1xi1>
    %25 = vector.broadcast %24 : vector<16x1xi1> to vector<16x128xi1>
    %26 = vector.broadcast %cst : f32 to vector<16x128xf32>
    %27 = arith.select %25, %23, %26 : vector<16x128xi1>, vector<16x128xf32>
    %c6_i32 = arith.constant 6 : i32
    %28 = vector.broadcast %c6_i32 : i32 to vector<16x1xi32>
    %29 = arith.cmpi sle, %17, %28 : vector<16x1xi32>
    %c15_i32 = arith.constant 15 : i32
    %30 = tpu.dynamic_rotate %0 by %c15_i32 dim 0 : vector<16x128xf32>, i32 -> vector<16x128xf32>
    %cst_10 = arith.constant 0.000000e+00 : f32
    %31 = vector.shape_cast %29 : vector<16x1xi1> to vector<16x1xi1>
    %32 = vector.broadcast %31 : vector<16x1xi1> to vector<16x128xi1>
    %33 = vector.broadcast %cst_10 : f32 to vector<16x128xf32>
    %34 = arith.select %32, %30, %33 : vector<16x128xi1>, vector<16x128xf32>
    %35 = tpu.concatenate %27, %0, %34 in 1 : vector<16x128xf32>, vector<16x128xf32>, vector<16x128xf32> -> vector<16x384xf32>
    %c0_11 = arith.constant 0 : index
    %c0_12 = arith.constant 0 : index
    %36 = vector.load %arg2[%c0_11, %c0_12] : memref<384x32xf32, #tpu.memory_space<vmem>>, vector<384x32xf32>
    %37 = arith.truncf %35 : vector<16x384xf32> to vector<16x384xbf16>
    %38 = arith.truncf %36 : vector<384x32xf32> to vector<384x32xbf16>
    %cst_13 = arith.constant dense<0.000000e+00> : vector<16x32xf32>
    %39 = tpu.matmul %37, %38, %cst_13 {dimension_numbers = #tpu.dot_dimension_numbers<[1], [0], [0], [1], [0, 0, 1, 1], [], []>} : vector<16x384xbf16>, vector<384x32xbf16>, vector<16x32xf32> -> vector<16x32xf32>
    %40 = vector.broadcast %18 : vector<1x32xf32> to vector<16x32xf32>
    %41 = arith.addf %39, %40 : vector<16x32xf32>
    %cst_14 = arith.constant 0.000000e+00 : f32
    %42 = vector.broadcast %cst_14 : f32 to vector<16x32xf32>
    %43 = arith.maximumf %41, %42 : vector<16x32xf32>
    %c1_i32_15 = arith.constant 1 : i32
    %44 = vector.broadcast %c1_i32_15 : i32 to vector<16x1xi32>
    %45 = arith.cmpi sge, %17, %44 : vector<16x1xi32>
    %c1_i32_16 = arith.constant 1 : i32
    %46 = tpu.dynamic_rotate %43 by %c1_i32_16 dim 0 : vector<16x32xf32>, i32 -> vector<16x32xf32>
    %cst_17 = arith.constant 0.000000e+00 : f32
    %47 = vector.shape_cast %45 : vector<16x1xi1> to vector<16x1xi1>
    %48 = vector.broadcast %47 : vector<16x1xi1> to vector<16x32xi1>
    %49 = vector.broadcast %cst_17 : f32 to vector<16x32xf32>
    %50 = arith.select %48, %46, %49 : vector<16x32xi1>, vector<16x32xf32>
    %c6_i32_18 = arith.constant 6 : i32
    %51 = vector.broadcast %c6_i32_18 : i32 to vector<16x1xi32>
    %52 = arith.cmpi sle, %17, %51 : vector<16x1xi32>
    %c15_i32_19 = arith.constant 15 : i32
    %53 = tpu.dynamic_rotate %43 by %c15_i32_19 dim 0 : vector<16x32xf32>, i32 -> vector<16x32xf32>
    %cst_20 = arith.constant 0.000000e+00 : f32
    %54 = vector.shape_cast %52 : vector<16x1xi1> to vector<16x1xi1>
    %55 = vector.broadcast %54 : vector<16x1xi1> to vector<16x32xi1>
    %56 = vector.broadcast %cst_20 : f32 to vector<16x32xf32>
    %57 = arith.select %55, %53, %56 : vector<16x32xi1>, vector<16x32xf32>
    %58 = tpu.concatenate %50, %43, %57 in 1 : vector<16x32xf32>, vector<16x32xf32>, vector<16x32xf32> -> vector<16x96xf32>
    %c0_21 = arith.constant 0 : index
    %c0_22 = arith.constant 0 : index
    %59 = vector.load %arg3[%c0_21, %c0_22] : memref<96x8xf32, #tpu.memory_space<vmem>>, vector<96x8xf32>
    %60 = arith.truncf %58 : vector<16x96xf32> to vector<16x96xbf16>
    %61 = arith.truncf %59 : vector<96x8xf32> to vector<96x8xbf16>
    %cst_23 = arith.constant dense<0.000000e+00> : vector<16x8xf32>
    %62 = tpu.matmul %60, %61, %cst_23 {dimension_numbers = #tpu.dot_dimension_numbers<[1], [0], [0], [1], [0, 0, 1, 1], [], []>} : vector<16x96xbf16>, vector<96x8xbf16>, vector<16x8xf32> -> vector<16x8xf32>
    %63 = vector.broadcast %19 : vector<1x8xf32> to vector<16x8xf32>
    %64 = arith.addf %62, %63 : vector<16x8xf32>
    %cst_24 = arith.constant 0.000000e+00 : f32
    %65 = vector.broadcast %cst_24 : f32 to vector<16x8xf32>
    %66 = arith.maximumf %64, %65 : vector<16x8xf32>
    %c0_25 = arith.constant 0 : index
    %c0_26 = arith.constant 0 : index
    %67 = vector.load %arg4[%c0_25, %c0_26] : memref<8x2xf32, #tpu.memory_space<vmem>>, vector<8x2xf32>
    %cst_27 = arith.constant dense<0.000000e+00> : vector<16x2xf32>
    %68 = tpu.matmul %66, %67, %cst_27 {dimension_numbers = #tpu.dot_dimension_numbers<[1], [0], [0], [1], [0, 0, 1, 1], [], []>} : vector<16x8xf32>, vector<8x2xf32>, vector<16x2xf32> -> vector<16x2xf32>
    %69 = vector.broadcast %20 : vector<1x2xf32> to vector<16x2xf32>
    %70 = arith.addf %68, %69 : vector<16x2xf32>
    %c0_28 = arith.constant 0 : index
    %c0_29 = arith.constant 0 : index
    %71 = vector.load %arg6[%c0_28, %c0_29] : memref<16x2xf32, #tpu.memory_space<vmem>>, vector<16x2xf32>
    tpu.vector_store %arg6[%c0_28, %c0_29], %70 {strides = array<i32>} : memref<16x2xf32, #tpu.memory_space<vmem>>, vector<16x2xf32>,
    return
  }
  func.func @transform_0(%arg0: i32) -> (i32, i32) {
    %c0_i32 = arith.constant 0 : i32
    %c0_i32_0 = arith.constant 0 : i32
    %c0_i32_1 = arith.constant 0 : i32
    return %c0_i32, %c0_i32_0 : i32, i32
  }
  func.func @transform_1(%arg0: i32) -> (i32, i32) {
    %c0_i32 = arith.constant 0 : i32
    %c0_i32_0 = arith.constant 0 : i32
    %c0_i32_1 = arith.constant 0 : i32
    return %c0_i32, %c0_i32_0 : i32, i32
  }
  func.func @transform_2(%arg0: i32) -> (i32, i32) {
    %c0_i32 = arith.constant 0 : i32
    %c0_i32_0 = arith.constant 0 : i32
    %c0_i32_1 = arith.constant 0 : i32
    return %c0_i32, %c0_i32_0 : i32, i32
  }
  func.func @transform_3(%arg0: i32) -> (i32, i32) {
    %c0_i32 = arith.constant 0 : i32
    %c0_i32_0 = arith.constant 0 : i32
    %c0_i32_1 = arith.constant 0 : i32
    return %c0_i32, %c0_i32_0 : i32, i32
  }
  func.func @transform_4(%arg0: i32) -> (i32, i32) {
    %c0_i32 = arith.constant 0 : i32
    %c0_i32_0 = arith.constant 0 : i32
    %c0_i32_1 = arith.constant 0 : i32
    return %c0_i32, %c0_i32_0 : i32, i32
  }
  func.func @transform_5(%arg0: i32) -> (i32, i32) {
    %c0_i32 = arith.constant 0 : i32
    %c0_i32_0 = arith.constant 0 : i32
    %c0_i32_1 = arith.constant 0 : i32
    return %c0_i32, %c0_i32_0 : i32, i32
  }
}

module attributes {stable_mosaic.version = 11 : i64} {
  func.func @_in_mlps_gru_kernel(%arg0: i32, %arg1: memref<16x4xf32, #tpu.memory_space<vmem>>, %arg2: memref<4x128xf32, #tpu.memory_space<vmem>>, %arg3: memref<128x128xf32, #tpu.memory_space<vmem>>, %arg4: memref<128x128xf32, #tpu.memory_space<vmem>>, %arg5: memref<9x128xf32, #tpu.memory_space<vmem>>, %arg6: memref<128x4xf32, #tpu.memory_space<vmem>>, %arg7: memref<4x128xf32, #tpu.memory_space<vmem>>, %arg8: memref<128x128xf32, #tpu.memory_space<vmem>>, %arg9: memref<1x128xf32, #tpu.memory_space<vmem>>, %arg10: memref<16x128xf32, #tpu.memory_space<vmem>>) attributes {dimension_semantics = [#tpu.dimension_semantics<parallel>], iteration_bounds = array<i64: 1>, scalar_prefetch = 0 : i64, scratch_operands = 0 : i64, tpu.core_type = #tpu.core_type<tc>, window_params = [{transform_indices = @transform_0, window_bounds = array<i64: 16, 4>}, {pipeline_mode = #tpu.pipeline_mode<synchronous>, transform_indices = @transform_1, window_bounds = array<i64: 4, 128>}, {pipeline_mode = #tpu.pipeline_mode<synchronous>, transform_indices = @transform_2, window_bounds = array<i64: 128, 128>}, {pipeline_mode = #tpu.pipeline_mode<synchronous>, transform_indices = @transform_3, window_bounds = array<i64: 128, 128>}, {pipeline_mode = #tpu.pipeline_mode<synchronous>, transform_indices = @transform_4, window_bounds = array<i64: 9, 128>}, {pipeline_mode = #tpu.pipeline_mode<synchronous>, transform_indices = @transform_5, window_bounds = array<i64: 128, 4>}, {pipeline_mode = #tpu.pipeline_mode<synchronous>, transform_indices = @transform_6, window_bounds = array<i64: 4, 128>}, {pipeline_mode = #tpu.pipeline_mode<synchronous>, transform_indices = @transform_7, window_bounds = array<i64: 128, 128>}, {pipeline_mode = #tpu.pipeline_mode<synchronous>, transform_indices = @transform_8, window_bounds = array<i64: 1, 128>}, {transform_indices = @transform_9, window_bounds = array<i64: 16, 128>}]} {
    %c0 = arith.constant 0 : index
    %c0_0 = arith.constant 0 : index
    %0 = vector.load %arg6[%c0, %c0_0] : memref<128x4xf32, #tpu.memory_space<vmem>>, vector<128x4xf32>
    %c0_1 = arith.constant 0 : index
    %c0_2 = arith.constant 0 : index
    %1 = vector.load %arg7[%c0_1, %c0_2] : memref<4x128xf32, #tpu.memory_space<vmem>>, vector<4x128xf32>
    %c0_3 = arith.constant 0 : index
    %c0_4 = arith.constant 0 : index
    %2 = vector.load %arg1[%c0_3, %c0_4] : memref<16x4xf32, #tpu.memory_space<vmem>>, vector<16x4xf32>
    %c0_5 = arith.constant 0 : index
    %c0_6 = arith.constant 0 : index
    %3 = vector.load %arg5[%c0_5, %c0_6] : memref<9x128xf32, #tpu.memory_space<vmem>>, vector<1x128xf32>
    %c1 = arith.constant 1 : index
    %c0_7 = arith.constant 0 : index
    %4 = vector.load %arg5[%c1, %c0_7] : memref<9x128xf32, #tpu.memory_space<vmem>>, vector<1x128xf32>
    %c2 = arith.constant 2 : index
    %c0_8 = arith.constant 0 : index
    %5 = vector.load %arg5[%c2, %c0_8] : memref<9x128xf32, #tpu.memory_space<vmem>>, vector<1x128xf32>
    %c0_9 = arith.constant 0 : index
    %c0_10 = arith.constant 0 : index
    %6 = vector.load %arg2[%c0_9, %c0_10] : memref<4x128xf32, #tpu.memory_space<vmem>>, vector<4x128xf32>
    %7 = arith.truncf %2 : vector<16x4xf32> to vector<16x4xbf16>
    %8 = arith.truncf %6 : vector<4x128xf32> to vector<4x128xbf16>
    %cst = arith.constant dense<0.000000e+00> : vector<16x128xf32>
    %9 = tpu.matmul %7, %8, %cst {dimension_numbers = #tpu.dot_dimension_numbers<[1], [0], [0], [1], [0, 0, 1, 1], [], []>} : vector<16x4xbf16>, vector<4x128xbf16>, vector<16x128xf32> -> vector<16x128xf32>
    %10 = vector.broadcast %3 : vector<1x128xf32> to vector<16x128xf32>
    %11 = arith.addf %9, %10 : vector<16x128xf32>
    %cst_11 = arith.constant dense<0.000000e+00> : vector<16x4xf32>
    %12 = tpu.matmul %11, %0, %cst_11 {dimension_numbers = #tpu.dot_dimension_numbers<[1], [0], [0], [1], [0, 0, 1, 1], [], []>} : vector<16x128xf32>, vector<128x4xf32>, vector<16x4xf32> -> vector<16x4xf32>
    %cst_12 = arith.constant dense<0.000000e+00> : vector<16x128xf32>
    %13 = tpu.matmul %12, %1, %cst_12 {dimension_numbers = #tpu.dot_dimension_numbers<[1], [0], [0], [1], [0, 0, 1, 1], [], []>} : vector<16x4xf32>, vector<4x128xf32>, vector<16x128xf32> -> vector<16x128xf32>
    %14 = arith.subf %11, %13 : vector<16x128xf32>
    %15 = arith.mulf %14, %14 : vector<16x128xf32>
    %cst_13 = arith.constant dense<0.000000e+00> : vector<16x4xf32>
    %16 = tpu.matmul %15, %0, %cst_13 {dimension_numbers = #tpu.dot_dimension_numbers<[1], [0], [0], [1], [0, 0, 1, 1], [], []>} : vector<16x128xf32>, vector<128x4xf32>, vector<16x4xf32> -> vector<16x4xf32>
    %cst_14 = arith.constant dense<0.000000e+00> : vector<16x128xf32>
    %17 = tpu.matmul %16, %1, %cst_14 {dimension_numbers = #tpu.dot_dimension_numbers<[1], [0], [0], [1], [0, 0, 1, 1], [], []>} : vector<16x4xf32>, vector<4x128xf32>, vector<16x128xf32> -> vector<16x128xf32>
    %cst_15 = arith.constant 9.99999974E-6 : f32
    %18 = vector.broadcast %cst_15 : f32 to vector<16x128xf32>
    %19 = arith.addf %17, %18 : vector<16x128xf32>
    %20 = math.rsqrt %19 : vector<16x128xf32>
    %21 = arith.mulf %14, %20 : vector<16x128xf32>
    %22 = vector.broadcast %4 : vector<1x128xf32> to vector<16x128xf32>
    %23 = arith.mulf %21, %22 : vector<16x128xf32>
    %24 = vector.broadcast %5 : vector<1x128xf32> to vector<16x128xf32>
    %25 = arith.addf %23, %24 : vector<16x128xf32>
    %cst_16 = arith.constant 0.000000e+00 : f32
    %26 = vector.broadcast %cst_16 : f32 to vector<16x128xf32>
    %27 = arith.cmpf oge, %25, %26 : vector<16x128xf32>
    %cst_17 = arith.constant 0.00999999977 : f32
    %28 = vector.broadcast %cst_17 : f32 to vector<16x128xf32>
    %29 = arith.mulf %28, %25 : vector<16x128xf32>
    %30 = arith.select %27, %25, %29 : vector<16x128xi1>, vector<16x128xf32>
    %c3 = arith.constant 3 : index
    %c0_18 = arith.constant 0 : index
    %31 = vector.load %arg5[%c3, %c0_18] : memref<9x128xf32, #tpu.memory_space<vmem>>, vector<1x128xf32>
    %c4 = arith.constant 4 : index
    %c0_19 = arith.constant 0 : index
    %32 = vector.load %arg5[%c4, %c0_19] : memref<9x128xf32, #tpu.memory_space<vmem>>, vector<1x128xf32>
    %c5 = arith.constant 5 : index
    %c0_20 = arith.constant 0 : index
    %33 = vector.load %arg5[%c5, %c0_20] : memref<9x128xf32, #tpu.memory_space<vmem>>, vector<1x128xf32>
    %c0_21 = arith.constant 0 : index
    %c0_22 = arith.constant 0 : index
    %34 = vector.load %arg3[%c0_21, %c0_22] : memref<128x128xf32, #tpu.memory_space<vmem>>, vector<128x128xf32>
    %35 = arith.truncf %30 : vector<16x128xf32> to vector<16x128xbf16>
    %36 = arith.truncf %34 : vector<128x128xf32> to vector<128x128xbf16>
    %cst_23 = arith.constant dense<0.000000e+00> : vector<16x128xf32>
    %37 = tpu.matmul %35, %36, %cst_23 {dimension_numbers = #tpu.dot_dimension_numbers<[1], [0], [0], [1], [0, 0, 1, 1], [], []>} : vector<16x128xbf16>, vector<128x128xbf16>, vector<16x128xf32> -> vector<16x128xf32>
    %38 = vector.broadcast %31 : vector<1x128xf32> to vector<16x128xf32>
    %39 = arith.addf %37, %38 : vector<16x128xf32>
    %cst_24 = arith.constant dense<0.000000e+00> : vector<16x4xf32>
    %40 = tpu.matmul %39, %0, %cst_24 {dimension_numbers = #tpu.dot_dimension_numbers<[1], [0], [0], [1], [0, 0, 1, 1], [], []>} : vector<16x128xf32>, vector<128x4xf32>, vector<16x4xf32> -> vector<16x4xf32>
    %cst_25 = arith.constant dense<0.000000e+00> : vector<16x128xf32>
    %41 = tpu.matmul %40, %1, %cst_25 {dimension_numbers = #tpu.dot_dimension_numbers<[1], [0], [0], [1], [0, 0, 1, 1], [], []>} : vector<16x4xf32>, vector<4x128xf32>, vector<16x128xf32> -> vector<16x128xf32>
    %42 = arith.subf %39, %41 : vector<16x128xf32>
    %43 = arith.mulf %42, %42 : vector<16x128xf32>
    %cst_26 = arith.constant dense<0.000000e+00> : vector<16x4xf32>
    %44 = tpu.matmul %43, %0, %cst_26 {dimension_numbers = #tpu.dot_dimension_numbers<[1], [0], [0], [1], [0, 0, 1, 1], [], []>} : vector<16x128xf32>, vector<128x4xf32>, vector<16x4xf32> -> vector<16x4xf32>
    %cst_27 = arith.constant dense<0.000000e+00> : vector<16x128xf32>
    %45 = tpu.matmul %44, %1, %cst_27 {dimension_numbers = #tpu.dot_dimension_numbers<[1], [0], [0], [1], [0, 0, 1, 1], [], []>} : vector<16x4xf32>, vector<4x128xf32>, vector<16x128xf32> -> vector<16x128xf32>
    %cst_28 = arith.constant 9.99999974E-6 : f32
    %46 = vector.broadcast %cst_28 : f32 to vector<16x128xf32>
    %47 = arith.addf %45, %46 : vector<16x128xf32>
    %48 = math.rsqrt %47 : vector<16x128xf32>
    %49 = arith.mulf %42, %48 : vector<16x128xf32>
    %50 = vector.broadcast %32 : vector<1x128xf32> to vector<16x128xf32>
    %51 = arith.mulf %49, %50 : vector<16x128xf32>
    %52 = vector.broadcast %33 : vector<1x128xf32> to vector<16x128xf32>
    %53 = arith.addf %51, %52 : vector<16x128xf32>
    %cst_29 = arith.constant 0.000000e+00 : f32
    %54 = vector.broadcast %cst_29 : f32 to vector<16x128xf32>
    %55 = arith.cmpf oge, %53, %54 : vector<16x128xf32>
    %cst_30 = arith.constant 0.00999999977 : f32
    %56 = vector.broadcast %cst_30 : f32 to vector<16x128xf32>
    %57 = arith.mulf %56, %53 : vector<16x128xf32>
    %58 = arith.select %55, %53, %57 : vector<16x128xi1>, vector<16x128xf32>
    %c6 = arith.constant 6 : index
    %c0_31 = arith.constant 0 : index
    %59 = vector.load %arg5[%c6, %c0_31] : memref<9x128xf32, #tpu.memory_space<vmem>>, vector<1x128xf32>
    %c7 = arith.constant 7 : index
    %c0_32 = arith.constant 0 : index
    %60 = vector.load %arg5[%c7, %c0_32] : memref<9x128xf32, #tpu.memory_space<vmem>>, vector<1x128xf32>
    %c8 = arith.constant 8 : index
    %c0_33 = arith.constant 0 : index
    %61 = vector.load %arg5[%c8, %c0_33] : memref<9x128xf32, #tpu.memory_space<vmem>>, vector<1x128xf32>
    %c0_34 = arith.constant 0 : index
    %c0_35 = arith.constant 0 : index
    %62 = vector.load %arg4[%c0_34, %c0_35] : memref<128x128xf32, #tpu.memory_space<vmem>>, vector<128x128xf32>
    %63 = arith.truncf %58 : vector<16x128xf32> to vector<16x128xbf16>
    %64 = arith.truncf %62 : vector<128x128xf32> to vector<128x128xbf16>
    %cst_36 = arith.constant dense<0.000000e+00> : vector<16x128xf32>
    %65 = tpu.matmul %63, %64, %cst_36 {dimension_numbers = #tpu.dot_dimension_numbers<[1], [0], [0], [1], [0, 0, 1, 1], [], []>} : vector<16x128xbf16>, vector<128x128xbf16>, vector<16x128xf32> -> vector<16x128xf32>
    %66 = vector.broadcast %59 : vector<1x128xf32> to vector<16x128xf32>
    %67 = arith.addf %65, %66 : vector<16x128xf32>
    %cst_37 = arith.constant dense<0.000000e+00> : vector<16x4xf32>
    %68 = tpu.matmul %67, %0, %cst_37 {dimension_numbers = #tpu.dot_dimension_numbers<[1], [0], [0], [1], [0, 0, 1, 1], [], []>} : vector<16x128xf32>, vector<128x4xf32>, vector<16x4xf32> -> vector<16x4xf32>
    %cst_38 = arith.constant dense<0.000000e+00> : vector<16x128xf32>
    %69 = tpu.matmul %68, %1, %cst_38 {dimension_numbers = #tpu.dot_dimension_numbers<[1], [0], [0], [1], [0, 0, 1, 1], [], []>} : vector<16x4xf32>, vector<4x128xf32>, vector<16x128xf32> -> vector<16x128xf32>
    %70 = arith.subf %67, %69 : vector<16x128xf32>
    %71 = arith.mulf %70, %70 : vector<16x128xf32>
    %cst_39 = arith.constant dense<0.000000e+00> : vector<16x4xf32>
    %72 = tpu.matmul %71, %0, %cst_39 {dimension_numbers = #tpu.dot_dimension_numbers<[1], [0], [0], [1], [0, 0, 1, 1], [], []>} : vector<16x128xf32>, vector<128x4xf32>, vector<16x4xf32> -> vector<16x4xf32>
    %cst_40 = arith.constant dense<0.000000e+00> : vector<16x128xf32>
    %73 = tpu.matmul %72, %1, %cst_40 {dimension_numbers = #tpu.dot_dimension_numbers<[1], [0], [0], [1], [0, 0, 1, 1], [], []>} : vector<16x4xf32>, vector<4x128xf32>, vector<16x128xf32> -> vector<16x128xf32>
    %cst_41 = arith.constant 9.99999974E-6 : f32
    %74 = vector.broadcast %cst_41 : f32 to vector<16x128xf32>
    %75 = arith.addf %73, %74 : vector<16x128xf32>
    %76 = math.rsqrt %75 : vector<16x128xf32>
    %77 = arith.mulf %70, %76 : vector<16x128xf32>
    %78 = vector.broadcast %60 : vector<1x128xf32> to vector<16x128xf32>
    %79 = arith.mulf %77, %78 : vector<16x128xf32>
    %80 = vector.broadcast %61 : vector<1x128xf32> to vector<16x128xf32>
    %81 = arith.addf %79, %80 : vector<16x128xf32>
    %cst_42 = arith.constant 0.000000e+00 : f32
    %82 = vector.broadcast %cst_42 : f32 to vector<16x128xf32>
    %83 = arith.cmpf oge, %81, %82 : vector<16x128xf32>
    %cst_43 = arith.constant 0.00999999977 : f32
    %84 = vector.broadcast %cst_43 : f32 to vector<16x128xf32>
    %85 = arith.mulf %84, %81 : vector<16x128xf32>
    %86 = arith.select %83, %81, %85 : vector<16x128xi1>, vector<16x128xf32>
    %c0_44 = arith.constant 0 : index
    %c0_45 = arith.constant 0 : index
    %87 = vector.load %arg8[%c0_44, %c0_45] : memref<128x128xf32, #tpu.memory_space<vmem>>, vector<128x128xf32>
    %88 = arith.truncf %86 : vector<16x128xf32> to vector<16x128xbf16>
    %89 = arith.truncf %87 : vector<128x128xf32> to vector<128x128xbf16>
    %cst_46 = arith.constant dense<0.000000e+00> : vector<16x128xf32>
    %90 = tpu.matmul %88, %89, %cst_46 {dimension_numbers = #tpu.dot_dimension_numbers<[1], [0], [0], [1], [0, 0, 1, 1], [], []>} : vector<16x128xbf16>, vector<128x128xbf16>, vector<16x128xf32> -> vector<16x128xf32>
    %c0_47 = arith.constant 0 : index
    %c0_48 = arith.constant 0 : index
    %91 = vector.load %arg9[%c0_47, %c0_48] : memref<1x128xf32, #tpu.memory_space<vmem>>, vector<1x128xf32>
    %92 = vector.broadcast %91 : vector<1x128xf32> to vector<16x128xf32>
    %93 = arith.addf %90, %92 : vector<16x128xf32>
    %c0_49 = arith.constant 0 : index
    %c0_50 = arith.constant 0 : index
    %94 = vector.load %arg10[%c0_49, %c0_50] : memref<16x128xf32, #tpu.memory_space<vmem>>, vector<16x128xf32>
    tpu.vector_store %arg10[%c0_49, %c0_50], %93 {strides = array<i32>} : memref<16x128xf32, #tpu.memory_space<vmem>>, vector<16x128xf32>,
    return
  }
  func.func @transform_0(%arg0: i32) -> (i32, i32) {
    %c0_i32 = arith.constant 0 : i32
    %c0_i32_0 = arith.constant 0 : i32
    return %arg0, %c0_i32 : i32, i32
  }
  func.func @transform_1(%arg0: i32) -> (i32, i32) {
    %c0_i32 = arith.constant 0 : i32
    %c0_i32_0 = arith.constant 0 : i32
    %c0_i32_1 = arith.constant 0 : i32
    return %c0_i32, %c0_i32_0 : i32, i32
  }
  func.func @transform_2(%arg0: i32) -> (i32, i32) {
    %c0_i32 = arith.constant 0 : i32
    %c0_i32_0 = arith.constant 0 : i32
    %c0_i32_1 = arith.constant 0 : i32
    return %c0_i32, %c0_i32_0 : i32, i32
  }
  func.func @transform_3(%arg0: i32) -> (i32, i32) {
    %c0_i32 = arith.constant 0 : i32
    %c0_i32_0 = arith.constant 0 : i32
    %c0_i32_1 = arith.constant 0 : i32
    return %c0_i32, %c0_i32_0 : i32, i32
  }
  func.func @transform_4(%arg0: i32) -> (i32, i32) {
    %c0_i32 = arith.constant 0 : i32
    %c0_i32_0 = arith.constant 0 : i32
    %c0_i32_1 = arith.constant 0 : i32
    return %c0_i32, %c0_i32_0 : i32, i32
  }
  func.func @transform_5(%arg0: i32) -> (i32, i32) {
    %c0_i32 = arith.constant 0 : i32
    %c0_i32_0 = arith.constant 0 : i32
    %c0_i32_1 = arith.constant 0 : i32
    return %c0_i32, %c0_i32_0 : i32, i32
  }
  func.func @transform_6(%arg0: i32) -> (i32, i32) {
    %c0_i32 = arith.constant 0 : i32
    %c0_i32_0 = arith.constant 0 : i32
    %c0_i32_1 = arith.constant 0 : i32
    return %c0_i32, %c0_i32_0 : i32, i32
  }
  func.func @transform_7(%arg0: i32) -> (i32, i32) {
    %c0_i32 = arith.constant 0 : i32
    %c0_i32_0 = arith.constant 0 : i32
    %c0_i32_1 = arith.constant 0 : i32
    return %c0_i32, %c0_i32_0 : i32, i32
  }
  func.func @transform_8(%arg0: i32) -> (i32, i32) {
    %c0_i32 = arith.constant 0 : i32
    %c0_i32_0 = arith.constant 0 : i32
    %c0_i32_1 = arith.constant 0 : i32
    return %c0_i32, %c0_i32_0 : i32, i32
  }
  func.func @transform_9(%arg0: i32) -> (i32, i32) {
    %c0_i32 = arith.constant 0 : i32
    %c0_i32_0 = arith.constant 0 : i32
    return %arg0, %c0_i32 : i32, i32
  }
}

module attributes {stable_mosaic.version = 11 : i64} {
  func.func @_gru_kernel(%arg0: i32, %arg1: memref<8x8x128xf32, #tpu.memory_space<vmem>>, %arg2: memref<32x96xf32, #tpu.memory_space<vmem>>, %arg3: memref<1x96xf32, #tpu.memory_space<vmem>>, %arg4: memref<8x8x32xf32, #tpu.memory_space<vmem>>, %arg5: memref<8x32xf32, #tpu.memory_space<vmem>>) attributes {dimension_semantics = [#tpu.dimension_semantics<arbitrary>], iteration_bounds = array<i64: 1>, scalar_prefetch = 0 : i64, scratch_operands = 1 : i64, tpu.core_type = #tpu.core_type<tc>, window_params = [{transform_indices = @transform_0, window_bounds = array<i64: 8, 8, 128>}, {pipeline_mode = #tpu.pipeline_mode<synchronous>, transform_indices = @transform_1, window_bounds = array<i64: 32, 96>}, {pipeline_mode = #tpu.pipeline_mode<synchronous>, transform_indices = @transform_2, window_bounds = array<i64: 1, 96>}, {transform_indices = @transform_3, window_bounds = array<i64: 8, 8, 32>}]} {
    %c0_i32 = arith.constant 0 : i32
    %0 = arith.cmpi eq, %arg0, %c0_i32 : i32
    %1 = arith.extui %0 : i1 to i32
    %c0_i32_0 = arith.constant 0 : i32
    %2 = arith.cmpi ne, %1, %c0_i32_0 : i32
    scf.if %2 {
      %cst_80 = arith.constant 0.000000e+00 : f32
      %279 = vector.broadcast %cst_80 : f32 to vector<8x32xf32>
      %c0_81 = arith.constant 0 : index
      %c0_82 = arith.constant 0 : index
      %280 = vector.load %arg5[%c0_81, %c0_82] : memref<8x32xf32, #tpu.memory_space<vmem>>, vector<8x32xf32>
      tpu.vector_store %arg5[%c0_81, %c0_82], %279 {strides = array<i32>} : memref<8x32xf32, #tpu.memory_space<vmem>>, vector<8x32xf32>,
    } else {
    }
    %c0 = arith.constant 0 : index
    %c0_1 = arith.constant 0 : index
    %3 = vector.load %arg2[%c0, %c0_1] : memref<32x96xf32, #tpu.memory_space<vmem>>, vector<32x96xf32>
    %c0_2 = arith.constant 0 : index
    %c0_3 = arith.constant 0 : index
    %4 = vector.load %arg3[%c0_2, %c0_3] : memref<1x96xf32, #tpu.memory_space<vmem>>, vector<1x96xf32>
    %c0_4 = arith.constant 0 : index
    %c0_5 = arith.constant 0 : index
    %5 = vector.load %arg5[%c0_4, %c0_5] : memref<8x32xf32, #tpu.memory_space<vmem>>, vector<8x32xf32>
    %c0_6 = arith.constant 0 : index
    %c0_7 = arith.constant 0 : index
    %c0_8 = arith.constant 0 : index
    %6 = vector.load %arg1[%c0_6, %c0_7, %c0_8] : memref<8x8x128xf32, #tpu.memory_space<vmem>>, vector<1x8x128xf32>
    %7 = vector.shape_cast %6 : vector<1x8x128xf32> to vector<8x128xf32>
    %cst = arith.constant dense<0.000000e+00> : vector<8x96xf32>
    %8 = tpu.matmul %5, %3, %cst {dimension_numbers = #tpu.dot_dimension_numbers<[1], [0], [0], [1], [0, 0, 1, 1], [], []>} : vector<8x32xf32>, vector<32x96xf32>, vector<8x96xf32> -> vector<8x96xf32>
    %9 = vector.broadcast %4 : vector<1x96xf32> to vector<8x96xf32>
    %10 = arith.addf %8, %9 : vector<8x96xf32>
    %11 = vector.extract_strided_slice %7 {offsets = [0, 0], sizes = [8, 32], strides = [1, 1]} : vector<8x128xf32> to vector<8x32xf32>
    %12 = vector.extract_strided_slice %7 {offsets = [0, 32], sizes = [8, 32], strides = [1, 1]} : vector<8x128xf32> to vector<8x32xf32>
    %13 = vector.extract_strided_slice %7 {offsets = [0, 64], sizes = [8, 32], strides = [1, 1]} : vector<8x128xf32> to vector<8x32xf32>
    %14 = vector.extract_strided_slice %10 {offsets = [0, 0], sizes = [8, 32], strides = [1, 1]} : vector<8x96xf32> to vector<8x32xf32>
    %15 = vector.extract_strided_slice %10 {offsets = [0, 32], sizes = [8, 32], strides = [1, 1]} : vector<8x96xf32> to vector<8x32xf32>
    %16 = vector.extract_strided_slice %10 {offsets = [0, 64], sizes = [8, 32], strides = [1, 1]} : vector<8x96xf32> to vector<8x32xf32>
    %17 = arith.addf %11, %14 : vector<8x32xf32>
    %18 = arith.negf %17 : vector<8x32xf32>
    %19 = math.exp %18 : vector<8x32xf32>
    %cst_9 = arith.constant 1.000000e+00 : f32
    %20 = vector.broadcast %cst_9 : f32 to vector<8x32xf32>
    %21 = arith.addf %20, %19 : vector<8x32xf32>
    %22 = arith.divf %20, %21 : vector<8x32xf32>
    %23 = arith.addf %12, %15 : vector<8x32xf32>
    %24 = arith.negf %23 : vector<8x32xf32>
    %25 = math.exp %24 : vector<8x32xf32>
    %cst_10 = arith.constant 1.000000e+00 : f32
    %26 = vector.broadcast %cst_10 : f32 to vector<8x32xf32>
    %27 = arith.addf %26, %25 : vector<8x32xf32>
    %28 = arith.divf %26, %27 : vector<8x32xf32>
    %29 = arith.mulf %22, %16 : vector<8x32xf32>
    %30 = arith.addf %13, %29 : vector<8x32xf32>
    %31 = math.tanh %30 : vector<8x32xf32>
    %cst_11 = arith.constant 1.000000e+00 : f32
    %32 = vector.broadcast %cst_11 : f32 to vector<8x32xf32>
    %33 = arith.subf %32, %28 : vector<8x32xf32>
    %34 = arith.mulf %33, %31 : vector<8x32xf32>
    %35 = arith.mulf %28, %5 : vector<8x32xf32>
    %36 = arith.addf %34, %35 : vector<8x32xf32>
    %c0_12 = arith.constant 0 : index
    %c0_13 = arith.constant 0 : index
    %c0_14 = arith.constant 0 : index
    %37 = vector.load %arg4[%c0_12, %c0_13, %c0_14] : memref<8x8x32xf32, #tpu.memory_space<vmem>>, vector<1x8x32xf32>
    %38 = vector.shape_cast %37 : vector<1x8x32xf32> to vector<8x32xf32>
    %39 = vector.shape_cast %36 : vector<8x32xf32> to vector<1x8x32xf32>
    tpu.vector_store %arg4[%c0_12, %c0_13, %c0_14], %39 {strides = array<i32>} : memref<8x8x32xf32, #tpu.memory_space<vmem>>, vector<1x8x32xf32>,
    %c1 = arith.constant 1 : index
    %c0_15 = arith.constant 0 : index
    %c0_16 = arith.constant 0 : index
    %40 = vector.load %arg1[%c1, %c0_15, %c0_16] : memref<8x8x128xf32, #tpu.memory_space<vmem>>, vector<1x8x128xf32>
    %41 = vector.shape_cast %40 : vector<1x8x128xf32> to vector<8x128xf32>
    %cst_17 = arith.constant dense<0.000000e+00> : vector<8x96xf32>
    %42 = tpu.matmul %36, %3, %cst_17 {dimension_numbers = #tpu.dot_dimension_numbers<[1], [0], [0], [1], [0, 0, 1, 1], [], []>} : vector<8x32xf32>, vector<32x96xf32>, vector<8x96xf32> -> vector<8x96xf32>
    %43 = vector.broadcast %4 : vector<1x96xf32> to vector<8x96xf32>
    %44 = arith.addf %42, %43 : vector<8x96xf32>
    %45 = vector.extract_strided_slice %41 {offsets = [0, 0], sizes = [8, 32], strides = [1, 1]} : vector<8x128xf32> to vector<8x32xf32>
    %46 = vector.extract_strided_slice %41 {offsets = [0, 32], sizes = [8, 32], strides = [1, 1]} : vector<8x128xf32> to vector<8x32xf32>
    %47 = vector.extract_strided_slice %41 {offsets = [0, 64], sizes = [8, 32], strides = [1, 1]} : vector<8x128xf32> to vector<8x32xf32>
    %48 = vector.extract_strided_slice %44 {offsets = [0, 0], sizes = [8, 32], strides = [1, 1]} : vector<8x96xf32> to vector<8x32xf32>
    %49 = vector.extract_strided_slice %44 {offsets = [0, 32], sizes = [8, 32], strides = [1, 1]} : vector<8x96xf32> to vector<8x32xf32>
    %50 = vector.extract_strided_slice %44 {offsets = [0, 64], sizes = [8, 32], strides = [1, 1]} : vector<8x96xf32> to vector<8x32xf32>
    %51 = arith.addf %45, %48 : vector<8x32xf32>
    %52 = arith.negf %51 : vector<8x32xf32>
    %53 = math.exp %52 : vector<8x32xf32>
    %cst_18 = arith.constant 1.000000e+00 : f32
    %54 = vector.broadcast %cst_18 : f32 to vector<8x32xf32>
    %55 = arith.addf %54, %53 : vector<8x32xf32>
    %56 = arith.divf %54, %55 : vector<8x32xf32>
    %57 = arith.addf %46, %49 : vector<8x32xf32>
    %58 = arith.negf %57 : vector<8x32xf32>
    %59 = math.exp %58 : vector<8x32xf32>
    %cst_19 = arith.constant 1.000000e+00 : f32
    %60 = vector.broadcast %cst_19 : f32 to vector<8x32xf32>
    %61 = arith.addf %60, %59 : vector<8x32xf32>
    %62 = arith.divf %60, %61 : vector<8x32xf32>
    %63 = arith.mulf %56, %50 : vector<8x32xf32>
    %64 = arith.addf %47, %63 : vector<8x32xf32>
    %65 = math.tanh %64 : vector<8x32xf32>
    %cst_20 = arith.constant 1.000000e+00 : f32
    %66 = vector.broadcast %cst_20 : f32 to vector<8x32xf32>
    %67 = arith.subf %66, %62 : vector<8x32xf32>
    %68 = arith.mulf %67, %65 : vector<8x32xf32>
    %69 = arith.mulf %62, %36 : vector<8x32xf32>
    %70 = arith.addf %68, %69 : vector<8x32xf32>
    %c1_21 = arith.constant 1 : index
    %c0_22 = arith.constant 0 : index
    %c0_23 = arith.constant 0 : index
    %71 = vector.load %arg4[%c1_21, %c0_22, %c0_23] : memref<8x8x32xf32, #tpu.memory_space<vmem>>, vector<1x8x32xf32>
    %72 = vector.shape_cast %71 : vector<1x8x32xf32> to vector<8x32xf32>
    %73 = vector.shape_cast %70 : vector<8x32xf32> to vector<1x8x32xf32>
    tpu.vector_store %arg4[%c1_21, %c0_22, %c0_23], %73 {strides = array<i32>} : memref<8x8x32xf32, #tpu.memory_space<vmem>>, vector<1x8x32xf32>,
    %c2 = arith.constant 2 : index
    %c0_24 = arith.constant 0 : index
    %c0_25 = arith.constant 0 : index
    %74 = vector.load %arg1[%c2, %c0_24, %c0_25] : memref<8x8x128xf32, #tpu.memory_space<vmem>>, vector<1x8x128xf32>
    %75 = vector.shape_cast %74 : vector<1x8x128xf32> to vector<8x128xf32>
    %cst_26 = arith.constant dense<0.000000e+00> : vector<8x96xf32>
    %76 = tpu.matmul %70, %3, %cst_26 {dimension_numbers = #tpu.dot_dimension_numbers<[1], [0], [0], [1], [0, 0, 1, 1], [], []>} : vector<8x32xf32>, vector<32x96xf32>, vector<8x96xf32> -> vector<8x96xf32>
    %77 = vector.broadcast %4 : vector<1x96xf32> to vector<8x96xf32>
    %78 = arith.addf %76, %77 : vector<8x96xf32>
    %79 = vector.extract_strided_slice %75 {offsets = [0, 0], sizes = [8, 32], strides = [1, 1]} : vector<8x128xf32> to vector<8x32xf32>
    %80 = vector.extract_strided_slice %75 {offsets = [0, 32], sizes = [8, 32], strides = [1, 1]} : vector<8x128xf32> to vector<8x32xf32>
    %81 = vector.extract_strided_slice %75 {offsets = [0, 64], sizes = [8, 32], strides = [1, 1]} : vector<8x128xf32> to vector<8x32xf32>
    %82 = vector.extract_strided_slice %78 {offsets = [0, 0], sizes = [8, 32], strides = [1, 1]} : vector<8x96xf32> to vector<8x32xf32>
    %83 = vector.extract_strided_slice %78 {offsets = [0, 32], sizes = [8, 32], strides = [1, 1]} : vector<8x96xf32> to vector<8x32xf32>
    %84 = vector.extract_strided_slice %78 {offsets = [0, 64], sizes = [8, 32], strides = [1, 1]} : vector<8x96xf32> to vector<8x32xf32>
    %85 = arith.addf %79, %82 : vector<8x32xf32>
    %86 = arith.negf %85 : vector<8x32xf32>
    %87 = math.exp %86 : vector<8x32xf32>
    %cst_27 = arith.constant 1.000000e+00 : f32
    %88 = vector.broadcast %cst_27 : f32 to vector<8x32xf32>
    %89 = arith.addf %88, %87 : vector<8x32xf32>
    %90 = arith.divf %88, %89 : vector<8x32xf32>
    %91 = arith.addf %80, %83 : vector<8x32xf32>
    %92 = arith.negf %91 : vector<8x32xf32>
    %93 = math.exp %92 : vector<8x32xf32>
    %cst_28 = arith.constant 1.000000e+00 : f32
    %94 = vector.broadcast %cst_28 : f32 to vector<8x32xf32>
    %95 = arith.addf %94, %93 : vector<8x32xf32>
    %96 = arith.divf %94, %95 : vector<8x32xf32>
    %97 = arith.mulf %90, %84 : vector<8x32xf32>
    %98 = arith.addf %81, %97 : vector<8x32xf32>
    %99 = math.tanh %98 : vector<8x32xf32>
    %cst_29 = arith.constant 1.000000e+00 : f32
    %100 = vector.broadcast %cst_29 : f32 to vector<8x32xf32>
    %101 = arith.subf %100, %96 : vector<8x32xf32>
    %102 = arith.mulf %101, %99 : vector<8x32xf32>
    %103 = arith.mulf %96, %70 : vector<8x32xf32>
    %104 = arith.addf %102, %103 : vector<8x32xf32>
    %c2_30 = arith.constant 2 : index
    %c0_31 = arith.constant 0 : index
    %c0_32 = arith.constant 0 : index
    %105 = vector.load %arg4[%c2_30, %c0_31, %c0_32] : memref<8x8x32xf32, #tpu.memory_space<vmem>>, vector<1x8x32xf32>
    %106 = vector.shape_cast %105 : vector<1x8x32xf32> to vector<8x32xf32>
    %107 = vector.shape_cast %104 : vector<8x32xf32> to vector<1x8x32xf32>
    tpu.vector_store %arg4[%c2_30, %c0_31, %c0_32], %107 {strides = array<i32>} : memref<8x8x32xf32, #tpu.memory_space<vmem>>, vector<1x8x32xf32>,
    %c3 = arith.constant 3 : index
    %c0_33 = arith.constant 0 : index
    %c0_34 = arith.constant 0 : index
    %108 = vector.load %arg1[%c3, %c0_33, %c0_34] : memref<8x8x128xf32, #tpu.memory_space<vmem>>, vector<1x8x128xf32>
    %109 = vector.shape_cast %108 : vector<1x8x128xf32> to vector<8x128xf32>
    %cst_35 = arith.constant dense<0.000000e+00> : vector<8x96xf32>
    %110 = tpu.matmul %104, %3, %cst_35 {dimension_numbers = #tpu.dot_dimension_numbers<[1], [0], [0], [1], [0, 0, 1, 1], [], []>} : vector<8x32xf32>, vector<32x96xf32>, vector<8x96xf32> -> vector<8x96xf32>
    %111 = vector.broadcast %4 : vector<1x96xf32> to vector<8x96xf32>
    %112 = arith.addf %110, %111 : vector<8x96xf32>
    %113 = vector.extract_strided_slice %109 {offsets = [0, 0], sizes = [8, 32], strides = [1, 1]} : vector<8x128xf32> to vector<8x32xf32>
    %114 = vector.extract_strided_slice %109 {offsets = [0, 32], sizes = [8, 32], strides = [1, 1]} : vector<8x128xf32> to vector<8x32xf32>
    %115 = vector.extract_strided_slice %109 {offsets = [0, 64], sizes = [8, 32], strides = [1, 1]} : vector<8x128xf32> to vector<8x32xf32>
    %116 = vector.extract_strided_slice %112 {offsets = [0, 0], sizes = [8, 32], strides = [1, 1]} : vector<8x96xf32> to vector<8x32xf32>
    %117 = vector.extract_strided_slice %112 {offsets = [0, 32], sizes = [8, 32], strides = [1, 1]} : vector<8x96xf32> to vector<8x32xf32>
    %118 = vector.extract_strided_slice %112 {offsets = [0, 64], sizes = [8, 32], strides = [1, 1]} : vector<8x96xf32> to vector<8x32xf32>
    %119 = arith.addf %113, %116 : vector<8x32xf32>
    %120 = arith.negf %119 : vector<8x32xf32>
    %121 = math.exp %120 : vector<8x32xf32>
    %cst_36 = arith.constant 1.000000e+00 : f32
    %122 = vector.broadcast %cst_36 : f32 to vector<8x32xf32>
    %123 = arith.addf %122, %121 : vector<8x32xf32>
    %124 = arith.divf %122, %123 : vector<8x32xf32>
    %125 = arith.addf %114, %117 : vector<8x32xf32>
    %126 = arith.negf %125 : vector<8x32xf32>
    %127 = math.exp %126 : vector<8x32xf32>
    %cst_37 = arith.constant 1.000000e+00 : f32
    %128 = vector.broadcast %cst_37 : f32 to vector<8x32xf32>
    %129 = arith.addf %128, %127 : vector<8x32xf32>
    %130 = arith.divf %128, %129 : vector<8x32xf32>
    %131 = arith.mulf %124, %118 : vector<8x32xf32>
    %132 = arith.addf %115, %131 : vector<8x32xf32>
    %133 = math.tanh %132 : vector<8x32xf32>
    %cst_38 = arith.constant 1.000000e+00 : f32
    %134 = vector.broadcast %cst_38 : f32 to vector<8x32xf32>
    %135 = arith.subf %134, %130 : vector<8x32xf32>
    %136 = arith.mulf %135, %133 : vector<8x32xf32>
    %137 = arith.mulf %130, %104 : vector<8x32xf32>
    %138 = arith.addf %136, %137 : vector<8x32xf32>
    %c3_39 = arith.constant 3 : index
    %c0_40 = arith.constant 0 : index
    %c0_41 = arith.constant 0 : index
    %139 = vector.load %arg4[%c3_39, %c0_40, %c0_41] : memref<8x8x32xf32, #tpu.memory_space<vmem>>, vector<1x8x32xf32>
    %140 = vector.shape_cast %139 : vector<1x8x32xf32> to vector<8x32xf32>
    %141 = vector.shape_cast %138 : vector<8x32xf32> to vector<1x8x32xf32>
    tpu.vector_store %arg4[%c3_39, %c0_40, %c0_41], %141 {strides = array<i32>} : memref<8x8x32xf32, #tpu.memory_space<vmem>>, vector<1x8x32xf32>,
    %c4 = arith.constant 4 : index
    %c0_42 = arith.constant 0 : index
    %c0_43 = arith.constant 0 : index
    %142 = vector.load %arg1[%c4, %c0_42, %c0_43] : memref<8x8x128xf32, #tpu.memory_space<vmem>>, vector<1x8x128xf32>
    %143 = vector.shape_cast %142 : vector<1x8x128xf32> to vector<8x128xf32>
    %cst_44 = arith.constant dense<0.000000e+00> : vector<8x96xf32>
    %144 = tpu.matmul %138, %3, %cst_44 {dimension_numbers = #tpu.dot_dimension_numbers<[1], [0], [0], [1], [0, 0, 1, 1], [], []>} : vector<8x32xf32>, vector<32x96xf32>, vector<8x96xf32> -> vector<8x96xf32>
    %145 = vector.broadcast %4 : vector<1x96xf32> to vector<8x96xf32>
    %146 = arith.addf %144, %145 : vector<8x96xf32>
    %147 = vector.extract_strided_slice %143 {offsets = [0, 0], sizes = [8, 32], strides = [1, 1]} : vector<8x128xf32> to vector<8x32xf32>
    %148 = vector.extract_strided_slice %143 {offsets = [0, 32], sizes = [8, 32], strides = [1, 1]} : vector<8x128xf32> to vector<8x32xf32>
    %149 = vector.extract_strided_slice %143 {offsets = [0, 64], sizes = [8, 32], strides = [1, 1]} : vector<8x128xf32> to vector<8x32xf32>
    %150 = vector.extract_strided_slice %146 {offsets = [0, 0], sizes = [8, 32], strides = [1, 1]} : vector<8x96xf32> to vector<8x32xf32>
    %151 = vector.extract_strided_slice %146 {offsets = [0, 32], sizes = [8, 32], strides = [1, 1]} : vector<8x96xf32> to vector<8x32xf32>
    %152 = vector.extract_strided_slice %146 {offsets = [0, 64], sizes = [8, 32], strides = [1, 1]} : vector<8x96xf32> to vector<8x32xf32>
    %153 = arith.addf %147, %150 : vector<8x32xf32>
    %154 = arith.negf %153 : vector<8x32xf32>
    %155 = math.exp %154 : vector<8x32xf32>
    %cst_45 = arith.constant 1.000000e+00 : f32
    %156 = vector.broadcast %cst_45 : f32 to vector<8x32xf32>
    %157 = arith.addf %156, %155 : vector<8x32xf32>
    %158 = arith.divf %156, %157 : vector<8x32xf32>
    %159 = arith.addf %148, %151 : vector<8x32xf32>
    %160 = arith.negf %159 : vector<8x32xf32>
    %161 = math.exp %160 : vector<8x32xf32>
    %cst_46 = arith.constant 1.000000e+00 : f32
    %162 = vector.broadcast %cst_46 : f32 to vector<8x32xf32>
    %163 = arith.addf %162, %161 : vector<8x32xf32>
    %164 = arith.divf %162, %163 : vector<8x32xf32>
    %165 = arith.mulf %158, %152 : vector<8x32xf32>
    %166 = arith.addf %149, %165 : vector<8x32xf32>
    %167 = math.tanh %166 : vector<8x32xf32>
    %cst_47 = arith.constant 1.000000e+00 : f32
    %168 = vector.broadcast %cst_47 : f32 to vector<8x32xf32>
    %169 = arith.subf %168, %164 : vector<8x32xf32>
    %170 = arith.mulf %169, %167 : vector<8x32xf32>
    %171 = arith.mulf %164, %138 : vector<8x32xf32>
    %172 = arith.addf %170, %171 : vector<8x32xf32>
    %c4_48 = arith.constant 4 : index
    %c0_49 = arith.constant 0 : index
    %c0_50 = arith.constant 0 : index
    %173 = vector.load %arg4[%c4_48, %c0_49, %c0_50] : memref<8x8x32xf32, #tpu.memory_space<vmem>>, vector<1x8x32xf32>
    %174 = vector.shape_cast %173 : vector<1x8x32xf32> to vector<8x32xf32>
    %175 = vector.shape_cast %172 : vector<8x32xf32> to vector<1x8x32xf32>
    tpu.vector_store %arg4[%c4_48, %c0_49, %c0_50], %175 {strides = array<i32>} : memref<8x8x32xf32, #tpu.memory_space<vmem>>, vector<1x8x32xf32>,
    %c5 = arith.constant 5 : index
    %c0_51 = arith.constant 0 : index
    %c0_52 = arith.constant 0 : index
    %176 = vector.load %arg1[%c5, %c0_51, %c0_52] : memref<8x8x128xf32, #tpu.memory_space<vmem>>, vector<1x8x128xf32>
    %177 = vector.shape_cast %176 : vector<1x8x128xf32> to vector<8x128xf32>
    %cst_53 = arith.constant dense<0.000000e+00> : vector<8x96xf32>
    %178 = tpu.matmul %172, %3, %cst_53 {dimension_numbers = #tpu.dot_dimension_numbers<[1], [0], [0], [1], [0, 0, 1, 1], [], []>} : vector<8x32xf32>, vector<32x96xf32>, vector<8x96xf32> -> vector<8x96xf32>
    %179 = vector.broadcast %4 : vector<1x96xf32> to vector<8x96xf32>
    %180 = arith.addf %178, %179 : vector<8x96xf32>
    %181 = vector.extract_strided_slice %177 {offsets = [0, 0], sizes = [8, 32], strides = [1, 1]} : vector<8x128xf32> to vector<8x32xf32>
    %182 = vector.extract_strided_slice %177 {offsets = [0, 32], sizes = [8, 32], strides = [1, 1]} : vector<8x128xf32> to vector<8x32xf32>
    %183 = vector.extract_strided_slice %177 {offsets = [0, 64], sizes = [8, 32], strides = [1, 1]} : vector<8x128xf32> to vector<8x32xf32>
    %184 = vector.extract_strided_slice %180 {offsets = [0, 0], sizes = [8, 32], strides = [1, 1]} : vector<8x96xf32> to vector<8x32xf32>
    %185 = vector.extract_strided_slice %180 {offsets = [0, 32], sizes = [8, 32], strides = [1, 1]} : vector<8x96xf32> to vector<8x32xf32>
    %186 = vector.extract_strided_slice %180 {offsets = [0, 64], sizes = [8, 32], strides = [1, 1]} : vector<8x96xf32> to vector<8x32xf32>
    %187 = arith.addf %181, %184 : vector<8x32xf32>
    %188 = arith.negf %187 : vector<8x32xf32>
    %189 = math.exp %188 : vector<8x32xf32>
    %cst_54 = arith.constant 1.000000e+00 : f32
    %190 = vector.broadcast %cst_54 : f32 to vector<8x32xf32>
    %191 = arith.addf %190, %189 : vector<8x32xf32>
    %192 = arith.divf %190, %191 : vector<8x32xf32>
    %193 = arith.addf %182, %185 : vector<8x32xf32>
    %194 = arith.negf %193 : vector<8x32xf32>
    %195 = math.exp %194 : vector<8x32xf32>
    %cst_55 = arith.constant 1.000000e+00 : f32
    %196 = vector.broadcast %cst_55 : f32 to vector<8x32xf32>
    %197 = arith.addf %196, %195 : vector<8x32xf32>
    %198 = arith.divf %196, %197 : vector<8x32xf32>
    %199 = arith.mulf %192, %186 : vector<8x32xf32>
    %200 = arith.addf %183, %199 : vector<8x32xf32>
    %201 = math.tanh %200 : vector<8x32xf32>
    %cst_56 = arith.constant 1.000000e+00 : f32
    %202 = vector.broadcast %cst_56 : f32 to vector<8x32xf32>
    %203 = arith.subf %202, %198 : vector<8x32xf32>
    %204 = arith.mulf %203, %201 : vector<8x32xf32>
    %205 = arith.mulf %198, %172 : vector<8x32xf32>
    %206 = arith.addf %204, %205 : vector<8x32xf32>
    %c5_57 = arith.constant 5 : index
    %c0_58 = arith.constant 0 : index
    %c0_59 = arith.constant 0 : index
    %207 = vector.load %arg4[%c5_57, %c0_58, %c0_59] : memref<8x8x32xf32, #tpu.memory_space<vmem>>, vector<1x8x32xf32>
    %208 = vector.shape_cast %207 : vector<1x8x32xf32> to vector<8x32xf32>
    %209 = vector.shape_cast %206 : vector<8x32xf32> to vector<1x8x32xf32>
    tpu.vector_store %arg4[%c5_57, %c0_58, %c0_59], %209 {strides = array<i32>} : memref<8x8x32xf32, #tpu.memory_space<vmem>>, vector<1x8x32xf32>,
    %c6 = arith.constant 6 : index
    %c0_60 = arith.constant 0 : index
    %c0_61 = arith.constant 0 : index
    %210 = vector.load %arg1[%c6, %c0_60, %c0_61] : memref<8x8x128xf32, #tpu.memory_space<vmem>>, vector<1x8x128xf32>
    %211 = vector.shape_cast %210 : vector<1x8x128xf32> to vector<8x128xf32>
    %cst_62 = arith.constant dense<0.000000e+00> : vector<8x96xf32>
    %212 = tpu.matmul %206, %3, %cst_62 {dimension_numbers = #tpu.dot_dimension_numbers<[1], [0], [0], [1], [0, 0, 1, 1], [], []>} : vector<8x32xf32>, vector<32x96xf32>, vector<8x96xf32> -> vector<8x96xf32>
    %213 = vector.broadcast %4 : vector<1x96xf32> to vector<8x96xf32>
    %214 = arith.addf %212, %213 : vector<8x96xf32>
    %215 = vector.extract_strided_slice %211 {offsets = [0, 0], sizes = [8, 32], strides = [1, 1]} : vector<8x128xf32> to vector<8x32xf32>
    %216 = vector.extract_strided_slice %211 {offsets = [0, 32], sizes = [8, 32], strides = [1, 1]} : vector<8x128xf32> to vector<8x32xf32>
    %217 = vector.extract_strided_slice %211 {offsets = [0, 64], sizes = [8, 32], strides = [1, 1]} : vector<8x128xf32> to vector<8x32xf32>
    %218 = vector.extract_strided_slice %214 {offsets = [0, 0], sizes = [8, 32], strides = [1, 1]} : vector<8x96xf32> to vector<8x32xf32>
    %219 = vector.extract_strided_slice %214 {offsets = [0, 32], sizes = [8, 32], strides = [1, 1]} : vector<8x96xf32> to vector<8x32xf32>
    %220 = vector.extract_strided_slice %214 {offsets = [0, 64], sizes = [8, 32], strides = [1, 1]} : vector<8x96xf32> to vector<8x32xf32>
    %221 = arith.addf %215, %218 : vector<8x32xf32>
    %222 = arith.negf %221 : vector<8x32xf32>
    %223 = math.exp %222 : vector<8x32xf32>
    %cst_63 = arith.constant 1.000000e+00 : f32
    %224 = vector.broadcast %cst_63 : f32 to vector<8x32xf32>
    %225 = arith.addf %224, %223 : vector<8x32xf32>
    %226 = arith.divf %224, %225 : vector<8x32xf32>
    %227 = arith.addf %216, %219 : vector<8x32xf32>
    %228 = arith.negf %227 : vector<8x32xf32>
    %229 = math.exp %228 : vector<8x32xf32>
    %cst_64 = arith.constant 1.000000e+00 : f32
    %230 = vector.broadcast %cst_64 : f32 to vector<8x32xf32>
    %231 = arith.addf %230, %229 : vector<8x32xf32>
    %232 = arith.divf %230, %231 : vector<8x32xf32>
    %233 = arith.mulf %226, %220 : vector<8x32xf32>
    %234 = arith.addf %217, %233 : vector<8x32xf32>
    %235 = math.tanh %234 : vector<8x32xf32>
    %cst_65 = arith.constant 1.000000e+00 : f32
    %236 = vector.broadcast %cst_65 : f32 to vector<8x32xf32>
    %237 = arith.subf %236, %232 : vector<8x32xf32>
    %238 = arith.mulf %237, %235 : vector<8x32xf32>
    %239 = arith.mulf %232, %206 : vector<8x32xf32>
    %240 = arith.addf %238, %239 : vector<8x32xf32>
    %c6_66 = arith.constant 6 : index
    %c0_67 = arith.constant 0 : index
    %c0_68 = arith.constant 0 : index
    %241 = vector.load %arg4[%c6_66, %c0_67, %c0_68] : memref<8x8x32xf32, #tpu.memory_space<vmem>>, vector<1x8x32xf32>
    %242 = vector.shape_cast %241 : vector<1x8x32xf32> to vector<8x32xf32>
    %243 = vector.shape_cast %240 : vector<8x32xf32> to vector<1x8x32xf32>
    tpu.vector_store %arg4[%c6_66, %c0_67, %c0_68], %243 {strides = array<i32>} : memref<8x8x32xf32, #tpu.memory_space<vmem>>, vector<1x8x32xf32>,
    %c7 = arith.constant 7 : index
    %c0_69 = arith.constant 0 : index
    %c0_70 = arith.constant 0 : index
    %244 = vector.load %arg1[%c7, %c0_69, %c0_70] : memref<8x8x128xf32, #tpu.memory_space<vmem>>, vector<1x8x128xf32>
    %245 = vector.shape_cast %244 : vector<1x8x128xf32> to vector<8x128xf32>
    %cst_71 = arith.constant dense<0.000000e+00> : vector<8x96xf32>
    %246 = tpu.matmul %240, %3, %cst_71 {dimension_numbers = #tpu.dot_dimension_numbers<[1], [0], [0], [1], [0, 0, 1, 1], [], []>} : vector<8x32xf32>, vector<32x96xf32>, vector<8x96xf32> -> vector<8x96xf32>
    %247 = vector.broadcast %4 : vector<1x96xf32> to vector<8x96xf32>
    %248 = arith.addf %246, %247 : vector<8x96xf32>
    %249 = vector.extract_strided_slice %245 {offsets = [0, 0], sizes = [8, 32], strides = [1, 1]} : vector<8x128xf32> to vector<8x32xf32>
    %250 = vector.extract_strided_slice %245 {offsets = [0, 32], sizes = [8, 32], strides = [1, 1]} : vector<8x128xf32> to vector<8x32xf32>
    %251 = vector.extract_strided_slice %245 {offsets = [0, 64], sizes = [8, 32], strides = [1, 1]} : vector<8x128xf32> to vector<8x32xf32>
    %252 = vector.extract_strided_slice %248 {offsets = [0, 0], sizes = [8, 32], strides = [1, 1]} : vector<8x96xf32> to vector<8x32xf32>
    %253 = vector.extract_strided_slice %248 {offsets = [0, 32], sizes = [8, 32], strides = [1, 1]} : vector<8x96xf32> to vector<8x32xf32>
    %254 = vector.extract_strided_slice %248 {offsets = [0, 64], sizes = [8, 32], strides = [1, 1]} : vector<8x96xf32> to vector<8x32xf32>
    %255 = arith.addf %249, %252 : vector<8x32xf32>
    %256 = arith.negf %255 : vector<8x32xf32>
    %257 = math.exp %256 : vector<8x32xf32>
    %cst_72 = arith.constant 1.000000e+00 : f32
    %258 = vector.broadcast %cst_72 : f32 to vector<8x32xf32>
    %259 = arith.addf %258, %257 : vector<8x32xf32>
    %260 = arith.divf %258, %259 : vector<8x32xf32>
    %261 = arith.addf %250, %253 : vector<8x32xf32>
    %262 = arith.negf %261 : vector<8x32xf32>
    %263 = math.exp %262 : vector<8x32xf32>
    %cst_73 = arith.constant 1.000000e+00 : f32
    %264 = vector.broadcast %cst_73 : f32 to vector<8x32xf32>
    %265 = arith.addf %264, %263 : vector<8x32xf32>
    %266 = arith.divf %264, %265 : vector<8x32xf32>
    %267 = arith.mulf %260, %254 : vector<8x32xf32>
    %268 = arith.addf %251, %267 : vector<8x32xf32>
    %269 = math.tanh %268 : vector<8x32xf32>
    %cst_74 = arith.constant 1.000000e+00 : f32
    %270 = vector.broadcast %cst_74 : f32 to vector<8x32xf32>
    %271 = arith.subf %270, %266 : vector<8x32xf32>
    %272 = arith.mulf %271, %269 : vector<8x32xf32>
    %273 = arith.mulf %266, %240 : vector<8x32xf32>
    %274 = arith.addf %272, %273 : vector<8x32xf32>
    %c7_75 = arith.constant 7 : index
    %c0_76 = arith.constant 0 : index
    %c0_77 = arith.constant 0 : index
    %275 = vector.load %arg4[%c7_75, %c0_76, %c0_77] : memref<8x8x32xf32, #tpu.memory_space<vmem>>, vector<1x8x32xf32>
    %276 = vector.shape_cast %275 : vector<1x8x32xf32> to vector<8x32xf32>
    %277 = vector.shape_cast %274 : vector<8x32xf32> to vector<1x8x32xf32>
    tpu.vector_store %arg4[%c7_75, %c0_76, %c0_77], %277 {strides = array<i32>} : memref<8x8x32xf32, #tpu.memory_space<vmem>>, vector<1x8x32xf32>,
    %c0_78 = arith.constant 0 : index
    %c0_79 = arith.constant 0 : index
    %278 = vector.load %arg5[%c0_78, %c0_79] : memref<8x32xf32, #tpu.memory_space<vmem>>, vector<8x32xf32>
    tpu.vector_store %arg5[%c0_78, %c0_79], %274 {strides = array<i32>} : memref<8x32xf32, #tpu.memory_space<vmem>>, vector<8x32xf32>,
    return
  }
  func.func @transform_0(%arg0: i32) -> (i32, i32, i32) {
    %c0_i32 = arith.constant 0 : i32
    %c0_i32_0 = arith.constant 0 : i32
    %c0_i32_1 = arith.constant 0 : i32
    return %arg0, %c0_i32, %c0_i32_0 : i32, i32, i32
  }
  func.func @transform_1(%arg0: i32) -> (i32, i32) {
    %c0_i32 = arith.constant 0 : i32
    %c0_i32_0 = arith.constant 0 : i32
    %c0_i32_1 = arith.constant 0 : i32
    return %c0_i32, %c0_i32_0 : i32, i32
  }
  func.func @transform_2(%arg0: i32) -> (i32, i32) {
    %c0_i32 = arith.constant 0 : i32
    %c0_i32_0 = arith.constant 0 : i32
    %c0_i32_1 = arith.constant 0 : i32
    return %c0_i32, %c0_i32_0 : i32, i32
  }
  func.func @transform_3(%arg0: i32) -> (i32, i32, i32) {
    %c0_i32 = arith.constant 0 : i32
    %c0_i32_0 = arith.constant 0 : i32
    %c0_i32_1 = arith.constant 0 : i32
    return %arg0, %c0_i32, %c0_i32_0 : i32, i32, i32
  }
}

module attributes {stable_mosaic.version = 11 : i64} {
  func.func @_out_proj_kernel(%arg0: i32, %arg1: memref<16x36xf32, #tpu.memory_space<vmem>>, %arg2: memref<36x32xf32, #tpu.memory_space<vmem>>, %arg3: memref<32x32xf32, #tpu.memory_space<vmem>>, %arg4: memref<32x32xf32, #tpu.memory_space<vmem>>, %arg5: memref<9x32xf32, #tpu.memory_space<vmem>>, %arg6: memref<32x128xf32, #tpu.memory_space<vmem>>, %arg7: memref<2x128xf32, #tpu.memory_space<vmem>>, %arg8: memref<16x128xf32, #tpu.memory_space<vmem>>) attributes {dimension_semantics = [#tpu.dimension_semantics<parallel>], iteration_bounds = array<i64: 1>, scalar_prefetch = 0 : i64, scratch_operands = 0 : i64, tpu.core_type = #tpu.core_type<tc>, window_params = [{transform_indices = @transform_0, window_bounds = array<i64: 16, 36>}, {pipeline_mode = #tpu.pipeline_mode<synchronous>, transform_indices = @transform_1, window_bounds = array<i64: 36, 32>}, {pipeline_mode = #tpu.pipeline_mode<synchronous>, transform_indices = @transform_2, window_bounds = array<i64: 32, 32>}, {pipeline_mode = #tpu.pipeline_mode<synchronous>, transform_indices = @transform_3, window_bounds = array<i64: 32, 32>}, {pipeline_mode = #tpu.pipeline_mode<synchronous>, transform_indices = @transform_4, window_bounds = array<i64: 9, 32>}, {pipeline_mode = #tpu.pipeline_mode<synchronous>, transform_indices = @transform_5, window_bounds = array<i64: 32, 128>}, {pipeline_mode = #tpu.pipeline_mode<synchronous>, transform_indices = @transform_6, window_bounds = array<i64: 2, 128>}, {transform_indices = @transform_7, window_bounds = array<i64: 16, 128>}]} {
    %c0 = arith.constant 0 : index
    %c0_0 = arith.constant 0 : index
    %0 = vector.load %arg1[%c0, %c0_0] : memref<16x36xf32, #tpu.memory_space<vmem>>, vector<16x36xf32>
    %c0_1 = arith.constant 0 : index
    %c0_2 = arith.constant 0 : index
    %1 = vector.load %arg5[%c0_1, %c0_2] : memref<9x32xf32, #tpu.memory_space<vmem>>, vector<1x32xf32>
    %c1 = arith.constant 1 : index
    %c0_3 = arith.constant 0 : index
    %2 = vector.load %arg5[%c1, %c0_3] : memref<9x32xf32, #tpu.memory_space<vmem>>, vector<1x32xf32>
    %c2 = arith.constant 2 : index
    %c0_4 = arith.constant 0 : index
    %3 = vector.load %arg5[%c2, %c0_4] : memref<9x32xf32, #tpu.memory_space<vmem>>, vector<1x32xf32>
    %c0_5 = arith.constant 0 : index
    %c0_6 = arith.constant 0 : index
    %4 = vector.load %arg2[%c0_5, %c0_6] : memref<36x32xf32, #tpu.memory_space<vmem>>, vector<36x32xf32>
    %5 = arith.truncf %0 : vector<16x36xf32> to vector<16x36xbf16>
    %6 = arith.truncf %4 : vector<36x32xf32> to vector<36x32xbf16>
    %cst = arith.constant dense<0.000000e+00> : vector<16x32xf32>
    %7 = tpu.matmul %5, %6, %cst {dimension_numbers = #tpu.dot_dimension_numbers<[1], [0], [0], [1], [0, 0, 1, 1], [], []>} : vector<16x36xbf16>, vector<36x32xbf16>, vector<16x32xf32> -> vector<16x32xf32>
    %8 = vector.broadcast %1 : vector<1x32xf32> to vector<16x32xf32>
    %9 = arith.addf %7, %8 : vector<16x32xf32>
    %cst_7 = arith.constant dense<0.000000e+00> : vector<16xf32>
    %10 = vector.multi_reduction <add>, %9, %cst_7 [1] : vector<16x32xf32> to vector<16xf32>
    %11 = vector.shape_cast %10 : vector<16xf32> to vector<16x1xf32>
    %cst_8 = arith.constant 3.200000e+01 : f32
    %12 = vector.broadcast %cst_8 : f32 to vector<16x1xf32>
    %13 = arith.divf %11, %12 : vector<16x1xf32>
    %14 = vector.broadcast %13 : vector<16x1xf32> to vector<16x32xf32>
    %15 = arith.subf %9, %14 : vector<16x32xf32>
    %16 = arith.mulf %15, %15 : vector<16x32xf32>
    %cst_9 = arith.constant dense<0.000000e+00> : vector<16xf32>
    %17 = vector.multi_reduction <add>, %16, %cst_9 [1] : vector<16x32xf32> to vector<16xf32>
    %18 = vector.shape_cast %17 : vector<16xf32> to vector<16x1xf32>
    %cst_10 = arith.constant 3.200000e+01 : f32
    %19 = vector.broadcast %cst_10 : f32 to vector<16x1xf32>
    %20 = arith.divf %18, %19 : vector<16x1xf32>
    %cst_11 = arith.constant 9.99999974E-6 : f32
    %21 = vector.broadcast %cst_11 : f32 to vector<16x1xf32>
    %22 = arith.addf %20, %21 : vector<16x1xf32>
    %23 = math.rsqrt %22 : vector<16x1xf32>
    %24 = vector.broadcast %23 : vector<16x1xf32> to vector<16x32xf32>
    %25 = arith.mulf %15, %24 : vector<16x32xf32>
    %26 = vector.broadcast %2 : vector<1x32xf32> to vector<16x32xf32>
    %27 = arith.mulf %25, %26 : vector<16x32xf32>
    %28 = vector.broadcast %3 : vector<1x32xf32> to vector<16x32xf32>
    %29 = arith.addf %27, %28 : vector<16x32xf32>
    %cst_12 = arith.constant 0.000000e+00 : f32
    %30 = vector.broadcast %cst_12 : f32 to vector<16x32xf32>
    %31 = arith.cmpf oge, %29, %30 : vector<16x32xf32>
    %cst_13 = arith.constant 0.00999999977 : f32
    %32 = vector.broadcast %cst_13 : f32 to vector<16x32xf32>
    %33 = arith.mulf %32, %29 : vector<16x32xf32>
    %34 = arith.select %31, %29, %33 : vector<16x32xi1>, vector<16x32xf32>
    %c3 = arith.constant 3 : index
    %c0_14 = arith.constant 0 : index
    %35 = vector.load %arg5[%c3, %c0_14] : memref<9x32xf32, #tpu.memory_space<vmem>>, vector<1x32xf32>
    %c4 = arith.constant 4 : index
    %c0_15 = arith.constant 0 : index
    %36 = vector.load %arg5[%c4, %c0_15] : memref<9x32xf32, #tpu.memory_space<vmem>>, vector<1x32xf32>
    %c5 = arith.constant 5 : index
    %c0_16 = arith.constant 0 : index
    %37 = vector.load %arg5[%c5, %c0_16] : memref<9x32xf32, #tpu.memory_space<vmem>>, vector<1x32xf32>
    %c0_17 = arith.constant 0 : index
    %c0_18 = arith.constant 0 : index
    %38 = vector.load %arg3[%c0_17, %c0_18] : memref<32x32xf32, #tpu.memory_space<vmem>>, vector<32x32xf32>
    %39 = arith.truncf %34 : vector<16x32xf32> to vector<16x32xbf16>
    %40 = arith.truncf %38 : vector<32x32xf32> to vector<32x32xbf16>
    %cst_19 = arith.constant dense<0.000000e+00> : vector<16x32xf32>
    %41 = tpu.matmul %39, %40, %cst_19 {dimension_numbers = #tpu.dot_dimension_numbers<[1], [0], [0], [1], [0, 0, 1, 1], [], []>} : vector<16x32xbf16>, vector<32x32xbf16>, vector<16x32xf32> -> vector<16x32xf32>
    %42 = vector.broadcast %35 : vector<1x32xf32> to vector<16x32xf32>
    %43 = arith.addf %41, %42 : vector<16x32xf32>
    %cst_20 = arith.constant dense<0.000000e+00> : vector<16xf32>
    %44 = vector.multi_reduction <add>, %43, %cst_20 [1] : vector<16x32xf32> to vector<16xf32>
    %45 = vector.shape_cast %44 : vector<16xf32> to vector<16x1xf32>
    %cst_21 = arith.constant 3.200000e+01 : f32
    %46 = vector.broadcast %cst_21 : f32 to vector<16x1xf32>
    %47 = arith.divf %45, %46 : vector<16x1xf32>
    %48 = vector.broadcast %47 : vector<16x1xf32> to vector<16x32xf32>
    %49 = arith.subf %43, %48 : vector<16x32xf32>
    %50 = arith.mulf %49, %49 : vector<16x32xf32>
    %cst_22 = arith.constant dense<0.000000e+00> : vector<16xf32>
    %51 = vector.multi_reduction <add>, %50, %cst_22 [1] : vector<16x32xf32> to vector<16xf32>
    %52 = vector.shape_cast %51 : vector<16xf32> to vector<16x1xf32>
    %cst_23 = arith.constant 3.200000e+01 : f32
    %53 = vector.broadcast %cst_23 : f32 to vector<16x1xf32>
    %54 = arith.divf %52, %53 : vector<16x1xf32>
    %cst_24 = arith.constant 9.99999974E-6 : f32
    %55 = vector.broadcast %cst_24 : f32 to vector<16x1xf32>
    %56 = arith.addf %54, %55 : vector<16x1xf32>
    %57 = math.rsqrt %56 : vector<16x1xf32>
    %58 = vector.broadcast %57 : vector<16x1xf32> to vector<16x32xf32>
    %59 = arith.mulf %49, %58 : vector<16x32xf32>
    %60 = vector.broadcast %36 : vector<1x32xf32> to vector<16x32xf32>
    %61 = arith.mulf %59, %60 : vector<16x32xf32>
    %62 = vector.broadcast %37 : vector<1x32xf32> to vector<16x32xf32>
    %63 = arith.addf %61, %62 : vector<16x32xf32>
    %cst_25 = arith.constant 0.000000e+00 : f32
    %64 = vector.broadcast %cst_25 : f32 to vector<16x32xf32>
    %65 = arith.cmpf oge, %63, %64 : vector<16x32xf32>
    %cst_26 = arith.constant 0.00999999977 : f32
    %66 = vector.broadcast %cst_26 : f32 to vector<16x32xf32>
    %67 = arith.mulf %66, %63 : vector<16x32xf32>
    %68 = arith.select %65, %63, %67 : vector<16x32xi1>, vector<16x32xf32>
    %c6 = arith.constant 6 : index
    %c0_27 = arith.constant 0 : index
    %69 = vector.load %arg5[%c6, %c0_27] : memref<9x32xf32, #tpu.memory_space<vmem>>, vector<1x32xf32>
    %c7 = arith.constant 7 : index
    %c0_28 = arith.constant 0 : index
    %70 = vector.load %arg5[%c7, %c0_28] : memref<9x32xf32, #tpu.memory_space<vmem>>, vector<1x32xf32>
    %c8 = arith.constant 8 : index
    %c0_29 = arith.constant 0 : index
    %71 = vector.load %arg5[%c8, %c0_29] : memref<9x32xf32, #tpu.memory_space<vmem>>, vector<1x32xf32>
    %c0_30 = arith.constant 0 : index
    %c0_31 = arith.constant 0 : index
    %72 = vector.load %arg4[%c0_30, %c0_31] : memref<32x32xf32, #tpu.memory_space<vmem>>, vector<32x32xf32>
    %73 = arith.truncf %68 : vector<16x32xf32> to vector<16x32xbf16>
    %74 = arith.truncf %72 : vector<32x32xf32> to vector<32x32xbf16>
    %cst_32 = arith.constant dense<0.000000e+00> : vector<16x32xf32>
    %75 = tpu.matmul %73, %74, %cst_32 {dimension_numbers = #tpu.dot_dimension_numbers<[1], [0], [0], [1], [0, 0, 1, 1], [], []>} : vector<16x32xbf16>, vector<32x32xbf16>, vector<16x32xf32> -> vector<16x32xf32>
    %76 = vector.broadcast %69 : vector<1x32xf32> to vector<16x32xf32>
    %77 = arith.addf %75, %76 : vector<16x32xf32>
    %cst_33 = arith.constant dense<0.000000e+00> : vector<16xf32>
    %78 = vector.multi_reduction <add>, %77, %cst_33 [1] : vector<16x32xf32> to vector<16xf32>
    %79 = vector.shape_cast %78 : vector<16xf32> to vector<16x1xf32>
    %cst_34 = arith.constant 3.200000e+01 : f32
    %80 = vector.broadcast %cst_34 : f32 to vector<16x1xf32>
    %81 = arith.divf %79, %80 : vector<16x1xf32>
    %82 = vector.broadcast %81 : vector<16x1xf32> to vector<16x32xf32>
    %83 = arith.subf %77, %82 : vector<16x32xf32>
    %84 = arith.mulf %83, %83 : vector<16x32xf32>
    %cst_35 = arith.constant dense<0.000000e+00> : vector<16xf32>
    %85 = vector.multi_reduction <add>, %84, %cst_35 [1] : vector<16x32xf32> to vector<16xf32>
    %86 = vector.shape_cast %85 : vector<16xf32> to vector<16x1xf32>
    %cst_36 = arith.constant 3.200000e+01 : f32
    %87 = vector.broadcast %cst_36 : f32 to vector<16x1xf32>
    %88 = arith.divf %86, %87 : vector<16x1xf32>
    %cst_37 = arith.constant 9.99999974E-6 : f32
    %89 = vector.broadcast %cst_37 : f32 to vector<16x1xf32>
    %90 = arith.addf %88, %89 : vector<16x1xf32>
    %91 = math.rsqrt %90 : vector<16x1xf32>
    %92 = vector.broadcast %91 : vector<16x1xf32> to vector<16x32xf32>
    %93 = arith.mulf %83, %92 : vector<16x32xf32>
    %94 = vector.broadcast %70 : vector<1x32xf32> to vector<16x32xf32>
    %95 = arith.mulf %93, %94 : vector<16x32xf32>
    %96 = vector.broadcast %71 : vector<1x32xf32> to vector<16x32xf32>
    %97 = arith.addf %95, %96 : vector<16x32xf32>
    %cst_38 = arith.constant 0.000000e+00 : f32
    %98 = vector.broadcast %cst_38 : f32 to vector<16x32xf32>
    %99 = arith.cmpf oge, %97, %98 : vector<16x32xf32>
    %cst_39 = arith.constant 0.00999999977 : f32
    %100 = vector.broadcast %cst_39 : f32 to vector<16x32xf32>
    %101 = arith.mulf %100, %97 : vector<16x32xf32>
    %102 = arith.select %99, %97, %101 : vector<16x32xi1>, vector<16x32xf32>
    %c0_40 = arith.constant 0 : index
    %c0_41 = arith.constant 0 : index
    %103 = vector.load %arg6[%c0_40, %c0_41] : memref<32x128xf32, #tpu.memory_space<vmem>>, vector<32x128xf32>
    %104 = arith.truncf %102 : vector<16x32xf32> to vector<16x32xbf16>
    %105 = arith.truncf %103 : vector<32x128xf32> to vector<32x128xbf16>
    %cst_42 = arith.constant dense<0.000000e+00> : vector<16x128xf32>
    %106 = tpu.matmul %104, %105, %cst_42 {dimension_numbers = #tpu.dot_dimension_numbers<[1], [0], [0], [1], [0, 0, 1, 1], [], []>} : vector<16x32xbf16>, vector<32x128xbf16>, vector<16x128xf32> -> vector<16x128xf32>
    %c0_43 = arith.constant 0 : index
    %c0_44 = arith.constant 0 : index
    %107 = vector.load %arg7[%c0_43, %c0_44] : memref<2x128xf32, #tpu.memory_space<vmem>>, vector<1x128xf32>
    %108 = vector.broadcast %107 : vector<1x128xf32> to vector<16x128xf32>
    %109 = arith.addf %106, %108 : vector<16x128xf32>
    %c1_45 = arith.constant 1 : index
    %c0_46 = arith.constant 0 : index
    %110 = vector.load %arg7[%c1_45, %c0_46] : memref<2x128xf32, #tpu.memory_space<vmem>>, vector<1x128xf32>
    %111 = vector.broadcast %110 : vector<1x128xf32> to vector<16x128xf32>
    %112 = arith.addf %109, %111 : vector<16x128xf32>
    %cst_47 = arith.constant 0.000000e+00 : f32
    %113 = vector.broadcast %cst_47 : f32 to vector<16x128xf32>
    %114 = arith.subf %113, %112 : vector<16x128xf32>
    %cst_48 = arith.constant 0.000000e+00 : f32
    %115 = vector.broadcast %cst_48 : f32 to vector<16x128xf32>
    %116 = arith.maximumf %114, %115 : vector<16x128xf32>
    %117 = math.absf %112 : vector<16x128xf32>
    %cst_49 = arith.constant 0.000000e+00 : f32
    %118 = vector.broadcast %cst_49 : f32 to vector<16x128xf32>
    %119 = arith.subf %118, %117 : vector<16x128xf32>
    %120 = math.exp %119 : vector<16x128xf32>
    %cst_50 = arith.constant 1.000000e+00 : f32
    %121 = vector.broadcast %cst_50 : f32 to vector<16x128xf32>
    %122 = arith.addf %121, %120 : vector<16x128xf32>
    %123 = math.log %122 : vector<16x128xf32>
    %124 = arith.addf %116, %123 : vector<16x128xf32>
    %cst_51 = arith.constant 0.000000e+00 : f32
    %125 = vector.broadcast %cst_51 : f32 to vector<16x128xf32>
    %126 = arith.subf %125, %124 : vector<16x128xf32>
    %cst_52 = arith.constant 2.30258512 : f32
    %127 = vector.broadcast %cst_52 : f32 to vector<16x128xf32>
    %128 = arith.mulf %127, %126 : vector<16x128xf32>
    %129 = math.exp %128 : vector<16x128xf32>
    %cst_53 = arith.constant 2.000000e+00 : f32
    %130 = vector.broadcast %cst_53 : f32 to vector<16x128xf32>
    %131 = arith.mulf %130, %129 : vector<16x128xf32>
    %cst_54 = arith.constant 1.000000e-07 : f32
    %132 = vector.broadcast %cst_54 : f32 to vector<16x128xf32>
    %133 = arith.addf %131, %132 : vector<16x128xf32>
    %c0_55 = arith.constant 0 : index
    %c0_56 = arith.constant 0 : index
    %134 = vector.load %arg8[%c0_55, %c0_56] : memref<16x128xf32, #tpu.memory_space<vmem>>, vector<16x128xf32>
    tpu.vector_store %arg8[%c0_55, %c0_56], %133 {strides = array<i32>} : memref<16x128xf32, #tpu.memory_space<vmem>>, vector<16x128xf32>,
    return
  }
  func.func @transform_0(%arg0: i32) -> (i32, i32) {
    %c0_i32 = arith.constant 0 : i32
    %c0_i32_0 = arith.constant 0 : i32
    return %arg0, %c0_i32 : i32, i32
  }
  func.func @transform_1(%arg0: i32) -> (i32, i32) {
    %c0_i32 = arith.constant 0 : i32
    %c0_i32_0 = arith.constant 0 : i32
    %c0_i32_1 = arith.constant 0 : i32
    return %c0_i32, %c0_i32_0 : i32, i32
  }
  func.func @transform_2(%arg0: i32) -> (i32, i32) {
    %c0_i32 = arith.constant 0 : i32
    %c0_i32_0 = arith.constant 0 : i32
    %c0_i32_1 = arith.constant 0 : i32
    return %c0_i32, %c0_i32_0 : i32, i32
  }
  func.func @transform_3(%arg0: i32) -> (i32, i32) {
    %c0_i32 = arith.constant 0 : i32
    %c0_i32_0 = arith.constant 0 : i32
    %c0_i32_1 = arith.constant 0 : i32
    return %c0_i32, %c0_i32_0 : i32, i32
  }
  func.func @transform_4(%arg0: i32) -> (i32, i32) {
    %c0_i32 = arith.constant 0 : i32
    %c0_i32_0 = arith.constant 0 : i32
    %c0_i32_1 = arith.constant 0 : i32
    return %c0_i32, %c0_i32_0 : i32, i32
  }
  func.func @transform_5(%arg0: i32) -> (i32, i32) {
    %c0_i32 = arith.constant 0 : i32
    %c0_i32_0 = arith.constant 0 : i32
    %c0_i32_1 = arith.constant 0 : i32
    return %c0_i32, %c0_i32_0 : i32, i32
  }
  func.func @transform_6(%arg0: i32) -> (i32, i32) {
    %c0_i32 = arith.constant 0 : i32
    %c0_i32_0 = arith.constant 0 : i32
    %c0_i32_1 = arith.constant 0 : i32
    return %c0_i32, %c0_i32_0 : i32, i32
  }
  func.func @transform_7(%arg0: i32) -> (i32, i32) {
    %c0_i32 = arith.constant 0 : i32
    %c0_i32_0 = arith.constant 0 : i32
    return %arg0, %c0_i32 : i32, i32
  }
}

module attributes {stable_mosaic.version = 11 : i64} {
  func.func @_harm_kernel(%arg0: i32, %arg1: memref<2x128xf32, #tpu.memory_space<vmem>>, %arg2: memref<15x2x8xf32, #tpu.memory_space<vmem>>, %arg3: memref<8x128xf32, #tpu.memory_space<vmem>>, %arg4: memref<2x128xf32, #tpu.memory_space<vmem>>) attributes {dimension_semantics = [#tpu.dimension_semantics<parallel>], iteration_bounds = array<i64: 1>, scalar_prefetch = 0 : i64, scratch_operands = 0 : i64, tpu.core_type = #tpu.core_type<tc>, window_params = [{transform_indices = @transform_0, window_bounds = array<i64: 2, 128>}, {transform_indices = @transform_1, window_bounds = array<i64: 15, 2, 8>}, {pipeline_mode = #tpu.pipeline_mode<synchronous>, transform_indices = @transform_2, window_bounds = array<i64: 8, 128>}, {transform_indices = @transform_3, window_bounds = array<i64: 2, 128>}]} {
    %c0 = arith.constant 0 : index
    %c0_0 = arith.constant 0 : index
    %0 = vector.load %arg1[%c0, %c0_0] : memref<2x128xf32, #tpu.memory_space<vmem>>, vector<2x128xf32>
    %c0_1 = arith.constant 0 : index
    %c0_2 = arith.constant 0 : index
    %1 = vector.load %arg3[%c0_1, %c0_2] : memref<8x128xf32, #tpu.memory_space<vmem>>, vector<8x128xf32>
    %2 = math.cos %0 : vector<2x128xf32>
    %cst = arith.constant 2.000000e+00 : f32
    %3 = vector.broadcast %cst : f32 to vector<2x128xf32>
    %4 = arith.mulf %3, %2 : vector<2x128xf32>
    %cst_3 = arith.constant 0.000000e+00 : f32
    %5 = vector.broadcast %cst_3 : f32 to vector<2x128xf32>
    %6 = math.sin %0 : vector<2x128xf32>
    %c0_4 = arith.constant 0 : index
    %c0_5 = arith.constant 0 : index
    %c0_6 = arith.constant 0 : index
    %7 = vector.load %arg2[%c0_4, %c0_5, %c0_6] : memref<15x2x8xf32, #tpu.memory_space<vmem>>, vector<1x2x8xf32>
    %8 = vector.shape_cast %7 : vector<1x2x8xf32> to vector<2x8xf32>
    %cst_7 = arith.constant dense<0.000000e+00> : vector<2x128xf32>
    %9 = tpu.matmul %8, %1, %cst_7 {dimension_numbers = #tpu.dot_dimension_numbers<[1], [0], [0], [1], [0, 0, 1, 1], [], []>} : vector<2x8xf32>, vector<8x128xf32>, vector<2x128xf32> -> vector<2x128xf32>
    %10 = arith.mulf %6, %9 : vector<2x128xf32>
    %11 = arith.mulf %4, %6 : vector<2x128xf32>
    %12 = arith.subf %11, %5 : vector<2x128xf32>
    %c1 = arith.constant 1 : index
    %c0_8 = arith.constant 0 : index
    %c0_9 = arith.constant 0 : index
    %13 = vector.load %arg2[%c1, %c0_8, %c0_9] : memref<15x2x8xf32, #tpu.memory_space<vmem>>, vector<1x2x8xf32>
    %14 = vector.shape_cast %13 : vector<1x2x8xf32> to vector<2x8xf32>
    %cst_10 = arith.constant dense<0.000000e+00> : vector<2x128xf32>
    %15 = tpu.matmul %14, %1, %cst_10 {dimension_numbers = #tpu.dot_dimension_numbers<[1], [0], [0], [1], [0, 0, 1, 1], [], []>} : vector<2x8xf32>, vector<8x128xf32>, vector<2x128xf32> -> vector<2x128xf32>
    %16 = arith.mulf %12, %15 : vector<2x128xf32>
    %17 = arith.addf %10, %16 : vector<2x128xf32>
    %18 = arith.mulf %4, %12 : vector<2x128xf32>
    %19 = arith.subf %18, %6 : vector<2x128xf32>
    %c2 = arith.constant 2 : index
    %c0_11 = arith.constant 0 : index
    %c0_12 = arith.constant 0 : index
    %20 = vector.load %arg2[%c2, %c0_11, %c0_12] : memref<15x2x8xf32, #tpu.memory_space<vmem>>, vector<1x2x8xf32>
    %21 = vector.shape_cast %20 : vector<1x2x8xf32> to vector<2x8xf32>
    %cst_13 = arith.constant dense<0.000000e+00> : vector<2x128xf32>
    %22 = tpu.matmul %21, %1, %cst_13 {dimension_numbers = #tpu.dot_dimension_numbers<[1], [0], [0], [1], [0, 0, 1, 1], [], []>} : vector<2x8xf32>, vector<8x128xf32>, vector<2x128xf32> -> vector<2x128xf32>
    %23 = arith.mulf %19, %22 : vector<2x128xf32>
    %24 = arith.addf %17, %23 : vector<2x128xf32>
    %25 = arith.mulf %4, %19 : vector<2x128xf32>
    %26 = arith.subf %25, %12 : vector<2x128xf32>
    %c3 = arith.constant 3 : index
    %c0_14 = arith.constant 0 : index
    %c0_15 = arith.constant 0 : index
    %27 = vector.load %arg2[%c3, %c0_14, %c0_15] : memref<15x2x8xf32, #tpu.memory_space<vmem>>, vector<1x2x8xf32>
    %28 = vector.shape_cast %27 : vector<1x2x8xf32> to vector<2x8xf32>
    %cst_16 = arith.constant dense<0.000000e+00> : vector<2x128xf32>
    %29 = tpu.matmul %28, %1, %cst_16 {dimension_numbers = #tpu.dot_dimension_numbers<[1], [0], [0], [1], [0, 0, 1, 1], [], []>} : vector<2x8xf32>, vector<8x128xf32>, vector<2x128xf32> -> vector<2x128xf32>
    %30 = arith.mulf %26, %29 : vector<2x128xf32>
    %31 = arith.addf %24, %30 : vector<2x128xf32>
    %32 = arith.mulf %4, %26 : vector<2x128xf32>
    %33 = arith.subf %32, %19 : vector<2x128xf32>
    %c4 = arith.constant 4 : index
    %c0_17 = arith.constant 0 : index
    %c0_18 = arith.constant 0 : index
    %34 = vector.load %arg2[%c4, %c0_17, %c0_18] : memref<15x2x8xf32, #tpu.memory_space<vmem>>, vector<1x2x8xf32>
    %35 = vector.shape_cast %34 : vector<1x2x8xf32> to vector<2x8xf32>
    %cst_19 = arith.constant dense<0.000000e+00> : vector<2x128xf32>
    %36 = tpu.matmul %35, %1, %cst_19 {dimension_numbers = #tpu.dot_dimension_numbers<[1], [0], [0], [1], [0, 0, 1, 1], [], []>} : vector<2x8xf32>, vector<8x128xf32>, vector<2x128xf32> -> vector<2x128xf32>
    %37 = arith.mulf %33, %36 : vector<2x128xf32>
    %38 = arith.addf %31, %37 : vector<2x128xf32>
    %39 = arith.mulf %4, %33 : vector<2x128xf32>
    %40 = arith.subf %39, %26 : vector<2x128xf32>
    %c5 = arith.constant 5 : index
    %c0_20 = arith.constant 0 : index
    %c0_21 = arith.constant 0 : index
    %41 = vector.load %arg2[%c5, %c0_20, %c0_21] : memref<15x2x8xf32, #tpu.memory_space<vmem>>, vector<1x2x8xf32>
    %42 = vector.shape_cast %41 : vector<1x2x8xf32> to vector<2x8xf32>
    %cst_22 = arith.constant dense<0.000000e+00> : vector<2x128xf32>
    %43 = tpu.matmul %42, %1, %cst_22 {dimension_numbers = #tpu.dot_dimension_numbers<[1], [0], [0], [1], [0, 0, 1, 1], [], []>} : vector<2x8xf32>, vector<8x128xf32>, vector<2x128xf32> -> vector<2x128xf32>
    %44 = arith.mulf %40, %43 : vector<2x128xf32>
    %45 = arith.addf %38, %44 : vector<2x128xf32>
    %46 = arith.mulf %4, %40 : vector<2x128xf32>
    %47 = arith.subf %46, %33 : vector<2x128xf32>
    %c6 = arith.constant 6 : index
    %c0_23 = arith.constant 0 : index
    %c0_24 = arith.constant 0 : index
    %48 = vector.load %arg2[%c6, %c0_23, %c0_24] : memref<15x2x8xf32, #tpu.memory_space<vmem>>, vector<1x2x8xf32>
    %49 = vector.shape_cast %48 : vector<1x2x8xf32> to vector<2x8xf32>
    %cst_25 = arith.constant dense<0.000000e+00> : vector<2x128xf32>
    %50 = tpu.matmul %49, %1, %cst_25 {dimension_numbers = #tpu.dot_dimension_numbers<[1], [0], [0], [1], [0, 0, 1, 1], [], []>} : vector<2x8xf32>, vector<8x128xf32>, vector<2x128xf32> -> vector<2x128xf32>
    %51 = arith.mulf %47, %50 : vector<2x128xf32>
    %52 = arith.addf %45, %51 : vector<2x128xf32>
    %53 = arith.mulf %4, %47 : vector<2x128xf32>
    %54 = arith.subf %53, %40 : vector<2x128xf32>
    %c7 = arith.constant 7 : index
    %c0_26 = arith.constant 0 : index
    %c0_27 = arith.constant 0 : index
    %55 = vector.load %arg2[%c7, %c0_26, %c0_27] : memref<15x2x8xf32, #tpu.memory_space<vmem>>, vector<1x2x8xf32>
    %56 = vector.shape_cast %55 : vector<1x2x8xf32> to vector<2x8xf32>
    %cst_28 = arith.constant dense<0.000000e+00> : vector<2x128xf32>
    %57 = tpu.matmul %56, %1, %cst_28 {dimension_numbers = #tpu.dot_dimension_numbers<[1], [0], [0], [1], [0, 0, 1, 1], [], []>} : vector<2x8xf32>, vector<8x128xf32>, vector<2x128xf32> -> vector<2x128xf32>
    %58 = arith.mulf %54, %57 : vector<2x128xf32>
    %59 = arith.addf %52, %58 : vector<2x128xf32>
    %60 = arith.mulf %4, %54 : vector<2x128xf32>
    %61 = arith.subf %60, %47 : vector<2x128xf32>
    %c8 = arith.constant 8 : index
    %c0_29 = arith.constant 0 : index
    %c0_30 = arith.constant 0 : index
    %62 = vector.load %arg2[%c8, %c0_29, %c0_30] : memref<15x2x8xf32, #tpu.memory_space<vmem>>, vector<1x2x8xf32>
    %63 = vector.shape_cast %62 : vector<1x2x8xf32> to vector<2x8xf32>
    %cst_31 = arith.constant dense<0.000000e+00> : vector<2x128xf32>
    %64 = tpu.matmul %63, %1, %cst_31 {dimension_numbers = #tpu.dot_dimension_numbers<[1], [0], [0], [1], [0, 0, 1, 1], [], []>} : vector<2x8xf32>, vector<8x128xf32>, vector<2x128xf32> -> vector<2x128xf32>
    %65 = arith.mulf %61, %64 : vector<2x128xf32>
    %66 = arith.addf %59, %65 : vector<2x128xf32>
    %67 = arith.mulf %4, %61 : vector<2x128xf32>
    %68 = arith.subf %67, %54 : vector<2x128xf32>
    %c9 = arith.constant 9 : index
    %c0_32 = arith.constant 0 : index
    %c0_33 = arith.constant 0 : index
    %69 = vector.load %arg2[%c9, %c0_32, %c0_33] : memref<15x2x8xf32, #tpu.memory_space<vmem>>, vector<1x2x8xf32>
    %70 = vector.shape_cast %69 : vector<1x2x8xf32> to vector<2x8xf32>
    %cst_34 = arith.constant dense<0.000000e+00> : vector<2x128xf32>
    %71 = tpu.matmul %70, %1, %cst_34 {dimension_numbers = #tpu.dot_dimension_numbers<[1], [0], [0], [1], [0, 0, 1, 1], [], []>} : vector<2x8xf32>, vector<8x128xf32>, vector<2x128xf32> -> vector<2x128xf32>
    %72 = arith.mulf %68, %71 : vector<2x128xf32>
    %73 = arith.addf %66, %72 : vector<2x128xf32>
    %74 = arith.mulf %4, %68 : vector<2x128xf32>
    %75 = arith.subf %74, %61 : vector<2x128xf32>
    %c10 = arith.constant 10 : index
    %c0_35 = arith.constant 0 : index
    %c0_36 = arith.constant 0 : index
    %76 = vector.load %arg2[%c10, %c0_35, %c0_36] : memref<15x2x8xf32, #tpu.memory_space<vmem>>, vector<1x2x8xf32>
    %77 = vector.shape_cast %76 : vector<1x2x8xf32> to vector<2x8xf32>
    %cst_37 = arith.constant dense<0.000000e+00> : vector<2x128xf32>
    %78 = tpu.matmul %77, %1, %cst_37 {dimension_numbers = #tpu.dot_dimension_numbers<[1], [0], [0], [1], [0, 0, 1, 1], [], []>} : vector<2x8xf32>, vector<8x128xf32>, vector<2x128xf32> -> vector<2x128xf32>
    %79 = arith.mulf %75, %78 : vector<2x128xf32>
    %80 = arith.addf %73, %79 : vector<2x128xf32>
    %81 = arith.mulf %4, %75 : vector<2x128xf32>
    %82 = arith.subf %81, %68 : vector<2x128xf32>
    %c11 = arith.constant 11 : index
    %c0_38 = arith.constant 0 : index
    %c0_39 = arith.constant 0 : index
    %83 = vector.load %arg2[%c11, %c0_38, %c0_39] : memref<15x2x8xf32, #tpu.memory_space<vmem>>, vector<1x2x8xf32>
    %84 = vector.shape_cast %83 : vector<1x2x8xf32> to vector<2x8xf32>
    %cst_40 = arith.constant dense<0.000000e+00> : vector<2x128xf32>
    %85 = tpu.matmul %84, %1, %cst_40 {dimension_numbers = #tpu.dot_dimension_numbers<[1], [0], [0], [1], [0, 0, 1, 1], [], []>} : vector<2x8xf32>, vector<8x128xf32>, vector<2x128xf32> -> vector<2x128xf32>
    %86 = arith.mulf %82, %85 : vector<2x128xf32>
    %87 = arith.addf %80, %86 : vector<2x128xf32>
    %88 = arith.mulf %4, %82 : vector<2x128xf32>
    %89 = arith.subf %88, %75 : vector<2x128xf32>
    %c12 = arith.constant 12 : index
    %c0_41 = arith.constant 0 : index
    %c0_42 = arith.constant 0 : index
    %90 = vector.load %arg2[%c12, %c0_41, %c0_42] : memref<15x2x8xf32, #tpu.memory_space<vmem>>, vector<1x2x8xf32>
    %91 = vector.shape_cast %90 : vector<1x2x8xf32> to vector<2x8xf32>
    %cst_43 = arith.constant dense<0.000000e+00> : vector<2x128xf32>
    %92 = tpu.matmul %91, %1, %cst_43 {dimension_numbers = #tpu.dot_dimension_numbers<[1], [0], [0], [1], [0, 0, 1, 1], [], []>} : vector<2x8xf32>, vector<8x128xf32>, vector<2x128xf32> -> vector<2x128xf32>
    %93 = arith.mulf %89, %92 : vector<2x128xf32>
    %94 = arith.addf %87, %93 : vector<2x128xf32>
    %95 = arith.mulf %4, %89 : vector<2x128xf32>
    %96 = arith.subf %95, %82 : vector<2x128xf32>
    %c13 = arith.constant 13 : index
    %c0_44 = arith.constant 0 : index
    %c0_45 = arith.constant 0 : index
    %97 = vector.load %arg2[%c13, %c0_44, %c0_45] : memref<15x2x8xf32, #tpu.memory_space<vmem>>, vector<1x2x8xf32>
    %98 = vector.shape_cast %97 : vector<1x2x8xf32> to vector<2x8xf32>
    %cst_46 = arith.constant dense<0.000000e+00> : vector<2x128xf32>
    %99 = tpu.matmul %98, %1, %cst_46 {dimension_numbers = #tpu.dot_dimension_numbers<[1], [0], [0], [1], [0, 0, 1, 1], [], []>} : vector<2x8xf32>, vector<8x128xf32>, vector<2x128xf32> -> vector<2x128xf32>
    %100 = arith.mulf %96, %99 : vector<2x128xf32>
    %101 = arith.addf %94, %100 : vector<2x128xf32>
    %102 = arith.mulf %4, %96 : vector<2x128xf32>
    %103 = arith.subf %102, %89 : vector<2x128xf32>
    %c14 = arith.constant 14 : index
    %c0_47 = arith.constant 0 : index
    %c0_48 = arith.constant 0 : index
    %104 = vector.load %arg2[%c14, %c0_47, %c0_48] : memref<15x2x8xf32, #tpu.memory_space<vmem>>, vector<1x2x8xf32>
    %105 = vector.shape_cast %104 : vector<1x2x8xf32> to vector<2x8xf32>
    %cst_49 = arith.constant dense<0.000000e+00> : vector<2x128xf32>
    %106 = tpu.matmul %105, %1, %cst_49 {dimension_numbers = #tpu.dot_dimension_numbers<[1], [0], [0], [1], [0, 0, 1, 1], [], []>} : vector<2x8xf32>, vector<8x128xf32>, vector<2x128xf32> -> vector<2x128xf32>
    %107 = arith.mulf %103, %106 : vector<2x128xf32>
    %108 = arith.addf %101, %107 : vector<2x128xf32>
    %c0_50 = arith.constant 0 : index
    %c0_51 = arith.constant 0 : index
    %109 = vector.load %arg4[%c0_50, %c0_51] : memref<2x128xf32, #tpu.memory_space<vmem>>, vector<2x128xf32>
    tpu.vector_store %arg4[%c0_50, %c0_51], %108 {strides = array<i32>} : memref<2x128xf32, #tpu.memory_space<vmem>>, vector<2x128xf32>,
    return
  }
  func.func @transform_0(%arg0: i32) -> (i32, i32) {
    %c0_i32 = arith.constant 0 : i32
    %c0_i32_0 = arith.constant 0 : i32
    return %c0_i32, %arg0 : i32, i32
  }
  func.func @transform_1(%arg0: i32) -> (i32, i32, i32) {
    %c0_i32 = arith.constant 0 : i32
    %c0_i32_0 = arith.constant 0 : i32
    %c0_i32_1 = arith.constant 0 : i32
    return %c0_i32, %c0_i32_0, %arg0 : i32, i32, i32
  }
  func.func @transform_2(%arg0: i32) -> (i32, i32) {
    %c0_i32 = arith.constant 0 : i32
    %c0_i32_0 = arith.constant 0 : i32
    %c0_i32_1 = arith.constant 0 : i32
    return %c0_i32, %c0_i32_0 : i32, i32
  }
  func.func @transform_3(%arg0: i32) -> (i32, i32) {
    %c0_i32 = arith.constant 0 : i32
    %c0_i32_0 = arith.constant 0 : i32
    return %c0_i32, %arg0 : i32, i32
  }
}

</mosaic_0001>

<bundles_post_ra>
// kernel: ddsp_vae_forward.7
= control target key start
LH: loop header
LB: loop body
LE: loop exit
PB: predicated region body
PF: predicated region fallthrough
CT: control target
= control target key end

     0   :  { %v548_v3 = vmov 0.0   ;;  %vm549_vm0 = vmmov 0   ;;  %v23_v37 = vlaneseq  ;;  %s550_s17 = smov 32   ;;  %vm270_vm9 = vcmask 261120   ;;  %s858_s1 = inlined_call_operand.vmem [shape: f32[384,32], index: 1, kind: input, shape index: {}]   ;;  %s859_s0 = inlined_call_operand.vmem [shape: f32[16,128], index: 0, kind: input, shape index: {}]   ;;  %s860_s2 = inlined_call_operand.vmem [shape: f32[96,8], index: 2, kind: input, shape index: {}]   ;;  %s861_s4 = inlined_call_operand.vmem [shape: f32[3,32], index: 4, kind: input, shape index: {}]   ;;  %s862_s3 = inlined_call_operand.vmem [shape: f32[8,2], index: 3, kind: input, shape index: {}]   ;;  %s863_s5 = inlined_call_operand.vmem [shape: f32[16,2], index: 5, kind: output, shape index: {}]  }
   0x1   :  { %v95_v0 = vld [vmem:[%s858_s1 + $0x80] sm:$0xff]  ;;  %v96_v1 = vld [vmem:[%s858_s1 + $0x88] sm:$0xff]  ;;  %493 = vmatprep.subr.bf16.mxu1 %v548_v3  ;;  %509 = vmatprep.mubr.msk.bf16.mxu1 %vm549_vm0, %v548_v3  ;;  %v97_v10 = vld [vmem:[%s858_s1 + $0x90] sm:$0xff]  ;;  %vm273_vm10 = vcmask 523264   ;;  %vm299_vm11 = vcmask 785408   ;;  %vm351_vm12 = vcmask 64512  }
   0x2   :  { %v79_v2 = vld [vmem:[%s858_s1] sm:$0xff]  ;;  %v138_v4 = vpack.c.bf16 %v96_v1, %v95_v0  ;;  %v80_v5 = vld [vmem:[%s858_s1 + $0x8] sm:$0xff]  ;;  %v98_v11 = vld [vmem:[%s858_s1 + $0x98] sm:$0xff]  ;;  %v684_v47 = vshrl.u32 %v23_v37, 7  ;;  %vm433_vm13 = vcmask 15360  }
   0x3   :  { %v111_v6 = vld [vmem:[%s858_s1 + $0x100] sm:$0xff]  ;;  %v112_v7 = vld [vmem:[%s858_s1 + $0x108] sm:$0xff]  ;;  %v130_v8 = vpack.c.bf16 %v80_v5, %v79_v2  ;;  %v81_v12 = vld [vmem:[%s858_s1 + $0x10] sm:$0xff]  ;;  %v139_v13 = vpack.c.bf16 %v98_v11, %v97_v10 }
   0x4   :  { %v146_v9 = vpack.c.bf16 %v112_v7, %v111_v6  ;;  %452 = vmatprep.subr.bf16.mxu0 %v138_v4  ;;  %v82_v14 = vld [vmem:[%s858_s1 + $0x18] sm:$0xff]  ;;  %v113_v15 = vld [vmem:[%s858_s1 + $0x110] sm:$0xff]  ;;  %v99_v19 = vld [vmem:[%s858_s1 + $0xa0] sm:$0xff]  ;;  %v25_v60 = vadd.s32 8, %v684_v47  ;;  %v30_v7 = vand.u32 7, %v684_v47  ;;  %vm57_vm1 = vcmp.lt.s32.totalorder %v684_v47, 1 }
   0x5   :  { %v114_v16 = vld [vmem:[%s858_s1 + $0x118] sm:$0xff]  ;;  %453 = vmatpush3.bf16.msra.mxu0 %v130_v8  ;;  %v131_v17 = vpack.c.bf16 %v82_v14, %v81_v12  ;;  %v100_v20 = vld [vmem:[%s858_s1 + $0xa8] sm:$0xff]  ;;  %v83_v21 = vld [vmem:[%s858_s1 + $0x20] sm:$0xff]  ;;  %vm70_vm2 = vcmp.lt.s32.totalorder %v684_v47, 7 }
   0x6   :  { %494 = vmatpush3.bf16.msra.mxu1 %v146_v9  ;;  %v147_v18 = vpack.c.bf16 %v114_v16, %v113_v15  ;;  %454 = vmatprep.subr.bf16.mxu0 %v139_v13  ;;  %v140_v22 = vpack.c.bf16 %v100_v20, %v99_v19  ;;  %v84_v23 = vld [vmem:[%s858_s1 + $0x28] sm:$0xff]  ;;  %v115_v24 = vld [vmem:[%s858_s1 + $0x120] sm:$0xff]  ;;  %v101_v26 = vld [vmem:[%s858_s1 + $0xb0] sm:$0xff]  ;;  %v37_v11 = vand.u32 7, %v25_v60  ;;  %vm747_vm3 = vcmp.ge.s32.totalorder %v30_v7, 1 }
   0x7   :  { %495 = vmatprep.subr.bf16.mxu1 %v548_v3  ;;  %v116_v25 = vld [vmem:[%s858_s1 + $0x128] sm:$0xff]  ;;  %v102_v27 = vld [vmem:[%s858_s1 + $0xb8] sm:$0xff]  ;;  %v132_v28 = vpack.c.bf16 %v84_v23, %v83_v21  ;;  %v85_v30 = vld [vmem:[%s858_s1 + $0x30] sm:$0xff]  ;;  %vm764_vm5 = vcmp.le.s32.totalorder %v30_v7, 6 }
   0x8   :  { %v148_v29 = vpack.c.bf16 %v116_v25, %v115_v24  ;;  %v141_v31 = vpack.c.bf16 %v102_v27, %v101_v26  ;;  %v86_v32 = vld [vmem:[%s858_s1 + $0x38] sm:$0xff]  ;;  %v117_v33 = vld [vmem:[%s858_s1 + $0x130] sm:$0xff]  ;;  %v103_v35 = vld [vmem:[%s858_s1 + $0xc0] sm:$0xff]  ;;  %vm753_vm4 = vcmp.ge.s32.totalorder %v37_v11, 1  ;;  %vm768_vm6 = vcmp.le.s32.totalorder %v37_v11, 6 }
   0x9   :  { %455 = vmatpush3.bf16.msra.mxu0 %v131_v17  ;;  %v118_v34 = vld [vmem:[%s858_s1 + $0x138] sm:$0xff]  ;;  %v104_v36 = vld [vmem:[%s858_s1 + $0xc8] sm:$0xff]  ;;  %v133_v38 = vpack.c.bf16 %v86_v32, %v85_v30  ;;  %v87_v40 = vld [vmem:[%s858_s1 + $0x40] sm:$0xff] }
   0xa   :  { %496 = vmatpush3.bf16.msra.mxu1 %v147_v18  ;;  %456 = vmatprep.subr.bf16.mxu0 %v140_v22  ;;  %v149_v39 = vpack.c.bf16 %v118_v34, %v117_v33  ;;  %v142_v41 = vpack.c.bf16 %v104_v36, %v103_v35  ;;  %v88_v42 = vld [vmem:[%s858_s1 + $0x48] sm:$0xff]  ;;  %v119_v43 = vld [vmem:[%s858_s1 + $0x140] sm:$0xff]  ;;  %v105_v45 = vld [vmem:[%s858_s1 + $0xd0] sm:$0xff] }
   0xb   :  { %497 = vmatprep.subr.bf16.mxu1 %v548_v3  ;;  %v120_v44 = vld [vmem:[%s858_s1 + $0x148] sm:$0xff]  ;;  %v106_v46 = vld [vmem:[%s858_s1 + $0xd8] sm:$0xff]  ;;  %v134_v48 = vpack.c.bf16 %v88_v42, %v87_v40  ;;  %v89_v50 = vld [vmem:[%s858_s1 + $0x50] sm:$0xff] }
   0xc   :  { %v150_v49 = vpack.c.bf16 %v120_v44, %v119_v43  ;;  %v21_v51 = vld [vmem:[%s859_s0] sm:$0xff]  ;;  %v22_v52 = vld [vmem:[%s859_s0 + $0x8] sm:$0xff]  ;;  %v143_v53 = vpack.c.bf16 %v106_v46, %v105_v45  ;;  %v90_v54 = vld [vmem:[%s858_s1 + $0x58] sm:$0xff] }
   0xd   :  { %457 = vmatpush3.bf16.msra.mxu0 %v132_v28  ;;  %v121_v55 = vld [vmem:[%s858_s1 + $0x150] sm:$0xff]  ;;  %v122_v56 = vld [vmem:[%s858_s1 + $0x158] sm:$0xff]  ;;  %v128_v57 = vpack.c.bf16 %v22_v52, %v21_v51  ;;  %v107_v58 = vld [vmem:[%s858_s1 + $0xe0] sm:$0xff]  ;;  %v135_v61 = vpack.c.bf16 %v90_v54, %v89_v50  ;;  %v55_v9 = vrot.slane %v21_v51, 7  ;;  %v56_v10 = vrot.slane %v22_v52, 7 }
   0xe   :  { %498 = vmatpush3.bf16.msra.mxu1 %v148_v29  ;;  %458 = vmatprep.subr.bf16.mxu0 %v141_v31  ;;  %v108_v59 = vld [vmem:[%s858_s1 + $0xe8] sm:$0xff]  ;;  %v151_v62 = vpack.c.bf16 %v122_v56, %v121_v55  ;;  %v91_v63 = vld [vmem:[%s858_s1 + $0x60] sm:$0xff]  ;;  %v109_v5 = vld [vmem:[%s858_s1 + $0xf0] sm:$0xff]  ;;  %v68_v15 = vrot.slane %v21_v51, 1  ;;  %v69_v16 = vrot.slane %v22_v52, 1 }
   0xf   :  { %499 = vmatprep.subr.bf16.mxu1 %v548_v3  ;;  %190 = vmatprep.mubr.bf16.mxu0 %v128_v57  ;;  %v144_v0 = vpack.c.bf16 %v108_v59, %v107_v58  ;;  %v92_v1 = vld [vmem:[%s858_s1 + $0x68] sm:$0xff]  ;;  %v123_v2 = vld [vmem:[%s858_s1 + $0x160] sm:$0xff]  ;;  %v110_v6 = vld [vmem:[%s858_s1 + $0xf8] sm:$0xff]  ;;  %v58_v23 = vsel %vm57_vm1, %v55_v9, %v56_v10  ;;  %v59_v25 = vsel %vm57_vm1, %v56_v10, %v55_v9 }
  0x10   :  { %v124_v4 = vld [vmem:[%s858_s1 + $0x168] sm:$0xff]  ;;  %v93_v8 = vld [vmem:[%s858_s1 + $0x70] sm:$0xff]  ;;  %v136_v12 = vpack.c.bf16 %v92_v1, %v91_v63  ;;  %v94_v14 = vld [vmem:[%s858_s1 + $0x78] sm:$0xff]  ;;  %v145_v19 = vpack.c.bf16 %v110_v6, %v109_v5  ;;  %v71_v26 = vsel %vm70_vm2, %v68_v15, %v69_v16  ;;  %v72_v27 = vsel %vm70_vm2, %v69_v16, %v68_v15 }
  0x11   :  { %459 = vmatpush3.bf16.msra.mxu0 %v133_v38  ;;  %v152_v13 = vpack.c.bf16 %v124_v4, %v123_v2  ;;  %v125_v17 = vld [vmem:[%s858_s1 + $0x170] sm:$0xff]  ;;  %v126_v18 = vld [vmem:[%s858_s1 + $0x178] sm:$0xff]  ;;  %v137_v20 = vpack.c.bf16 %v94_v14, %v93_v8  ;;  %vm441_vm7 = vmpackc.low %vm753_vm4, %vm747_vm3  ;;  %v442_v30 = vpack.c.bf16 %v58_v23, %v59_v25  ;;  %v445_v31 = vpack.c.bf16 %v72_v27, %v71_v26 }
  0x12   :  { %500 = vmatpush3.bf16.msra.mxu1 %v149_v39  ;;  %460 = vmatprep.subr.bf16.mxu0 %v142_v41  ;;  %v153_v21 = vpack.c.bf16 %v126_v18, %v125_v17  ;;  %vm444_vm8 = vmpackc.low %vm768_vm6, %vm764_vm5  ;;  %v276_v32 = vld [vmem:[%s860_s2] sm:$0xff]  ;;  %v277_v33 = vld [vmem:[%s860_s2 + $0x8] sm:$0xff] }
  0x13   :  { %501 = vmatprep.subr.bf16.mxu1 %v548_v3  ;;  %v278_v34 = vld [vmem:[%s860_s2 + $0x10] sm:$0xff]  ;;  %v289_v35 = vpack.c.bf16 %v277_v33, %v276_v32  ;;  %v279_v36 = vld [vmem:[%s860_s2 + $0x18] sm:$0xff]  ;;  %v280_v38 = vld [vmem:[%s860_s2 + $0x20] sm:$0xff] }
  0x14   :  { %v290_v37 = vpack.c.bf16 %v279_v36, %v278_v34  ;;  %v281_v39 = vld [vmem:[%s860_s2 + $0x28] sm:$0xff]  ;;  %v282_v41 = vld [vmem:[%s860_s2 + $0x30] sm:$0xff]  ;;  %v283_v42 = vld [vmem:[%s860_s2 + $0x38] sm:$0xff] }
  0x15   :  { %461 = vmatpush3.bf16.msra.mxu0 %v134_v48  ;;  %v291_v40 = vpack.c.bf16 %v281_v39, %v280_v38  ;;  %v292_v43 = vpack.c.bf16 %v283_v42, %v282_v41  ;;  %v284_v46 = vld [vmem:[%s860_s2 + $0x40] sm:$0xff]  ;;  %v285_v48 = vld [vmem:[%s860_s2 + $0x48] sm:$0xff]  ;;  %v286_v60 = vld [vmem:[%s860_s2 + $0x50] sm:$0xff] }
  0x16   :  { %502 = vmatpush3.bf16.msra.mxu1 %v150_v49  ;;  %462 = vmatprep.subr.bf16.mxu0 %v143_v53  ;;  %v440_v50 = vld [vmem:[%s861_s4] ss:$0 sm:$0xff]  ;;  %v293_v52 = vpack.c.bf16 %v285_v48, %v284_v46  ;;  %v449_v38 = vld [vmem:[%s861_s4 + $0x2] ss:$0 sm:$0xff] }
  0x17   :  { %503 = vmatprep.subr.bf16.mxu1 %v548_v3 }
  0x19   :  { %463 = vmatpush3.bf16.msra.mxu0 %v135_v61  ;;  %v287_v61 = vld [vmem:[%s860_s2 + $0x58] sm:$0xff]  ;;  %s551_s2 = smov 64  }
  0x1a   :  { %504 = vmatpush3.bf16.msra.mxu1 %v151_v62  ;;  %464 = vmatprep.subr.bf16.mxu0 %v144_v0  ;;  %v294_v62 = vpack.c.bf16 %v287_v61, %v286_v60 }
  0x1b   :  { %505 = vmatprep.subr.bf16.mxu1 %v548_v3 }
  0x1d   :  { %465 = vmatpush3.bf16.msra.mxu0 %v136_v12 }
  0x1e   :  { %506 = vmatpush3.bf16.msra.mxu1 %v152_v13  ;;  %466 = vmatprep.subr.bf16.mxu0 %v145_v19 }
  0x1f   :  { %507 = vmatprep.subr.bf16.mxu1 %v548_v3 }
  0x21   :  { %467 = vmatpush3.bf16.msra.mxu0 %v137_v20 }
  0x22   :  { %508 = vmatpush3.bf16.msra.mxu1 %v153_v21  ;;  %513 = vmatprep.subr.bf16.mxu0 %v548_v3 }
  0x24   :  { %443 = vmatmul.mubr.msk.bf16.vlgmr.msra.gmra.mrb[0].mxu0 %vm441_vm7, %v442_v30 }
  0x25   :  { %510 = vmatmul.mubr.msk.bf16.vlgmr.msra.gmra.mrb[0].mxu1 %vm444_vm8, %v445_v31  ;;  %525 = vmatprep.mubr.msk.bf16.mxu0 %vm549_vm0, %v548_v3  ;;  %v447_v31 = vld [vmem:[%s861_s4 + $0x1] ss:$0 sm:$0xff] }
  0x26   :  { %514 = vmatpush3.bf16.msra.mxu0 %v289_v35 }
  0x27   :  { %515 = vmatprep.subr.bf16.mxu0 %v548_v3 }
  0x2a   :  { %516 = vmatpush3.bf16.msra.mxu0 %v290_v37 }
  0x2b   :  { %517 = vmatprep.subr.bf16.mxu0 %v548_v3 }
  0x2e   :  { %518 = vmatpush3.bf16.msra.mxu0 %v291_v40 }
  0x2f   :  { %519 = vmatprep.subr.bf16.mxu0 %v548_v3 }
  0x32   :  { %520 = vmatpush3.bf16.msra.mxu0 %v292_v43 }
  0x33   :  { %521 = vmatprep.subr.bf16.mxu0 %v548_v3 }
  0x36   :  { %522 = vmatpush3.bf16.msra.mxu0 %v293_v52 }
  0x37   :  { %523 = vmatprep.subr.bf16.mxu0 %v548_v3  ;;  %v346_v3 = vld [vmem:[%s862_s3] sm:$0xff] }
  0x38   :  { %529 = vmatprep.subr.mxu1 %v346_v3 }
  0x39   :  { %530 = vmatpush3.msra.mxu1 %v346_v3 }
  0x3a   :  { %524 = vmatpush3.bf16.msra.mxu0 %v294_v62 }
  0xf7   :  { %v468_v44 = vpop.f32.mrb[0].mxu0 }
  0xf8   :  { %v233_v45 = vpop.f32.mrb[0].mxu1  ;;  %v469_v49 = vpop.f32.mrb[1].mxu0 }
  0xf9   :  { %v511_v51 = vpop.f32.mrb[1].mxu1  ;;  %v470_v53 = vadd.f32 %v469_v49, %v468_v44  ;;  %v471_v54 = vpop.f32.mrb[2].mxu0 }
  0xfa   :  { %v236_v55 = vpop.f32.mrb[2].mxu1  ;;  %v472_v56 = vpop.f32.mrb[3].mxu0 }
  0xfb   :  { %v512_v57 = vpop.f32.mrb[3].mxu1  ;;  %v193_v58 = vadd.f32 %v470_v53, %v440_v50  ;;  %v473_v59 = vadd.f32 %v472_v56, %v471_v54 }
  0xfd   :  { %v234_v63 = vadd.f32 %v233_v45, %v193_v58  ;;  %v196_v0 = vadd.f32 %v473_v59, %v440_v50 }
  0xff   :  { %v240_v1 = vmax.f32 %v234_v63, 0.0  ;;  %v237_v2 = vadd.f32 %v236_v55, %v196_v0 }
 0x101   :  { %v241_v4 = vmax.f32 %v237_v2, 0.0  ;;  %v242_v5 = vrot.slane %v240_v1, 7  ;;  %v248_v6 = vrot.slane %v240_v1, 1 }
 0x103   :  { %v243_v7 = vrot.slane %v241_v4, 7  ;;  %v249_v8 = vrot.slane %v241_v4, 1  ;;  %v538_v9 = vpack.i.bf16 %v241_v4, %v240_v1 }
 0x105   :  { %539 = vrot.lane.b32.xlu0 %v538_v9, %s550_s17  ;;  %v250_v10 = vsel %vm70_vm2, %v248_v6, %v249_v8  ;;  %v251_v11 = vsel %vm70_vm2, %v249_v8, %v248_v6  ;;  %v244_v12 = vsel %vm57_vm1, %v242_v5, %v243_v7  ;;  %v245_v13 = vsel %vm57_vm1, %v243_v7, %v242_v5 }
 0x106   :  { %v252_v14 = vsel %vm764_vm5, %v250_v10, 0.0  ;;  %v253_v15 = vsel %vm768_vm6, %v251_v11, 0.0  ;;  %v246_v21 = vsel %vm747_vm3, %v245_v13, 0.0  ;;  %v247_v47 = vsel %vm753_vm4, %v244_v12, 0.0 }
 0x107   :  { %v543_v16 = vpack.i.bf16 %v253_v15, %v252_v14 }
 0x109   :  { %544 = vrot.lane.b32.xlu0 %v543_v16, %s551_s2 }
 0x177   :  { %v540_v17 = vpop.permute.xlu0 %539 }
 0x178   :  { %v542_v18 = vunpack.i.h.bf16 %v540_v17  ;;  %v541_v19 = vunpack.i.l.bf16 %v540_v17 }
 0x17a   :  { %v271_v26 = vsel %vm270_vm9, %v246_v21, %v541_v19  ;;  %v272_v27 = vsel %vm270_vm9, %v247_v47, %v542_v18 }
 0x17b   :  { %v545_v20 = vpop.permute.xlu0 %544 }
 0x17c   :  { %v547_v23 = vunpack.i.h.bf16 %v545_v20  ;;  %v546_v25 = vunpack.i.l.bf16 %v545_v20 }
 0x17e   :  { %v274_v28 = vsel %vm273_vm10, %v271_v26, %v546_v25  ;;  %v275_v29 = vsel %vm273_vm10, %v272_v27, %v547_v23 }
 0x17f   :  { %v288_v30 = vpack.c.bf16 %v275_v29, %v274_v28 }
 0x181   :  { %526 = vmatmul.mubr.msk.bf16.vlgmr.msra.gmra.mrb[4].mxu0 %vm299_vm11, %v288_v30 }
 0x254   :  { %v337_v32 = vpop.f32.mrb[4].mxu0 }
 0x255   :  { %v338_v33 = vadd.f32 %v447_v31, %v337_v32  ;;  %v527_v22 = vpop.f32.mrb[5].mxu0 }
 0x256   :  { %v340_v34 = vpop.f32.mrb[6].mxu0 }
 0x257   :  { %v344_v24 = vmax.f32 %v338_v33, 0.0  ;;  %v341_v35 = vadd.f32 %v447_v31, %v340_v34  ;;  %v528_v36 = vpop.f32.mrb[7].mxu0 }
 0x259   :  { %v345_v37 = vmax.f32 %v341_v35, 0.0  ;;  %531 = vmatprep.mubr.msk.f32.mxu1 %vm351_vm12, %v344_v24 }
 0x25b   :  { %532 = vmatmul.mubr.msk.f32.vlgmr.msra.gmra.mrb[4].mxu1 %vm351_vm12, %v345_v37 }
 0x32e   :  { %v533_v39 = vpop.f32.mrb[4].mxu1 }
 0x32f   :  { %v430_v40 = vadd.f32 %v533_v39, %v449_v38  ;;  %v424_v41 = vpop.f32.mrb[5].mxu1 }
 0x330   :  { %v425_v42 = vadd.f32 %v449_v38, %v424_v41 }
 0x331   :  { %435 = vst.msk [vmem:[%s863_s5 + $0x8] sm:$0xff] %vm433_vm13, %v430_v40 }
 0x332   :  { %434 = vst.msk [vmem:[%s863_s5] sm:$0xff] %vm433_vm13, %v425_v42 }

// kernel: ddsp_vae_forward.8
= control target key start
LH: loop header
LB: loop body
LE: loop exit
PB: predicated region body
PF: predicated region fallthrough
CT: control target
= control target key end

     0   :  { %v2050_v0 = vmov 0.0   ;;  %vm66_vm0 = vcmask 1041408   ;;  %vm2051_vm1 = vmmov 0   ;;  %vm62_vm2 = vcmask 31744   ;;  %s2546_s1 = inlined_call_operand.vmem [shape: f32[4,128], index: 1, kind: input, shape index: {}]   ;;  %s2547_s0 = inlined_call_operand.vmem [shape: f32[16,4], index: 0, kind: input, shape index: {}]   ;;  %s2548_s5 = inlined_call_operand.vmem [shape: f32[128,4], index: 5, kind: input, shape index: {}]   ;;  %s2549_s6 = inlined_call_operand.vmem [shape: f32[4,128], index: 6, kind: input, shape index: {}]   ;;  %s2550_s4 = inlined_call_operand.vmem [shape: f32[9,128], index: 4, kind: input, shape index: {}]   ;;  %s2551_s2 = inlined_call_operand.vmem [shape: f32[128,128], index: 2, kind: input, shape index: {}]   ;;  %s2552_s3 = inlined_call_operand.vmem [shape: f32[128,128], index: 3, kind: input, shape index: {}]   ;;  %s2553_s7 = inlined_call_operand.vmem [shape: f32[128,128], index: 7, kind: input, shape index: {}]   ;;  %s2554_s8 = inlined_call_operand.vmem [shape: f32[1,128], index: 8, kind: input, shape index: {}]   ;;  %s2555_s9 = inlined_call_operand.vmem [shape: f32[16,128], index: 9, kind: output, shape index: {}]  }
   0x1   :  { %1538 = vmatprep.subr.bf16.mxu1 %v2050_v0  ;;  %v55_v1 = vld [vmem:[%s2546_s1] sm:$0xf]  ;;  %1540 = vmatprep.mubr.msk.bf16.mxu1 %vm2051_vm1, %v2050_v0  ;;  %v51_v3 = vld [vmem:[%s2547_s0 + $0x8] sm:$0xff]  ;;  %v35_v7 = vld [vmem:[%s2548_s5 + $0x10] sm:$0xff]  ;;  %vm192_vm3 = vcmask 1043456  }
   0x2   :  { %v50_v2 = vld [vmem:[%s2547_s0] sm:$0xff]  ;;  %v57_v4 = vpack.c.bf16 %v55_v1, %v55_v1  ;;  %v34_v6 = vld [vmem:[%s2548_s5 + $0x8] sm:$0xff]  ;;  %v36_v9 = vld [vmem:[%s2548_s5 + $0x18] sm:$0xff] }
   0x3   :  { %v33_v5 = vld [vmem:[%s2548_s5] sm:$0xff]  ;;  %v56_v11 = vpack.c.bf16 %v51_v3, %v50_v2  ;;  %v2128_v12 = vpack.c.bf16 %v36_v9, %v35_v7  ;;  %v38_v14 = vld [vmem:[%s2548_s5 + $0x28] sm:$0xff]  ;;  %v39_v16 = vld [vmem:[%s2548_s5 + $0x30] sm:$0xff] }
   0x4   :  { %v2123_v8 = vpack.c.bf16 %v34_v6, %v33_v5  ;;  %v68_v10 = vsel %vm66_vm0, %v57_v4, 0  ;;  %v37_v13 = vld [vmem:[%s2548_s5 + $0x20] sm:$0xff]  ;;  %v40_v17 = vld [vmem:[%s2548_s5 + $0x38] sm:$0xff]  ;;  %v42_v20 = vld [vmem:[%s2548_s5 + $0x48] sm:$0xff] }
   0x5   :  { %1539 = vmatpush3.bf16.msra.mxu1 %v68_v10  ;;  %v2142_v15 = vpack.c.bf16 %v38_v14, %v37_v13  ;;  %v2154_v18 = vpack.c.bf16 %v40_v17, %v39_v16  ;;  %v41_v19 = vld [vmem:[%s2548_s5 + $0x40] sm:$0xff]  ;;  %v43_v22 = vld [vmem:[%s2548_s5 + $0x50] sm:$0xff]  ;;  %v44_v23 = vld [vmem:[%s2548_s5 + $0x58] sm:$0xff] }
   0x6   :  { %1877 = vmatprep.subr.bf16.mxu0 %v2123_v8  ;;  %1845 = vmatprep.subr.bf16.mxu1 %v2123_v8  ;;  %v2166_v21 = vpack.c.bf16 %v42_v20, %v41_v19  ;;  %v2178_v24 = vpack.c.bf16 %v44_v23, %v43_v22  ;;  %v45_v25 = vld [vmem:[%s2548_s5 + $0x60] sm:$0xff]  ;;  %v46_v26 = vld [vmem:[%s2548_s5 + $0x68] sm:$0xff]  ;;  %v47_v28 = vld [vmem:[%s2548_s5 + $0x70] sm:$0xff] }
   0x7   :  { %1879 = vmatpush3.bf16.msra.mxu0 %v2123_v8  ;;  %v2190_v27 = vpack.c.bf16 %v46_v26, %v45_v25  ;;  %v48_v29 = vld [vmem:[%s2548_s5 + $0x78] sm:$0xff]  ;;  %v2215_v31 = vld [vmem:[%s2549_s6] sm:$0xf]  ;;  %v457_v48 = vld [vmem:[%s2551_s2 + $0x8] sm:$0xff] }
   0x8   :  { %1881 = vmatprep.subr.bf16.mxu0 %v2128_v12  ;;  %1541 = vmatmul.mubr.msk.bf16.vlgmr.msra.gmra.mrb[0].mxu1 %vm62_vm2, %v56_v11  ;;  %v2205_v30 = vpack.c.bf16 %v48_v29, %v47_v28  ;;  %v1354_v32 = vld [vmem:[%s2550_s4] ss:$0 sm:$0xff]  ;;  %v458_v52 = vld [vmem:[%s2551_s2 + $0x10] sm:$0xff]  ;;  %v459_v53 = vld [vmem:[%s2551_s2 + $0x18] sm:$0xff] }
   0x9   :  { %1847 = vmatpush3.bf16.msra.mxu1 %v2123_v8  ;;  %v456_v47 = vld [vmem:[%s2551_s2] sm:$0xff]  ;;  %v474_v54 = vpack.c.bf16 %v459_v53, %v458_v52  ;;  %v461_v56 = vld [vmem:[%s2551_s2 + $0x28] sm:$0xff]  ;;  %v462_v58 = vld [vmem:[%s2551_s2 + $0x30] sm:$0xff] }
   0xa   :  { %1849 = vmatprep.subr.bf16.mxu1 %v2128_v12  ;;  %v473_v50 = vpack.c.bf16 %v457_v48, %v456_v47  ;;  %v460_v55 = vld [vmem:[%s2551_s2 + $0x20] sm:$0xff]  ;;  %v463_v59 = vld [vmem:[%s2551_s2 + $0x38] sm:$0xff]  ;;  %v465_v62 = vld [vmem:[%s2551_s2 + $0x48] sm:$0xff] }
   0xb   :  { %1883 = vmatpush3.bf16.msra.mxu0 %v2128_v12  ;;  %v475_v57 = vpack.c.bf16 %v461_v56, %v460_v55  ;;  %v476_v60 = vpack.c.bf16 %v463_v59, %v462_v58  ;;  %v464_v61 = vld [vmem:[%s2551_s2 + $0x40] sm:$0xff]  ;;  %v466_v1 = vld [vmem:[%s2551_s2 + $0x50] sm:$0xff]  ;;  %v467_v2 = vld [vmem:[%s2551_s2 + $0x58] sm:$0xff] }
   0xc   :  { %1885 = vmatprep.subr.bf16.mxu0 %v2142_v15  ;;  %v477_v63 = vpack.c.bf16 %v465_v62, %v464_v61  ;;  %v478_v3 = vpack.c.bf16 %v467_v2, %v466_v1  ;;  %v468_v4 = vld [vmem:[%s2551_s2 + $0x60] sm:$0xff]  ;;  %v469_v5 = vld [vmem:[%s2551_s2 + $0x68] sm:$0xff]  ;;  %v470_v7 = vld [vmem:[%s2551_s2 + $0x70] sm:$0xff] }
   0xd   :  { %1851 = vmatpush3.bf16.msra.mxu1 %v2128_v12  ;;  %v479_v6 = vpack.c.bf16 %v469_v5, %v468_v4  ;;  %v471_v9 = vld [vmem:[%s2551_s2 + $0x78] sm:$0xff]  ;;  %v1362_v19 = vld [vmem:[%s2550_s4 + $0x1] ss:$0 sm:$0xff]  ;;  %v1363_v25 = vld [vmem:[%s2550_s4 + $0x2] ss:$0 sm:$0xff] }
   0xe   :  { %1853 = vmatprep.subr.bf16.mxu1 %v2142_v15  ;;  %v480_v10 = vpack.c.bf16 %v471_v9, %v470_v7  ;;  %v867_v53 = vld [vmem:[%s2552_s3] sm:$0xff]  ;;  %v869_v58 = vld [vmem:[%s2552_s3 + $0x10] sm:$0xff]  ;;  %v870_v59 = vld [vmem:[%s2552_s3 + $0x18] sm:$0xff] }
   0xf   :  { %1887 = vmatpush3.bf16.msra.mxu0 %v2142_v15  ;;  %v871_v61 = vld [vmem:[%s2552_s3 + $0x20] sm:$0xff]  ;;  %v872_v62 = vld [vmem:[%s2552_s3 + $0x28] sm:$0xff]  ;;  %v873_v1 = vld [vmem:[%s2552_s3 + $0x30] sm:$0xff] }
  0x10   :  { %1889 = vmatprep.subr.bf16.mxu0 %v2154_v18  ;;  %v874_v2 = vld [vmem:[%s2552_s3 + $0x38] sm:$0xff]  ;;  %v875_v4 = vld [vmem:[%s2552_s3 + $0x40] sm:$0xff]  ;;  %v876_v5 = vld [vmem:[%s2552_s3 + $0x48] sm:$0xff] }
  0x11   :  { %1855 = vmatpush3.bf16.msra.mxu1 %v2142_v15  ;;  %v877_v7 = vld [vmem:[%s2552_s3 + $0x50] sm:$0xff]  ;;  %v878_v9 = vld [vmem:[%s2552_s3 + $0x58] sm:$0xff] }
  0x12   :  { %1857 = vmatprep.subr.bf16.mxu1 %v2154_v18 }
  0x13   :  { %1891 = vmatpush3.bf16.msra.mxu0 %v2154_v18 }
  0x14   :  { %1893 = vmatprep.subr.bf16.mxu0 %v2166_v21 }
  0x15   :  { %1859 = vmatpush3.bf16.msra.mxu1 %v2154_v18 }
  0x16   :  { %1861 = vmatprep.subr.bf16.mxu1 %v2166_v21 }
  0x17   :  { %1895 = vmatpush3.bf16.msra.mxu0 %v2166_v21 }
  0x18   :  { %1897 = vmatprep.subr.bf16.mxu0 %v2178_v24 }
  0x19   :  { %1863 = vmatpush3.bf16.msra.mxu1 %v2166_v21 }
  0x1a   :  { %1865 = vmatprep.subr.bf16.mxu1 %v2178_v24 }
  0x1b   :  { %1899 = vmatpush3.bf16.msra.mxu0 %v2178_v24 }
  0x1c   :  { %1901 = vmatprep.subr.bf16.mxu0 %v2190_v27 }
  0x1d   :  { %1867 = vmatpush3.bf16.msra.mxu1 %v2178_v24 }
  0x1e   :  { %1869 = vmatprep.subr.bf16.mxu1 %v2190_v27 }
  0x1f   :  { %1903 = vmatpush3.bf16.msra.mxu0 %v2190_v27 }
  0x20   :  { %1905 = vmatprep.subr.bf16.mxu0 %v2205_v30 }
  0x21   :  { %1871 = vmatpush3.bf16.msra.mxu1 %v2190_v27 }
  0x22   :  { %1873 = vmatprep.subr.bf16.mxu1 %v2205_v30 }
  0x23   :  { %1907 = vmatpush3.bf16.msra.mxu0 %v2205_v30 }
  0x24   :  { %1909 = vmatprep.subr.bf16.mxu0 %v2123_v8 }
  0x25   :  { %1875 = vmatpush3.bf16.msra.mxu1 %v2205_v30 }
  0x26   :  { %1579 = vmatprep.subr.msk.mxu1 %vm192_vm3, %v2215_v31 }
  0xdb   :  { %v104_v33 = vpop.f32.mrb[0].mxu1 }
  0xdc   :  { %v105_v34 = vadd.f32 %v1354_v32, %v104_v33  ;;  %v1542_v35 = vpop.f32.mrb[1].mxu1 }
  0xdd   :  { %v107_v36 = vpop.f32.mrb[2].mxu1 }
  0xde   :  { %v108_v37 = vadd.f32 %v1354_v32, %v107_v36  ;;  %v1543_v38 = vpop.f32.mrb[3].mxu1  ;;  %1576 = vmatprep.mubr.f32.mxu1 %v105_v34 }
  0xdf   :  { %v1364_v38 = vld [vmem:[%s2550_s4 + $0x3] ss:$0 sm:$0xff] }
  0xe0   :  { %1577 = vmatmul.mubr.f32.vlgmr.msra.gmra.mrb[4].mxu1 %v108_v37 }
  0xe1   :  { %1580 = vmatpush3.msk.msra.mxu1 %vm192_vm3, %v2215_v31 }
  0xe2   :  { %1619 = vmatprep.subr.msk.mxu1 %vm192_vm3, %v2215_v31 }
 0x1b3   :  { %v1578_v39 = vpop.f32.mrb[4].mxu1 }
 0x1b4   :  { %v177_v40 = vpop.f32.mrb[5].mxu1 }
 0x1b5   :  { %1581 = vmatprep.mubr.msk.f32.mxu1 %vm62_vm2, %v177_v40 }
 0x1b6   :  { %1582 = vmatmul.mubr.msk.f32.vlgmr.msra.gmra.mrb[6].mxu1 %vm62_vm2, %v1578_v39 }
 0x1b7   :  { %1620 = vmatpush3.msk.msra.mxu1 %vm192_vm3, %v2215_v31 }
 0x1b8   :  { %1624 = vmatprep.subr.bf16.mxu1 %v2050_v0 }
 0x289   :  { %v1583_v41 = vpop.f32.mrb[6].mxu1 }
 0x28a   :  { %v2231_v42 = vsub.f32 %v108_v37, %v1583_v41  ;;  %v262_v43 = vpop.f32.mrb[7].mxu1 }
 0x28b   :  { %v2233_v44 = vsub.f32 %v105_v34, %v262_v43 }
 0x28c   :  { %v274_v46 = vmul.f32 %v2231_v42, %v2231_v42 }
 0x28d   :  { %v273_v45 = vmul.f32 %v2233_v44, %v2233_v44 }
 0x28f   :  { %1616 = vmatprep.mubr.f32.mxu0 %v273_v45 }
 0x290   :  { %1617 = vmatmul.mubr.f32.vlgmr.msra.gmra.mrb[0].mxu0 %v274_v46 }
 0x291   :  { %1911 = vmatpush3.bf16.msra.mxu0 %v2123_v8 }
 0x292   :  { %1913 = vmatprep.subr.bf16.mxu0 %v2128_v12 }
 0x295   :  { %1915 = vmatpush3.bf16.msra.mxu0 %v2128_v12 }
 0x296   :  { %1917 = vmatprep.subr.bf16.mxu0 %v2142_v15 }
 0x299   :  { %1919 = vmatpush3.bf16.msra.mxu0 %v2142_v15 }
 0x29a   :  { %1921 = vmatprep.subr.bf16.mxu0 %v2154_v18 }
 0x29d   :  { %1923 = vmatpush3.bf16.msra.mxu0 %v2154_v18 }
 0x29e   :  { %1925 = vmatprep.subr.bf16.mxu0 %v2166_v21 }
 0x2a1   :  { %1927 = vmatpush3.bf16.msra.mxu0 %v2166_v21 }
 0x2a2   :  { %1929 = vmatprep.subr.bf16.mxu0 %v2178_v24 }
 0x2a5   :  { %1931 = vmatpush3.bf16.msra.mxu0 %v2178_v24 }
 0x2a6   :  { %1933 = vmatprep.subr.bf16.mxu0 %v2190_v27 }
 0x2a9   :  { %1935 = vmatpush3.bf16.msra.mxu0 %v2190_v27 }
 0x2aa   :  { %1937 = vmatprep.subr.bf16.mxu0 %v2205_v30 }
 0x2ad   :  { %1939 = vmatpush3.bf16.msra.mxu0 %v2205_v30 }
 0x2ae   :  { %1941 = vmatprep.subr.bf16.mxu0 %v2123_v8 }
 0x363   :  { %v1618_v49 = vpop.f32.mrb[0].mxu0 }
 0x364   :  { %v341_v51 = vpop.f32.mrb[1].mxu0 }
 0x365   :  { %1621 = vmatprep.mubr.msk.f32.mxu1 %vm62_vm2, %v341_v51 }
 0x366   :  { %1622 = vmatmul.mubr.msk.f32.vlgmr.msra.gmra.mrb[8].mxu1 %vm62_vm2, %v1618_v49 }
 0x367   :  { %1625 = vmatpush3.bf16.msra.mxu1 %v473_v50  ;;  %1640 = vmatprep.mubr.msk.bf16.mxu1 %vm2051_vm1, %v2050_v0 }
 0x368   :  { %1626 = vmatprep.subr.bf16.mxu1 %v2050_v0 }
 0x36b   :  { %1627 = vmatpush3.bf16.msra.mxu1 %v474_v54  ;;  %v868_v54 = vld [vmem:[%s2552_s3 + $0x8] sm:$0xff] }
 0x36c   :  { %1628 = vmatprep.subr.bf16.mxu1 %v2050_v0  ;;  %v884_v56 = vpack.c.bf16 %v868_v54, %v867_v53 }
 0x36f   :  { %1629 = vmatpush3.bf16.msra.mxu1 %v475_v57 }
 0x370   :  { %1630 = vmatprep.subr.bf16.mxu1 %v2050_v0 }
 0x373   :  { %1631 = vmatpush3.bf16.msra.mxu1 %v476_v60  ;;  %v885_v60 = vpack.c.bf16 %v870_v59, %v869_v58  ;;  %v1279_v58 = vld [vmem:[%s2553_s7 + $0x20] sm:$0xff]  ;;  %v1280_v59 = vld [vmem:[%s2553_s7 + $0x28] sm:$0xff] }
 0x374   :  { %1632 = vmatprep.subr.bf16.mxu1 %v2050_v0 }
 0x377   :  { %1633 = vmatpush3.bf16.msra.mxu1 %v477_v63  ;;  %v886_v63 = vpack.c.bf16 %v872_v62, %v871_v61  ;;  %v1281_v61 = vld [vmem:[%s2553_s7 + $0x30] sm:$0xff]  ;;  %v1282_v62 = vld [vmem:[%s2553_s7 + $0x38] sm:$0xff] }
 0x378   :  { %1634 = vmatprep.subr.bf16.mxu1 %v2050_v0 }
 0x37b   :  { %1635 = vmatpush3.bf16.msra.mxu1 %v478_v3  ;;  %v887_v3 = vpack.c.bf16 %v874_v2, %v873_v1  ;;  %v1283_v1 = vld [vmem:[%s2553_s7 + $0x40] sm:$0xff]  ;;  %v1284_v2 = vld [vmem:[%s2553_s7 + $0x48] sm:$0xff] }
 0x37c   :  { %1636 = vmatprep.subr.bf16.mxu1 %v2050_v0 }
 0x37f   :  { %1637 = vmatpush3.bf16.msra.mxu1 %v479_v6  ;;  %v888_v6 = vpack.c.bf16 %v876_v5, %v875_v4  ;;  %v1285_v4 = vld [vmem:[%s2553_s7 + $0x50] sm:$0xff]  ;;  %v1286_v5 = vld [vmem:[%s2553_s7 + $0x58] sm:$0xff] }
 0x380   :  { %1638 = vmatprep.subr.bf16.mxu1 %v2050_v0 }
 0x383   :  { %1639 = vmatpush3.bf16.msra.mxu1 %v480_v10  ;;  %v889_v10 = vpack.c.bf16 %v878_v9, %v877_v7  ;;  %v1287_v7 = vld [vmem:[%s2553_s7 + $0x60] sm:$0xff]  ;;  %v1288_v9 = vld [vmem:[%s2553_s7 + $0x68] sm:$0xff] }
 0x384   :  { %1679 = vmatprep.subr.msk.mxu1 %vm192_vm3, %v2215_v31 }
 0x439   :  { %v1623_v11 = vpop.f32.mrb[8].mxu1 }
 0x43a   :  { %v428_v13 = vadd.f32 1e-05, %v1623_v11  ;;  %v422_v14 = vpop.f32.mrb[9].mxu1  ;;  %v879_v11 = vld [vmem:[%s2552_s3 + $0x60] sm:$0xff] }
 0x43b   :  { %v423_v16 = vadd.f32 1e-05, %v422_v14 }
 0x43c   :  { %2038 = vrsqrt.f32 %v428_v13  ;;  %v880_v13 = vld [vmem:[%s2552_s3 + $0x68] sm:$0xff] }
 0x43d   :  { %2040 = vrsqrt.f32 %v423_v16  ;;  %v890_v14 = vpack.c.bf16 %v880_v13, %v879_v11  ;;  %v881_v16 = vld [vmem:[%s2552_s3 + $0x70] sm:$0xff]  ;;  %v1290_v13 = vld [vmem:[%s2553_s7 + $0x78] sm:$0xff] }
 0x43e   :  { %v1289_v11 = vld [vmem:[%s2553_s7 + $0x70] sm:$0xff] }
 0x446   :  { %v2039_v17 = vpop.eup %2038 }
 0x447   :  { %v2041_v20 = vpop.eup %2040  ;;  %v434_v22 = vmul.f32 %v2039_v17, %v2231_v42  ;;  %v882_v17 = vld [vmem:[%s2552_s3 + $0x78] sm:$0xff] }
 0x448   :  { %v433_v23 = vmul.f32 %v2041_v20, %v2233_v44 }
 0x449   :  { %v440_v26 = vmul.f32 %v1362_v19, %v434_v22 }
 0x44a   :  { %v439_v28 = vmul.f32 %v1362_v19, %v433_v23  ;;  %v891_v19 = vpack.c.bf16 %v882_v17, %v881_v16 }
 0x44b   :  { %v446_v29 = vadd.f32 %v1363_v25, %v440_v26 }
 0x44c   :  { %v445_v32 = vadd.f32 %v1363_v25, %v439_v28  ;;  %v1371_v28 = vld [vmem:[%s2550_s4 + $0x4] ss:$0 sm:$0xff] }
 0x44d   :  { %vm448_vm4 = vcmp.ge.f32.partialorder %v446_v29, 0.0  ;;  %v450_v33 = vmul.f32 0.01, %v446_v29 }
 0x44e   :  { %vm447_vm5 = vcmp.ge.f32.partialorder %v445_v32, 0.0  ;;  %v449_v34 = vmul.f32 0.01, %v445_v32 }
 0x44f   :  { %v452_v35 = vsel %vm448_vm4, %v446_v29, %v450_v33 }
 0x450   :  { %v451_v36 = vsel %vm447_vm5, %v445_v32, %v449_v34  ;;  %v1372_v34 = vld [vmem:[%s2550_s4 + $0x5] ss:$0 sm:$0xff] }
 0x451   :  { %v472_v37 = vpack.c.bf16 %v452_v35, %v451_v36 }
 0x453   :  { %1641 = vmatmul.mubr.bf16.vlgmr.msra.gmra.mrb[12].mxu1 %v472_v37 }
 0x454   :  { %1680 = vmatpush3.msk.msra.mxu1 %vm192_vm3, %v2215_v31 }
 0x455   :  { %1719 = vmatprep.subr.msk.mxu1 %vm192_vm3, %v2215_v31 }
 0x526   :  { %v519_v39 = vpop.f32.mrb[12].mxu1 }
 0x527   :  { %v520_v40 = vadd.f32 %v1364_v38, %v519_v39  ;;  %v1642_v41 = vpop.f32.mrb[13].mxu1 }
 0x528   :  { %v522_v42 = vpop.f32.mrb[14].mxu1 }
 0x529   :  { %v523_v43 = vadd.f32 %v1364_v38, %v522_v42  ;;  %v1643_v44 = vpop.f32.mrb[15].mxu1  ;;  %1676 = vmatprep.mubr.f32.mxu0 %v520_v40 }
 0x52a   :  { %v1373_v44 = vld [vmem:[%s2550_s4 + $0x6] ss:$0 sm:$0xff] }
 0x52b   :  { %1677 = vmatmul.mubr.f32.vlgmr.msra.gmra.mrb[2].mxu0 %v523_v43 }
 0x52c   :  { %1943 = vmatpush3.bf16.msra.mxu0 %v2123_v8 }
 0x52d   :  { %1945 = vmatprep.subr.bf16.mxu0 %v2128_v12 }
 0x530   :  { %1947 = vmatpush3.bf16.msra.mxu0 %v2128_v12 }
 0x531   :  { %1949 = vmatprep.subr.bf16.mxu0 %v2142_v15 }
 0x534   :  { %1951 = vmatpush3.bf16.msra.mxu0 %v2142_v15 }
 0x535   :  { %1953 = vmatprep.subr.bf16.mxu0 %v2154_v18 }
 0x538   :  { %1955 = vmatpush3.bf16.msra.mxu0 %v2154_v18 }
 0x539   :  { %1957 = vmatprep.subr.bf16.mxu0 %v2166_v21 }
 0x53c   :  { %1959 = vmatpush3.bf16.msra.mxu0 %v2166_v21 }
 0x53d   :  { %1961 = vmatprep.subr.bf16.mxu0 %v2178_v24 }
 0x540   :  { %1963 = vmatpush3.bf16.msra.mxu0 %v2178_v24 }
 0x541   :  { %1965 = vmatprep.subr.bf16.mxu0 %v2190_v27 }
 0x544   :  { %1967 = vmatpush3.bf16.msra.mxu0 %v2190_v27 }
 0x545   :  { %1969 = vmatprep.subr.bf16.mxu0 %v2205_v30 }
 0x548   :  { %1971 = vmatpush3.bf16.msra.mxu0 %v2205_v30 }
 0x549   :  { %1973 = vmatprep.subr.bf16.mxu0 %v2123_v8 }
 0x5fe   :  { %v1678_v45 = vpop.f32.mrb[2].mxu0 }
 0x5ff   :  { %v592_v46 = vpop.f32.mrb[3].mxu0 }
 0x600   :  { %1681 = vmatprep.mubr.msk.f32.mxu1 %vm62_vm2, %v592_v46 }
 0x601   :  { %1682 = vmatmul.mubr.msk.f32.vlgmr.msra.gmra.mrb[10].mxu1 %vm62_vm2, %v1678_v45 }
 0x602   :  { %1720 = vmatpush3.msk.msra.mxu1 %vm192_vm3, %v2215_v31 }
 0x603   :  { %1724 = vmatprep.subr.bf16.mxu1 %v2050_v0 }
 0x6d4   :  { %v1683_v47 = vpop.f32.mrb[10].mxu1 }
 0x6d5   :  { %v2352_v48 = vsub.f32 %v523_v43, %v1683_v47  ;;  %v673_v49 = vpop.f32.mrb[11].mxu1 }
 0x6d6   :  { %v2354_v50 = vsub.f32 %v520_v40, %v673_v49 }
 0x6d7   :  { %v685_v52 = vmul.f32 %v2352_v48, %v2352_v48 }
 0x6d8   :  { %v684_v51 = vmul.f32 %v2354_v50, %v2354_v50 }
 0x6da   :  { %1716 = vmatprep.mubr.f32.mxu0 %v684_v51 }
 0x6db   :  { %1717 = vmatmul.mubr.f32.vlgmr.msra.gmra.mrb[4].mxu0 %v685_v52 }
 0x6dc   :  { %1975 = vmatpush3.bf16.msra.mxu0 %v2123_v8 }
 0x6dd   :  { %1977 = vmatprep.subr.bf16.mxu0 %v2128_v12 }
 0x6e0   :  { %1979 = vmatpush3.bf16.msra.mxu0 %v2128_v12 }
 0x6e1   :  { %1981 = vmatprep.subr.bf16.mxu0 %v2142_v15 }
 0x6e4   :  { %1983 = vmatpush3.bf16.msra.mxu0 %v2142_v15 }
 0x6e5   :  { %1985 = vmatprep.subr.bf16.mxu0 %v2154_v18 }
 0x6e8   :  { %1987 = vmatpush3.bf16.msra.mxu0 %v2154_v18 }
 0x6e9   :  { %1989 = vmatprep.subr.bf16.mxu0 %v2166_v21 }
 0x6ec   :  { %1991 = vmatpush3.bf16.msra.mxu0 %v2166_v21 }
 0x6ed   :  { %1993 = vmatprep.subr.bf16.mxu0 %v2178_v24 }
 0x6f0   :  { %1995 = vmatpush3.bf16.msra.mxu0 %v2178_v24 }
 0x6f1   :  { %1997 = vmatprep.subr.bf16.mxu0 %v2190_v27 }
 0x6f4   :  { %1999 = vmatpush3.bf16.msra.mxu0 %v2190_v27 }
 0x6f5   :  { %2001 = vmatprep.subr.bf16.mxu0 %v2205_v30 }
 0x6f8   :  { %2003 = vmatpush3.bf16.msra.mxu0 %v2205_v30 }
 0x6f9   :  { %1824 = vmatprep.subr.bf16.mxu0 %v2050_v0 }
 0x7ae   :  { %v1718_v55 = vpop.f32.mrb[4].mxu0 }
 0x7af   :  { %v752_v57 = vpop.f32.mrb[5].mxu0 }
 0x7b0   :  { %1721 = vmatprep.mubr.msk.f32.mxu1 %vm62_vm2, %v752_v57 }
 0x7b1   :  { %1722 = vmatmul.mubr.msk.f32.vlgmr.msra.gmra.mrb[16].mxu1 %vm62_vm2, %v1718_v55  ;;  %v1278_v55 = vld [vmem:[%s2553_s7 + $0x18] sm:$0xff] }
 0x7b2   :  { %1725 = vmatpush3.bf16.msra.mxu1 %v884_v56  ;;  %1740 = vmatprep.mubr.msk.bf16.mxu1 %vm2051_vm1, %v2050_v0 }
 0x7b3   :  { %1726 = vmatprep.subr.bf16.mxu1 %v2050_v0 }
 0x7b6   :  { %1727 = vmatpush3.bf16.msra.mxu1 %v885_v60  ;;  %v1294_v60 = vpack.c.bf16 %v1280_v59, %v1279_v58 }
 0x7b7   :  { %1728 = vmatprep.subr.bf16.mxu1 %v2050_v0 }
 0x7ba   :  { %1729 = vmatpush3.bf16.msra.mxu1 %v886_v63  ;;  %v1295_v63 = vpack.c.bf16 %v1282_v62, %v1281_v61 }
 0x7bb   :  { %1730 = vmatprep.subr.bf16.mxu1 %v2050_v0 }
 0x7be   :  { %1731 = vmatpush3.bf16.msra.mxu1 %v887_v3  ;;  %v1296_v3 = vpack.c.bf16 %v1284_v2, %v1283_v1 }
 0x7bf   :  { %1732 = vmatprep.subr.bf16.mxu1 %v2050_v0 }
 0x7c2   :  { %1733 = vmatpush3.bf16.msra.mxu1 %v888_v6  ;;  %v1297_v6 = vpack.c.bf16 %v1286_v5, %v1285_v4 }
 0x7c3   :  { %1734 = vmatprep.subr.bf16.mxu1 %v2050_v0 }
 0x7c6   :  { %1735 = vmatpush3.bf16.msra.mxu1 %v889_v10  ;;  %v1298_v10 = vpack.c.bf16 %v1288_v9, %v1287_v7 }
 0x7c7   :  { %1736 = vmatprep.subr.bf16.mxu1 %v2050_v0 }
 0x7ca   :  { %1737 = vmatpush3.bf16.msra.mxu1 %v890_v14  ;;  %v1299_v14 = vpack.c.bf16 %v1290_v13, %v1289_v11 }
 0x7cb   :  { %1738 = vmatprep.subr.bf16.mxu1 %v2050_v0 }
 0x7ce   :  { %1739 = vmatpush3.bf16.msra.mxu1 %v891_v19 }
 0x7cf   :  { %1779 = vmatprep.subr.msk.mxu1 %vm192_vm3, %v2215_v31 }
 0x884   :  { %v1723_v20 = vpop.f32.mrb[16].mxu1 }
 0x885   :  { %v839_v22 = vadd.f32 1e-05, %v1723_v20  ;;  %v833_v23 = vpop.f32.mrb[17].mxu1 }
 0x886   :  { %v834_v25 = vadd.f32 1e-05, %v833_v23  ;;  %v1380_v23 = vld [vmem:[%s2550_s4 + $0x7] ss:$0 sm:$0xff] }
 0x887   :  { %2042 = vrsqrt.f32 %v839_v22 }
 0x888   :  { %2044 = vrsqrt.f32 %v834_v25 }
 0x891   :  { %v2043_v26 = vpop.eup %2042 }
 0x892   :  { %v2045_v29 = vpop.eup %2044  ;;  %v845_v32 = vmul.f32 %v2043_v26, %v2352_v48 }
 0x893   :  { %v844_v33 = vmul.f32 %v2045_v29, %v2354_v50  ;;  %v1381_v29 = vld [vmem:[%s2550_s4 + $0x8] ss:$0 sm:$0xff] }
 0x894   :  { %v851_v35 = vmul.f32 %v1371_v28, %v845_v32 }
 0x895   :  { %v850_v36 = vmul.f32 %v1371_v28, %v844_v33 }
 0x896   :  { %v857_v37 = vadd.f32 %v1372_v34, %v851_v35 }
 0x897   :  { %v856_v38 = vadd.f32 %v1372_v34, %v850_v36 }
 0x898   :  { %vm859_vm6 = vcmp.ge.f32.partialorder %v857_v37, 0.0  ;;  %v861_v39 = vmul.f32 0.01, %v857_v37 }
 0x899   :  { %vm858_vm7 = vcmp.ge.f32.partialorder %v856_v38, 0.0  ;;  %v860_v40 = vmul.f32 0.01, %v856_v38 }
 0x89a   :  { %v863_v41 = vsel %vm859_vm6, %v857_v37, %v861_v39 }
 0x89b   :  { %v862_v42 = vsel %vm858_vm7, %v856_v38, %v860_v40  ;;  %v1382_v40 = vld [vmem:[%s2554_s8] ss:$0 sm:$0xff] }
 0x89c   :  { %v883_v43 = vpack.c.bf16 %v863_v41, %v862_v42 }
 0x89e   :  { %1741 = vmatmul.mubr.bf16.vlgmr.msra.gmra.mrb[20].mxu1 %v883_v43 }
 0x89f   :  { %1780 = vmatpush3.msk.msra.mxu1 %vm192_vm3, %v2215_v31 }
 0x8a0   :  { %2005 = vmatprep.subr.bf16.mxu1 %v2123_v8 }
 0x971   :  { %v930_v45 = vpop.f32.mrb[20].mxu1 }
 0x972   :  { %v931_v46 = vadd.f32 %v1373_v44, %v930_v45  ;;  %v1742_v47 = vpop.f32.mrb[21].mxu1 }
 0x973   :  { %v933_v48 = vpop.f32.mrb[22].mxu1 }
 0x974   :  { %v934_v49 = vadd.f32 %v1373_v44, %v933_v48  ;;  %v1743_v50 = vpop.f32.mrb[23].mxu1  ;;  %1776 = vmatprep.mubr.f32.mxu0 %v931_v46 }
 0x976   :  { %1777 = vmatmul.mubr.f32.vlgmr.msra.gmra.mrb[6].mxu0 %v934_v49 }
 0x977   :  { %1840 = vmatprep.mubr.msk.bf16.mxu0 %vm2051_vm1, %v2050_v0 }
 0xa49   :  { %v1778_v51 = vpop.f32.mrb[6].mxu0 }
 0xa4a   :  { %v1003_v52 = vpop.f32.mrb[7].mxu0 }
 0xa4b   :  { %1781 = vmatprep.mubr.msk.f32.mxu1 %vm62_vm2, %v1003_v52 }
 0xa4c   :  { %1782 = vmatmul.mubr.msk.f32.vlgmr.msra.gmra.mrb[18].mxu1 %vm62_vm2, %v1778_v51 }
 0xa4d   :  { %2007 = vmatpush3.bf16.msra.mxu1 %v2123_v8 }
 0xa4e   :  { %2009 = vmatprep.subr.bf16.mxu1 %v2128_v12 }
 0xa51   :  { %2011 = vmatpush3.bf16.msra.mxu1 %v2128_v12 }
 0xa52   :  { %2013 = vmatprep.subr.bf16.mxu1 %v2142_v15 }
 0xa55   :  { %2015 = vmatpush3.bf16.msra.mxu1 %v2142_v15 }
 0xa56   :  { %2017 = vmatprep.subr.bf16.mxu1 %v2154_v18 }
 0xa59   :  { %2019 = vmatpush3.bf16.msra.mxu1 %v2154_v18 }
 0xa5a   :  { %2021 = vmatprep.subr.bf16.mxu1 %v2166_v21 }
 0xa5d   :  { %2023 = vmatpush3.bf16.msra.mxu1 %v2166_v21 }
 0xa5e   :  { %2025 = vmatprep.subr.bf16.mxu1 %v2178_v24 }
 0xa61   :  { %2027 = vmatpush3.bf16.msra.mxu1 %v2178_v24  ;;  %v1275_v24 = vld [vmem:[%s2553_s7] sm:$0xff] }
 0xa62   :  { %2029 = vmatprep.subr.bf16.mxu1 %v2190_v27 }
 0xa65   :  { %2031 = vmatpush3.bf16.msra.mxu1 %v2190_v27  ;;  %v1276_v27 = vld [vmem:[%s2553_s7 + $0x8] sm:$0xff] }
 0xa66   :  { %2033 = vmatprep.subr.bf16.mxu1 %v2205_v30  ;;  %v1292_v54 = vpack.c.bf16 %v1276_v27, %v1275_v24 }
 0xa68   :  { %1825 = vmatpush3.bf16.msra.mxu0 %v1292_v54 }
 0xa69   :  { %2035 = vmatpush3.bf16.msra.mxu1 %v2205_v30  ;;  %v1277_v30 = vld [vmem:[%s2553_s7 + $0x10] sm:$0xff]  ;;  %1826 = vmatprep.subr.bf16.mxu0 %v2050_v0 }
 0xa6a   :  { %1819 = vmatprep.subr.msk.mxu1 %vm192_vm3, %v2215_v31  ;;  %v1293_v56 = vpack.c.bf16 %v1278_v55, %v1277_v30 }
 0xa6c   :  { %1827 = vmatpush3.bf16.msra.mxu0 %v1293_v56 }
 0xa6d   :  { %1828 = vmatprep.subr.bf16.mxu0 %v2050_v0 }
 0xa70   :  { %1829 = vmatpush3.bf16.msra.mxu0 %v1294_v60 }
 0xa71   :  { %1830 = vmatprep.subr.bf16.mxu0 %v2050_v0 }
 0xa74   :  { %1831 = vmatpush3.bf16.msra.mxu0 %v1295_v63 }
 0xa75   :  { %1832 = vmatprep.subr.bf16.mxu0 %v2050_v0 }
 0xa78   :  { %1833 = vmatpush3.bf16.msra.mxu0 %v1296_v3 }
 0xa79   :  { %1834 = vmatprep.subr.bf16.mxu0 %v2050_v0 }
 0xa7c   :  { %1835 = vmatpush3.bf16.msra.mxu0 %v1297_v6 }
 0xa7d   :  { %1836 = vmatprep.subr.bf16.mxu0 %v2050_v0 }
 0xa80   :  { %1837 = vmatpush3.bf16.msra.mxu0 %v1298_v10 }
 0xa81   :  { %1838 = vmatprep.subr.bf16.mxu0 %v2050_v0 }
 0xa84   :  { %1839 = vmatpush3.bf16.msra.mxu0 %v1299_v14 }
 0xb1f   :  { %v1783_v8 = vpop.f32.mrb[18].mxu1 }
 0xb20   :  { %v1094_v12 = vsub.f32 %v934_v49, %v1783_v8  ;;  %v1084_v15 = vpop.f32.mrb[19].mxu1 }
 0xb21   :  { %v1093_v18 = vsub.f32 %v931_v46, %v1084_v15 }
 0xb22   :  { %v1096_v53 = vmul.f32 %v1094_v12, %v1094_v12 }
 0xb23   :  { %v1095_v21 = vmul.f32 %v1093_v18, %v1093_v18 }
 0xb25   :  { %1816 = vmatprep.mubr.f32.mxu1 %v1095_v21 }
 0xb26   :  { %1817 = vmatmul.mubr.f32.vlgmr.msra.gmra.mrb[24].mxu1 %v1096_v53 }
 0xb27   :  { %1820 = vmatpush3.msk.msra.mxu1 %vm192_vm3, %v2215_v31 }
 0xbf9   :  { %v1818_v31 = vpop.f32.mrb[24].mxu1 }
 0xbfa   :  { %v1163_v57 = vpop.f32.mrb[25].mxu1 }
 0xbfb   :  { %1821 = vmatprep.mubr.msk.f32.mxu1 %vm62_vm2, %v1163_v57 }
 0xbfc   :  { %1822 = vmatmul.mubr.msk.f32.vlgmr.msra.gmra.mrb[26].mxu1 %vm62_vm2, %v1818_v31 }
 0xccf   :  { %v1823_v16 = vpop.f32.mrb[26].mxu1 }
 0xcd0   :  { %v1250_v17 = vadd.f32 1e-05, %v1823_v16  ;;  %v1244_v19 = vpop.f32.mrb[27].mxu1 }
 0xcd1   :  { %v1245_v20 = vadd.f32 1e-05, %v1244_v19 }
 0xcd2   :  { %2046 = vrsqrt.f32 %v1250_v17 }
 0xcd3   :  { %2048 = vrsqrt.f32 %v1245_v20 }
 0xcdc   :  { %v2047_v22 = vpop.eup %2046 }
 0xcdd   :  { %v2049_v25 = vpop.eup %2048  ;;  %v1256_v26 = vmul.f32 %v2047_v22, %v1094_v12 }
 0xcde   :  { %v1255_v28 = vmul.f32 %v2049_v25, %v1093_v18 }
 0xcdf   :  { %v1262_v0 = vmul.f32 %v1380_v23, %v1256_v26 }
 0xce0   :  { %v1261_v32 = vmul.f32 %v1380_v23, %v1255_v28 }
 0xce1   :  { %v1268_v33 = vadd.f32 %v1381_v29, %v1262_v0 }
 0xce2   :  { %v1267_v34 = vadd.f32 %v1381_v29, %v1261_v32 }
 0xce3   :  { %vm1270_vm8 = vcmp.ge.f32.partialorder %v1268_v33, 0.0  ;;  %v1272_v35 = vmul.f32 0.01, %v1268_v33 }
 0xce4   :  { %vm1269_vm9 = vcmp.ge.f32.partialorder %v1267_v34, 0.0  ;;  %v1271_v36 = vmul.f32 0.01, %v1267_v34 }
 0xce5   :  { %v1274_v37 = vsel %vm1270_vm8, %v1268_v33, %v1272_v35 }
 0xce6   :  { %v1273_v38 = vsel %vm1269_vm9, %v1267_v34, %v1271_v36 }
 0xce7   :  { %v1291_v39 = vpack.c.bf16 %v1274_v37, %v1273_v38 }
 0xce9   :  { %1841 = vmatmul.mubr.bf16.vlgmr.msra.gmra.mrb[8].mxu0 %v1291_v39 }
 0xdbc   :  { %v1341_v41 = vpop.f32.mrb[8].mxu0 }
 0xdbd   :  { %v1342_v42 = vadd.f32 %v1382_v40, %v1341_v41  ;;  %v1842_v43 = vpop.f32.mrb[9].mxu0 }
 0xdbe   :  { %v1344_v44 = vpop.f32.mrb[10].mxu0 }
 0xdbf   :  { %1348 = vst [vmem:[%s2555_s9] sm:$0xff] %v1342_v42  ;;  %v1345_v45 = vadd.f32 %v1382_v40, %v1344_v44  ;;  %v1843_v46 = vpop.f32.mrb[11].mxu0 }
 0xdc1   :  { %1349 = vst [vmem:[%s2555_s9 + $0x8] sm:$0xff] %v1345_v45 }

// kernel: ddsp_vae_forward.9
= control target key start
LH: loop header
LB: loop body
LE: loop exit
PB: predicated region body
PF: predicated region fallthrough
CT: control target
= control target key end

     0   :  { %vm18_vm0 = vcmask 261120   ;;  %v1149_v0 = vmov 0.0|0.0   ;;  %vm1150_vm1 = vmmov 0   ;;  %v1151_v4 = vmov 0.0   ;;  %s1152_s21 = smov 64   ;;  %s1154_s24 = smov 32   ;;  %s1351_s1 = inlined_call_operand.vmem [shape: f32[32,96], index: 1, kind: input, shape index: {}]   ;;  %s1352_s2 = inlined_call_operand.vmem [shape: f32[1,96], index: 2, kind: input, shape index: {}]   ;;  %s1353_s0 = inlined_call_operand.vmem [shape: f32[8,8,128], index: 0, kind: input, shape index: {}]   ;;  %s1354_s3 = inlined_call_operand.vmem [shape: f32[8,8,32], index: 3, kind: output, shape index: {}]  }
   0x1   :  { %1047 = vmatprep.subr.bf16.mxu0 %v1149_v0  ;;  %v20_v1 = vld [vmem:[%s1351_s1] sm:$0xff]  ;;  %v21_v2 = vld [vmem:[%s1351_s1 + $0x8] sm:$0xff]  ;;  %v22_v3 = vld [vmem:[%s1351_s1 + $0x10] sm:$0xff]  ;;  %967 = vmatprep.mubr.msk.f32.mxu0 %vm1150_vm1, %v1151_v4  ;;  %19 = vst.msk [vmem:[#allocation2] sm:$0xff] %vm18_vm0, %v1151_v4 }
   0x2   :  { %v1189_v5 = vpack.c.bf16 %v21_v2, %v20_v1  ;;  %v23_v6 = vld [vmem:[%s1351_s1 + $0x18] sm:$0xff]  ;;  %1053 = vmatprep.subr.bf16.mxu1 %v1149_v0  ;;  %978 = vmatprep.mubr.msk.f32.mxu1 %vm1150_vm1, %v1151_v4  ;;  %v1217_v9 = vld [vmem:[%s1352_s2] ss:$0 sm:$0xff]  ;;  %s1153_s2 = smov 96   ;;  %v891_v34 = vld [vmem:[%s1353_s0 + $0x8] sm:$0xff] }
   0x3   :  { %v1198_v7 = vpack.c.bf16 %v23_v6, %v22_v3  ;;  %v26_v13 = vld [vmem:[%s1353_s0] sm:$0xff]  ;;  %v895_v54 = vld [vmem:[%s1353_s0 + $0x10] sm:$0xff] }
   0x4   :  { %1049 = vmatpush3.bf16.msra.mxu0 %v1189_v5  ;;  %1055 = vmatpush3.bf16.msra.mxu1 %v1189_v5 }
   0x5   :  { %1050 = vmatprep.subr.bf16.mxu0 %v1149_v0  ;;  %1056 = vmatprep.subr.bf16.mxu1 %v1149_v0 }
   0x8   :  { %1052 = vmatpush3.bf16.msra.mxu0 %v1198_v7  ;;  %v25_v8 = vld [vmem:[#allocation2] sm:$0xff]  ;;  %1058 = vmatpush3.bf16.msra.mxu1 %v1198_v7 }
   0x9   :  { %1059 = vmatprep.subr.bf16.mxu0 %v1149_v0  ;;  %1065 = vmatprep.subr.bf16.mxu1 %v1149_v0 }
   0xb   :  { %968 = vmatmul.mubr.msk.f32.vlgmr.msra.gmra.mrb[0].mxu0 %vm18_vm0, %v25_v8 }
   0xc   :  { %1061 = vmatpush3.bf16.msra.mxu0 %v1189_v5  ;;  %989 = vmatprep.mubr.msk.f32.mxu0 %vm1150_vm1, %v1151_v4 }
   0xd   :  { %1062 = vmatprep.subr.bf16.mxu0 %v1149_v0 }
  0x10   :  { %1064 = vmatpush3.bf16.msra.mxu0 %v1198_v7 }
  0x11   :  { %1071 = vmatprep.subr.bf16.mxu0 %v1149_v0 }
  0xde   :  { %v103_v10 = vpop.f32.mrb[0].mxu0 }
  0xdf   :  { %v104_v11 = vadd.f32 %v1217_v9, %v103_v10  ;;  %v969_v12 = vpop.f32.mrb[1].mxu0 }
  0xe1   :  { %115 = vrot.lane.b32.xlu0 %v104_v11, %s1152_s21  ;;  %v107_v14 = vadd.f32 %v104_v11, %v26_v13 }
  0xe3   :  { %v890_v15 = vmul.f32 -1.442695, %v107_v14 }
  0xe5   :  { %1101 = vpow2.f32 %v890_v15  ;;  %v899_v15 = vld [vmem:[%s1353_s0 + $0x18] sm:$0xff] }
  0xef   :  { %v1102_v16 = vpop.eup %1101 }
  0xf0   :  { %v111_v17 = vadd.f32 1.0, %v1102_v16 }
  0xf2   :  { %1103 = vrcp.f32 %v111_v17 }
  0xfc   :  { %v1104_v18 = vpop.eup %1103 }
  0xfd   :  { %v125_v25 = vsub.f32 1.0, %v1104_v18 }
 0x153   :  { %v116_v19 = vpop.permute.xlu0 %115 }
 0x154   :  { %v118_v20 = vmul.f32 %v1104_v18, %v116_v19 }
 0x156   :  { %120 = vrot.lane.b32.xlu0 %v118_v20, %s1152_s21 }
 0x1c8   :  { %v121_v21 = vpop.permute.xlu0 %120 }
 0x1c9   :  { %v123_v22 = vadd.f32 %v121_v21, %v26_v13 }
 0x1cb   :  { %1105 = vtanh.f32 %v123_v22 }
 0x1d5   :  { %v1106_v23 = vpop.eup %1105 }
 0x1d6   :  { %127 = vrot.lane.b32.xlu1 %v1106_v23, %s1153_s2 }
 0x1da   :  { %131 = vrot.lane.b32.xlu1 %v25_v8, %s1154_s24 }
 0x248   :  { %v128_v24 = vpop.permute.xlu1 %127 }
 0x249   :  { %v130_v27 = vmul.f32 %v128_v24, %v125_v25 }
 0x24c   :  { %v132_v26 = vpop.permute.xlu1 %131 }
 0x24d   :  { %v134_v28 = vmul.f32 %v1104_v18, %v132_v26 }
 0x24f   :  { %v135_v29 = vadd.f32 %v134_v28, %v130_v27 }
 0x251   :  { %137 = vrot.lane.b32.xlu0 %v135_v29, %s1153_s2 }
 0x2c3   :  { %v138_v30 = vpop.permute.xlu0 %137 }
 0x2c4   :  { %140 = vst.msk [vmem:[%s1354_s3] sm:$0xff] %vm18_vm0, %v138_v30  ;;  %979 = vmatmul.mubr.msk.f32.vlgmr.msra.gmra.mrb[0].mxu1 %vm18_vm0, %v138_v30 }
 0x2c5   :  { %1067 = vmatpush3.bf16.msra.mxu1 %v1189_v5  ;;  %1000 = vmatprep.mubr.msk.f32.mxu1 %vm1150_vm1, %v1151_v4 }
 0x2c6   :  { %1068 = vmatprep.subr.bf16.mxu1 %v1149_v0 }
 0x2c9   :  { %1070 = vmatpush3.bf16.msra.mxu1 %v1198_v7 }
 0x2ca   :  { %1077 = vmatprep.subr.bf16.mxu1 %v1149_v0 }
 0x397   :  { %v211_v31 = vpop.f32.mrb[0].mxu1 }
 0x398   :  { %v212_v32 = vadd.f32 %v1217_v9, %v211_v31  ;;  %v980_v33 = vpop.f32.mrb[1].mxu1 }
 0x39a   :  { %223 = vrot.lane.b32.xlu1 %v212_v32, %s1152_s21  ;;  %v215_v35 = vadd.f32 %v891_v34, %v212_v32 }
 0x39c   :  { %v893_v36 = vmul.f32 -1.442695, %v215_v35  ;;  %v903_v35 = vld [vmem:[%s1353_s0 + $0x20] sm:$0xff] }
 0x39e   :  { %1107 = vpow2.f32 %v893_v36 }
 0x3a8   :  { %v1108_v37 = vpop.eup %1107 }
 0x3a9   :  { %v219_v38 = vadd.f32 1.0, %v1108_v37 }
 0x3ab   :  { %1109 = vrcp.f32 %v219_v38 }
 0x3b5   :  { %v1110_v39 = vpop.eup %1109 }
 0x3b6   :  { %v233_v45 = vsub.f32 1.0, %v1110_v39  ;;  %v239_v47 = vmul.f32 %v1110_v39, %v135_v29 }
 0x40c   :  { %v224_v40 = vpop.permute.xlu1 %223 }
 0x40d   :  { %v226_v41 = vmul.f32 %v1110_v39, %v224_v40 }
 0x40f   :  { %228 = vrot.lane.b32.xlu0 %v226_v41, %s1152_s21 }
 0x481   :  { %v229_v42 = vpop.permute.xlu0 %228 }
 0x482   :  { %v231_v43 = vadd.f32 %v891_v34, %v229_v42 }
 0x484   :  { %1111 = vtanh.f32 %v231_v43 }
 0x48e   :  { %v1112_v44 = vpop.eup %1111 }
 0x48f   :  { %235 = vrot.lane.b32.xlu1 %v1112_v44, %s1153_s2 }
 0x501   :  { %v236_v46 = vpop.permute.xlu1 %235 }
 0x502   :  { %v238_v48 = vmul.f32 %v236_v46, %v233_v45 }
 0x504   :  { %v240_v49 = vadd.f32 %v239_v47, %v238_v48 }
 0x506   :  { %242 = vrot.lane.b32.xlu0 %v240_v49, %s1153_s2 }
 0x578   :  { %v243_v50 = vpop.permute.xlu0 %242 }
 0x579   :  { %894 = vst.msk [vmem:[%s1354_s3 + $0x8] sm:$0xff] %vm18_vm0, %v243_v50  ;;  %990 = vmatmul.mubr.msk.f32.vlgmr.msra.gmra.mrb[2].mxu0 %vm18_vm0, %v243_v50 }
 0x57a   :  { %1073 = vmatpush3.bf16.msra.mxu0 %v1189_v5  ;;  %1011 = vmatprep.mubr.msk.f32.mxu0 %vm1150_vm1, %v1151_v4 }
 0x57b   :  { %1074 = vmatprep.subr.bf16.mxu0 %v1149_v0 }
 0x57e   :  { %1076 = vmatpush3.bf16.msra.mxu0 %v1198_v7 }
 0x57f   :  { %1083 = vmatprep.subr.bf16.mxu0 %v1149_v0 }
 0x64c   :  { %v317_v51 = vpop.f32.mrb[2].mxu0 }
 0x64d   :  { %v318_v52 = vadd.f32 %v1217_v9, %v317_v51  ;;  %v991_v53 = vpop.f32.mrb[3].mxu0 }
 0x64f   :  { %329 = vrot.lane.b32.xlu1 %v318_v52, %s1152_s21  ;;  %v321_v55 = vadd.f32 %v895_v54, %v318_v52 }
 0x651   :  { %v897_v56 = vmul.f32 -1.442695, %v321_v55  ;;  %v907_v55 = vld [vmem:[%s1353_s0 + $0x28] sm:$0xff] }
 0x653   :  { %1113 = vpow2.f32 %v897_v56 }
 0x65d   :  { %v1114_v57 = vpop.eup %1113 }
 0x65e   :  { %v325_v58 = vadd.f32 1.0, %v1114_v57 }
 0x660   :  { %1115 = vrcp.f32 %v325_v58 }
 0x66a   :  { %v1116_v59 = vpop.eup %1115 }
 0x66b   :  { %v339_v2 = vsub.f32 1.0, %v1116_v59  ;;  %v345_v6 = vmul.f32 %v1116_v59, %v240_v49 }
 0x6c1   :  { %v330_v60 = vpop.permute.xlu1 %329 }
 0x6c2   :  { %v332_v61 = vmul.f32 %v1116_v59, %v330_v60 }
 0x6c4   :  { %334 = vrot.lane.b32.xlu0 %v332_v61, %s1152_s21 }
 0x736   :  { %v335_v62 = vpop.permute.xlu0 %334 }
 0x737   :  { %v337_v63 = vadd.f32 %v895_v54, %v335_v62 }
 0x739   :  { %1117 = vtanh.f32 %v337_v63 }
 0x743   :  { %v1118_v1 = vpop.eup %1117 }
 0x744   :  { %341 = vrot.lane.b32.xlu1 %v1118_v1, %s1153_s2 }
 0x7b6   :  { %v342_v3 = vpop.permute.xlu1 %341 }
 0x7b7   :  { %v344_v8 = vmul.f32 %v342_v3, %v339_v2 }
 0x7b9   :  { %v346_v10 = vadd.f32 %v345_v6, %v344_v8 }
 0x7bb   :  { %348 = vrot.lane.b32.xlu0 %v346_v10, %s1153_s2 }
 0x82d   :  { %v349_v11 = vpop.permute.xlu0 %348 }
 0x82e   :  { %898 = vst.msk [vmem:[%s1354_s3 + $0x10] sm:$0xff] %vm18_vm0, %v349_v11  ;;  %1001 = vmatmul.mubr.msk.f32.vlgmr.msra.gmra.mrb[2].mxu1 %vm18_vm0, %v349_v11 }
 0x82f   :  { %1079 = vmatpush3.bf16.msra.mxu1 %v1189_v5  ;;  %1022 = vmatprep.mubr.msk.f32.mxu1 %vm1150_vm1, %v1151_v4 }
 0x830   :  { %1080 = vmatprep.subr.bf16.mxu1 %v1149_v0 }
 0x833   :  { %1082 = vmatpush3.bf16.msra.mxu1 %v1198_v7 }
 0x834   :  { %1089 = vmatprep.subr.bf16.mxu1 %v1149_v0 }
 0x901   :  { %v423_v12 = vpop.f32.mrb[2].mxu1 }
 0x902   :  { %v424_v13 = vadd.f32 %v1217_v9, %v423_v12  ;;  %v1002_v14 = vpop.f32.mrb[3].mxu1  ;;  %v911_v12 = vld [vmem:[%s1353_s0 + $0x30] sm:$0xff] }
 0x904   :  { %435 = vrot.lane.b32.xlu1 %v424_v13, %s1152_s21  ;;  %v427_v16 = vadd.f32 %v899_v15, %v424_v13 }
 0x906   :  { %v901_v17 = vmul.f32 -1.442695, %v427_v16 }
 0x908   :  { %1119 = vpow2.f32 %v901_v17 }
 0x912   :  { %v1120_v18 = vpop.eup %1119 }
 0x913   :  { %v431_v19 = vadd.f32 1.0, %v1120_v18 }
 0x915   :  { %1121 = vrcp.f32 %v431_v19 }
 0x91f   :  { %v1122_v20 = vpop.eup %1121 }
 0x920   :  { %v445_v26 = vsub.f32 1.0, %v1122_v20  ;;  %v451_v28 = vmul.f32 %v1122_v20, %v346_v10 }
 0x976   :  { %v436_v21 = vpop.permute.xlu1 %435 }
 0x977   :  { %v438_v22 = vmul.f32 %v1122_v20, %v436_v21 }
 0x979   :  { %440 = vrot.lane.b32.xlu0 %v438_v22, %s1152_s21 }
 0x9eb   :  { %v441_v23 = vpop.permute.xlu0 %440 }
 0x9ec   :  { %v443_v24 = vadd.f32 %v899_v15, %v441_v23 }
 0x9ee   :  { %1123 = vtanh.f32 %v443_v24 }
 0x9f8   :  { %v1124_v25 = vpop.eup %1123 }
 0x9f9   :  { %447 = vrot.lane.b32.xlu1 %v1124_v25, %s1153_s2 }
 0xa6b   :  { %v448_v27 = vpop.permute.xlu1 %447 }
 0xa6c   :  { %v450_v29 = vmul.f32 %v448_v27, %v445_v26 }
 0xa6e   :  { %v452_v30 = vadd.f32 %v451_v28, %v450_v29 }
 0xa70   :  { %454 = vrot.lane.b32.xlu0 %v452_v30, %s1153_s2 }
 0xae2   :  { %v455_v31 = vpop.permute.xlu0 %454 }
 0xae3   :  { %902 = vst.msk [vmem:[%s1354_s3 + $0x18] sm:$0xff] %vm18_vm0, %v455_v31  ;;  %1012 = vmatmul.mubr.msk.f32.vlgmr.msra.gmra.mrb[4].mxu0 %vm18_vm0, %v455_v31 }
 0xae4   :  { %1085 = vmatpush3.bf16.msra.mxu0 %v1189_v5  ;;  %1033 = vmatprep.mubr.msk.f32.mxu0 %vm1150_vm1, %v1151_v4 }
 0xae5   :  { %1086 = vmatprep.subr.bf16.mxu0 %v1149_v0 }
 0xae8   :  { %1088 = vmatpush3.bf16.msra.mxu0 %v1198_v7 }
 0xbb6   :  { %v529_v32 = vpop.f32.mrb[4].mxu0 }
 0xbb7   :  { %v530_v33 = vadd.f32 %v1217_v9, %v529_v32  ;;  %v1013_v34 = vpop.f32.mrb[5].mxu0  ;;  %v915_v32 = vld [vmem:[%s1353_s0 + $0x38] sm:$0xff] }
 0xbb9   :  { %541 = vrot.lane.b32.xlu1 %v530_v33, %s1152_s21  ;;  %v533_v36 = vadd.f32 %v903_v35, %v530_v33 }
 0xbbb   :  { %v905_v37 = vmul.f32 -1.442695, %v533_v36 }
 0xbbd   :  { %1125 = vpow2.f32 %v905_v37 }
 0xbc7   :  { %v1126_v38 = vpop.eup %1125 }
 0xbc8   :  { %v537_v39 = vadd.f32 1.0, %v1126_v38 }
 0xbca   :  { %1127 = vrcp.f32 %v537_v39 }
 0xbd4   :  { %v1128_v40 = vpop.eup %1127 }
 0xbd5   :  { %v551_v46 = vsub.f32 1.0, %v1128_v40  ;;  %v557_v48 = vmul.f32 %v1128_v40, %v452_v30 }
 0xc2b   :  { %v542_v41 = vpop.permute.xlu1 %541 }
 0xc2c   :  { %v544_v42 = vmul.f32 %v1128_v40, %v542_v41 }
 0xc2e   :  { %546 = vrot.lane.b32.xlu0 %v544_v42, %s1152_s21 }
 0xca0   :  { %v547_v43 = vpop.permute.xlu0 %546 }
 0xca1   :  { %v549_v44 = vadd.f32 %v903_v35, %v547_v43 }
 0xca3   :  { %1129 = vtanh.f32 %v549_v44 }
 0xcad   :  { %v1130_v45 = vpop.eup %1129 }
 0xcae   :  { %553 = vrot.lane.b32.xlu1 %v1130_v45, %s1153_s2 }
 0xd20   :  { %v554_v47 = vpop.permute.xlu1 %553 }
 0xd21   :  { %v556_v49 = vmul.f32 %v554_v47, %v551_v46 }
 0xd23   :  { %v558_v50 = vadd.f32 %v557_v48, %v556_v49 }
 0xd25   :  { %560 = vrot.lane.b32.xlu0 %v558_v50, %s1153_s2 }
 0xd97   :  { %v561_v51 = vpop.permute.xlu0 %560 }
 0xd98   :  { %906 = vst.msk [vmem:[%s1354_s3 + $0x20] sm:$0xff] %vm18_vm0, %v561_v51  ;;  %1023 = vmatmul.mubr.msk.f32.vlgmr.msra.gmra.mrb[4].mxu1 %vm18_vm0, %v561_v51 }
 0xd99   :  { %1091 = vmatpush3.bf16.msra.mxu1 %v1189_v5  ;;  %1044 = vmatprep.mubr.msk.f32.mxu1 %vm1150_vm1, %v1151_v4 }
 0xd9a   :  { %1092 = vmatprep.subr.bf16.mxu1 %v1149_v0 }
 0xd9d   :  { %1094 = vmatpush3.bf16.msra.mxu1 %v1198_v7 }
 0xe6b   :  { %v635_v52 = vpop.f32.mrb[4].mxu1 }
 0xe6c   :  { %v636_v53 = vadd.f32 %v1217_v9, %v635_v52  ;;  %v1024_v54 = vpop.f32.mrb[5].mxu1 }
 0xe6e   :  { %647 = vrot.lane.b32.xlu1 %v636_v53, %s1152_s21  ;;  %v639_v56 = vadd.f32 %v907_v55, %v636_v53 }
 0xe70   :  { %v909_v57 = vmul.f32 -1.442695, %v639_v56 }
 0xe72   :  { %1131 = vpow2.f32 %v909_v57 }
 0xe7c   :  { %v1132_v5 = vpop.eup %1131 }
 0xe7d   :  { %v643_v58 = vadd.f32 1.0, %v1132_v5 }
 0xe7f   :  { %1133 = vrcp.f32 %v643_v58 }
 0xe89   :  { %v1134_v4 = vpop.eup %1133 }
 0xe8a   :  { %v657_v62 = vsub.f32 1.0, %v1134_v4  ;;  %v663_v1 = vmul.f32 %v1134_v4, %v558_v50 }
 0xee0   :  { %v648_v0 = vpop.permute.xlu1 %647 }
 0xee1   :  { %v650_v59 = vmul.f32 %v1134_v4, %v648_v0 }
 0xee3   :  { %652 = vrot.lane.b32.xlu0 %v650_v59, %s1152_s21 }
 0xf55   :  { %v653_v7 = vpop.permute.xlu0 %652 }
 0xf56   :  { %v655_v60 = vadd.f32 %v907_v55, %v653_v7 }
 0xf58   :  { %1135 = vtanh.f32 %v655_v60 }
 0xf62   :  { %v1136_v61 = vpop.eup %1135 }
 0xf63   :  { %659 = vrot.lane.b32.xlu1 %v1136_v61, %s1153_s2 }
 0xfd5   :  { %v660_v63 = vpop.permute.xlu1 %659 }
 0xfd6   :  { %v662_v2 = vmul.f32 %v660_v63, %v657_v62 }
 0xfd8   :  { %v664_v3 = vadd.f32 %v663_v1, %v662_v2 }
 0xfda   :  { %666 = vrot.lane.b32.xlu0 %v664_v3, %s1153_s2 }
0x104c   :  { %v667_v6 = vpop.permute.xlu0 %666 }
0x104d   :  { %910 = vst.msk [vmem:[%s1354_s3 + $0x28] sm:$0xff] %vm18_vm0, %v667_v6  ;;  %1034 = vmatmul.mubr.msk.f32.vlgmr.msra.gmra.mrb[6].mxu0 %vm18_vm0, %v667_v6 }
0x1120   :  { %v741_v8 = vpop.f32.mrb[6].mxu0 }
0x1121   :  { %v742_v10 = vadd.f32 %v1217_v9, %v741_v8  ;;  %v1035_v11 = vpop.f32.mrb[7].mxu0 }
0x1123   :  { %753 = vrot.lane.b32.xlu1 %v742_v10, %s1152_s21  ;;  %v745_v13 = vadd.f32 %v911_v12, %v742_v10 }
0x1125   :  { %v913_v14 = vmul.f32 -1.442695, %v745_v13 }
0x1127   :  { %1137 = vpow2.f32 %v913_v14 }
0x1131   :  { %v1138_v15 = vpop.eup %1137 }
0x1132   :  { %v749_v16 = vadd.f32 1.0, %v1138_v15 }
0x1134   :  { %1139 = vrcp.f32 %v749_v16 }
0x113e   :  { %v1140_v17 = vpop.eup %1139 }
0x113f   :  { %v763_v23 = vsub.f32 1.0, %v1140_v17  ;;  %v769_v25 = vmul.f32 %v1140_v17, %v664_v3 }
0x1195   :  { %v754_v18 = vpop.permute.xlu1 %753 }
0x1196   :  { %v756_v19 = vmul.f32 %v1140_v17, %v754_v18 }
0x1198   :  { %758 = vrot.lane.b32.xlu0 %v756_v19, %s1152_s21 }
0x120a   :  { %v759_v20 = vpop.permute.xlu0 %758 }
0x120b   :  { %v761_v21 = vadd.f32 %v911_v12, %v759_v20 }
0x120d   :  { %1141 = vtanh.f32 %v761_v21 }
0x1217   :  { %v1142_v22 = vpop.eup %1141 }
0x1218   :  { %765 = vrot.lane.b32.xlu1 %v1142_v22, %s1153_s2 }
0x128a   :  { %v766_v24 = vpop.permute.xlu1 %765 }
0x128b   :  { %v768_v26 = vmul.f32 %v766_v24, %v763_v23 }
0x128d   :  { %v770_v27 = vadd.f32 %v769_v25, %v768_v26 }
0x128f   :  { %772 = vrot.lane.b32.xlu0 %v770_v27, %s1153_s2 }
0x1301   :  { %v773_v28 = vpop.permute.xlu0 %772 }
0x1302   :  { %914 = vst.msk [vmem:[%s1354_s3 + $0x30] sm:$0xff] %vm18_vm0, %v773_v28  ;;  %1045 = vmatmul.mubr.msk.f32.vlgmr.msra.gmra.mrb[6].mxu1 %vm18_vm0, %v773_v28 }
0x13d5   :  { %v847_v29 = vpop.f32.mrb[6].mxu1 }
0x13d6   :  { %v848_v30 = vadd.f32 %v1217_v9, %v847_v29  ;;  %v1046_v31 = vpop.f32.mrb[7].mxu1 }
0x13d8   :  { %859 = vrot.lane.b32.xlu1 %v848_v30, %s1152_s21  ;;  %v851_v33 = vadd.f32 %v915_v32, %v848_v30 }
0x13da   :  { %v917_v34 = vmul.f32 -1.442695, %v851_v33 }
0x13dc   :  { %1143 = vpow2.f32 %v917_v34 }
0x13e6   :  { %v1144_v35 = vpop.eup %1143 }
0x13e7   :  { %v855_v36 = vadd.f32 1.0, %v1144_v35 }
0x13e9   :  { %1145 = vrcp.f32 %v855_v36 }
0x13f3   :  { %v1146_v37 = vpop.eup %1145 }
0x13f4   :  { %v869_v42 = vsub.f32 1.0, %v1146_v37  ;;  %v875_v44 = vmul.f32 %v1146_v37, %v770_v27 }
0x144a   :  { %v860_v38 = vpop.permute.xlu1 %859 }
0x144b   :  { %v862_v39 = vmul.f32 %v1146_v37, %v860_v38 }
0x144d   :  { %864 = vrot.lane.b32.xlu0 %v862_v39, %s1152_s21 }
0x14bf   :  { %v865_v40 = vpop.permute.xlu0 %864 }
0x14c0   :  { %v867_v9 = vadd.f32 %v915_v32, %v865_v40 }
0x14c2   :  { %1147 = vtanh.f32 %v867_v9 }
0x14cc   :  { %v1148_v41 = vpop.eup %1147 }
0x14cd   :  { %871 = vrot.lane.b32.xlu1 %v1148_v41, %s1153_s2 }
0x153f   :  { %v872_v43 = vpop.permute.xlu1 %871 }
0x1540   :  { %v874_v45 = vmul.f32 %v872_v43, %v869_v42 }
0x1542   :  { %v876_v46 = vadd.f32 %v875_v44, %v874_v45 }
0x1544   :  { %878 = vrot.lane.b32.xlu0 %v876_v46, %s1153_s2 }
0x15b6   :  { %v879_v47 = vpop.permute.xlu0 %878 }
0x15b7   :  { %918 = vst.msk [vmem:[%s1354_s3 + $0x38] sm:$0xff] %vm18_vm0, %v879_v47  ;;  %883 = vst.msk [vmem:[#allocation2] sm:$0xff] %vm18_vm0, %v879_v47 }

// kernel: reverse.3
= control target key start
LH: loop header
LB: loop body
LE: loop exit
PB: predicated region body
PF: predicated region fallthrough
CT: control target
= control target key end

     0   :  { %v2_v0 = vlaneseq  ;;  %s117_s0 = inlined_call_operand.vmem [shape: f32[2,8,7], index: 0, kind: input, shape index: {}]   ;;  %s118_s1 = inlined_call_operand.vmem [shape: f32[2,8,7], index: 1, kind: output, shape index: {}]  }
   0x1   :  { %v34_v2 = vld [vmem:[%s117_s0] sm:$0xff]  ;;  %v36_v3 = vld [vmem:[%s117_s0 + $0x8] sm:$0xff] }
   0x2   :  { %v3_v1 = vsub.s32 6, %v2_v0 }
   0x4   :  { %4 = vset.pattern.permute.xlu0 %v3_v1 }
   0x5   :  { %42 = vperm.xlu0 %4, %v34_v2  }
   0x9   :  { %48 = vperm.xlu0 %4, %v36_v3  }
  0x84   :  { %v43_v4 = vpop.permute.xlu0 %42 }
  0x85   :  { %81 = vst [vmem:[%s118_s1] sm:$0xff] %v43_v4 }
  0x88   :  { %v49_v5 = vpop.permute.xlu0 %48 }
  0x89   :  { %83 = vst [vmem:[%s118_s1 + $0x8] sm:$0xff] %v49_v5 }

// kernel: ddsp_vae_forward.10
= control target key start
LH: loop header
LB: loop body
LE: loop exit
PB: predicated region body
PF: predicated region fallthrough
CT: control target
= control target key end

     0   :  { %v533_v0 = vmov 0.0   ;;  %vm534_vm0 = vmmov 0   ;;  %vm49_vm1 = vcmask 1041408   ;;  %vm45_vm2 = vcmask 293888   ;;  %s703_s1 = inlined_call_operand.vmem [shape: f32[36,32], index: 1, kind: input, shape index: {}]   ;;  %s704_s0 = inlined_call_operand.vmem [shape: f32[16,36], index: 0, kind: input, shape index: {}]   ;;  %s705_s4 = inlined_call_operand.vmem [shape: f32[9,32], index: 4, kind: input, shape index: {}]   ;;  %s706_s2 = inlined_call_operand.vmem [shape: f32[32,32], index: 2, kind: input, shape index: {}]   ;;  %s707_s3 = inlined_call_operand.vmem [shape: f32[32,32], index: 3, kind: input, shape index: {}]   ;;  %s708_s5 = inlined_call_operand.vmem [shape: f32[32,128], index: 5, kind: input, shape index: {}]   ;;  %s709_s6 = inlined_call_operand.vmem [shape: f32[2,128], index: 6, kind: input, shape index: {}]   ;;  %s710_s7 = inlined_call_operand.vmem [shape: f32[16,128], index: 7, kind: output, shape index: {}]  }
   0x1   :  { %473 = vmatprep.subr.bf16.mxu0 %v533_v0  ;;  %v32_v1 = vld [vmem:[%s703_s1] sm:$0xff]  ;;  %v33_v2 = vld [vmem:[%s703_s1 + $0x8] sm:$0xff]  ;;  %v34_v3 = vld [vmem:[%s703_s1 + $0x10] sm:$0xff]  ;;  %479 = vmatprep.mubr.msk.bf16.mxu0 %vm534_vm0, %v533_v0  ;;  %vm94_vm3 = vcmask 261120  }
   0x2   :  { %v38_v4 = vpack.c.bf16 %v33_v2, %v32_v1  ;;  %v35_v5 = vld [vmem:[%s703_s1 + $0x18] sm:$0xff]  ;;  %v36_v6 = vld [vmem:[%s703_s1 + $0x20] sm:$0xf]  ;;  %483 = vmatprep.subr.bf16.mxu1 %v533_v0  ;;  %487 = vmatprep.mubr.msk.bf16.mxu1 %vm534_vm0, %v533_v0  ;;  %v28_v10 = vld [vmem:[%s704_s0 + $0x8] sm:$0xff] }
   0x3   :  { %v39_v7 = vpack.c.bf16 %v35_v5, %v34_v3  ;;  %v40_v8 = vpack.c.bf16 %v36_v6, %v36_v6  ;;  %v27_v9 = vld [vmem:[%s704_s0] sm:$0xff]  ;;  %v144_v33 = vld [vmem:[%s706_s2 + $0x8] sm:$0xff]  ;;  %v145_v35 = vld [vmem:[%s706_s2 + $0x10] sm:$0xff] }
   0x4   :  { %474 = vmatpush3.bf16.msra.mxu0 %v38_v4  ;;  %v37_v12 = vpack.c.bf16 %v28_v10, %v27_v9  ;;  %v445_v13 = vld [vmem:[%s705_s4] ss:$0 sm:$0xff]  ;;  %v146_v36 = vld [vmem:[%s706_s2 + $0x18] sm:$0xff]  ;;  %v447_v45 = vld [vmem:[%s705_s4 + $0x1] ss:$0 sm:$0xff] }
   0x5   :  { %475 = vmatprep.subr.bf16.mxu0 %v533_v0  ;;  %v51_v11 = vsel %vm49_vm1, %v40_v8, 0  ;;  %v143_v32 = vld [vmem:[%s706_s2] sm:$0xff]  ;;  %v149_v37 = vpack.c.bf16 %v146_v36, %v145_v35 }
   0x6   :  { %v148_v34 = vpack.c.bf16 %v144_v33, %v143_v32  ;;  %v448_v47 = vld [vmem:[%s705_s4 + $0x2] ss:$0 sm:$0xff]  ;;  %v449_v59 = vld [vmem:[%s705_s4 + $0x3] ss:$0 sm:$0xff] }
   0x8   :  { %476 = vmatpush3.bf16.msra.mxu0 %v39_v7  ;;  %484 = vmatpush3.bf16.msra.mxu1 %v148_v34 }
   0x9   :  { %477 = vmatprep.subr.bf16.mxu0 %v533_v0  ;;  %485 = vmatprep.subr.bf16.mxu1 %v533_v0 }
   0xc   :  { %478 = vmatpush3.bf16.msra.mxu0 %v51_v11  ;;  %486 = vmatpush3.bf16.msra.mxu1 %v149_v37 }
   0xd   :  { %499 = vmatprep.subr.bf16.mxu0 %v533_v0  ;;  %491 = vmatprep.subr.bf16.mxu1 %v533_v0 }
   0xf   :  { %480 = vmatmul.mubr.msk.bf16.vlgmr.msra.gmra.mrb[0].mxu0 %vm45_vm2, %v37_v12 }
  0x10   :  { %503 = vmatprep.mubr.msk.bf16.mxu0 %vm534_vm0, %v533_v0 }
  0xe2   :  { %v87_v14 = vpop.f32.mrb[0].mxu0 }
  0xe3   :  { %v88_v15 = vadd.f32 %v445_v13, %v87_v14  ;;  %v481_v16 = vpop.f32.mrb[1].mxu0 }
  0xe4   :  { %v90_v17 = vpop.f32.mrb[2].mxu0  ;;  %v246_v16 = vld [vmem:[%s707_s3 + $0x8] sm:$0xff] }
  0xe5   :  { %v91_v18 = vadd.f32 %v445_v13, %v90_v17  ;;  %v482_v19 = vpop.f32.mrb[3].mxu0  ;;  %v95_v20 = vsel %vm94_vm3, %v88_v15, 0.0 }
  0xe6   :  { %96 = vadd.xlane.f32.xlu0 %v95_v20  ;;  %v248_v19 = vld [vmem:[%s707_s3 + $0x18] sm:$0xff] }
  0xe7   :  { %v98_v21 = vsel %vm94_vm3, %v91_v18, 0.0 }
  0xea   :  { %99 = vadd.xlane.f32.xlu0 %v98_v21 }
 0x173   :  { %v97_v22 = vpop.xlane.xlu0 %96 }
 0x174   :  { %v102_v23 = vmul.f32 0.03125, %v97_v22 }
 0x176   :  { %v104_v24 = vsub.f32 %v88_v15, %v102_v23  ;;  %v245_v15 = vld [vmem:[%s707_s3] sm:$0xff] }
 0x177   :  { %v100_v25 = vpop.xlane.xlu0 %99  ;;  %v250_v17 = vpack.c.bf16 %v246_v16, %v245_v15 }
 0x178   :  { %v103_v26 = vmul.f32 0.03125, %v100_v25  ;;  %v106_v27 = vmul.f32 %v104_v24, %v104_v24 }
 0x17a   :  { %v105_v28 = vsub.f32 %v91_v18, %v103_v26  ;;  %v108_v29 = vsel %vm94_vm3, %v106_v27, 0.0  ;;  %v247_v18 = vld [vmem:[%s707_s3 + $0x10] sm:$0xff] }
 0x17b   :  { %109 = vadd.xlane.f32.xlu1 %v108_v29  ;;  %v251_v20 = vpack.c.bf16 %v248_v19, %v247_v18 }
 0x17c   :  { %v107_v30 = vmul.f32 %v105_v28, %v105_v28 }
 0x17e   :  { %v111_v31 = vsel %vm94_vm3, %v107_v30, 0.0 }
 0x17f   :  { %112 = vadd.xlane.f32.xlu1 %v111_v31  ;;  %v452_v31 = vld [vmem:[%s705_s4 + $0x5] ss:$0 sm:$0xff] }
 0x208   :  { %v110_v38 = vpop.xlane.xlu1 %109 }
 0x209   :  { %v114_v39 = vmul.f32 0.03125, %v110_v38 }
 0x20b   :  { %v116_v40 = vadd.f32 1e-05, %v114_v39 }
 0x20c   :  { %v113_v41 = vpop.xlane.xlu1 %112 }
 0x20d   :  { %509 = vrsqrt.f32 %v116_v40  ;;  %v115_v42 = vmul.f32 0.03125, %v113_v41 }
 0x20f   :  { %v117_v43 = vadd.f32 1e-05, %v115_v42  ;;  %v453_v42 = vld [vmem:[%s705_s4 + $0x6] ss:$0 sm:$0xff] }
 0x211   :  { %511 = vrsqrt.f32 %v117_v43 }
 0x217   :  { %v510_v44 = vpop.eup %509 }
 0x218   :  { %v120_v46 = vmul.f32 %v510_v44, %v104_v24 }
 0x21a   :  { %v126_v48 = vmul.f32 %v447_v45, %v120_v46 }
 0x21b   :  { %v512_v49 = vpop.eup %511 }
 0x21c   :  { %v121_v50 = vmul.f32 %v512_v49, %v105_v28  ;;  %v132_v51 = vadd.f32 %v448_v47, %v126_v48  ;;  %v451_v28 = vld [vmem:[%s705_s4 + $0x4] ss:$0 sm:$0xff] }
 0x21e   :  { %v127_v52 = vmul.f32 %v447_v45, %v121_v50  ;;  %v136_v54 = vmul.f32 0.01, %v132_v51  ;;  %vm134_vm4 = vcmp.ge.f32.partialorder %v132_v51, 0.0 }
 0x220   :  { %v133_v53 = vadd.f32 %v448_v47, %v127_v52  ;;  %v138_v56 = vsel %vm134_vm4, %v132_v51, %v136_v54 }
 0x222   :  { %vm135_vm5 = vcmp.ge.f32.partialorder %v133_v53, 0.0  ;;  %v137_v55 = vmul.f32 0.01, %v133_v53 }
 0x224   :  { %v139_v57 = vsel %vm135_vm5, %v133_v53, %v137_v55 }
 0x225   :  { %v147_v58 = vpack.c.bf16 %v139_v57, %v138_v56 }
 0x227   :  { %488 = vmatmul.mubr.msk.bf16.vlgmr.msra.gmra.mrb[0].mxu1 %vm94_vm3, %v147_v58 }
 0x228   :  { %495 = vmatprep.mubr.msk.bf16.mxu1 %vm534_vm0, %v533_v0  ;;  %492 = vmatpush3.bf16.msra.mxu1 %v250_v17 }
 0x229   :  { %493 = vmatprep.subr.bf16.mxu1 %v533_v0 }
 0x22c   :  { %494 = vmatpush3.bf16.msra.mxu1 %v251_v20 }
 0x2fa   :  { %v191_v60 = vpop.f32.mrb[0].mxu1 }
 0x2fb   :  { %v192_v61 = vadd.f32 %v449_v59, %v191_v60  ;;  %v489_v62 = vpop.f32.mrb[1].mxu1 }
 0x2fc   :  { %v194_v63 = vpop.f32.mrb[2].mxu1  ;;  %v345_v62 = vld [vmem:[%s708_s5 + $0x8] sm:$0xff] }
 0x2fd   :  { %v195_v1 = vadd.f32 %v449_v59, %v194_v63  ;;  %v490_v2 = vpop.f32.mrb[3].mxu1  ;;  %v198_v3 = vsel %vm94_vm3, %v192_v61, 0.0 }
 0x2fe   :  { %199 = vadd.xlane.f32.xlu0 %v198_v3  ;;  %v347_v2 = vld [vmem:[%s708_s5 + $0x18] sm:$0xff] }
 0x2ff   :  { %v201_v4 = vsel %vm94_vm3, %v195_v1, 0.0 }
 0x300   :  { %202 = vadd.xlane.f32.xlu1 %v201_v4 }
 0x38b   :  { %v200_v5 = vpop.xlane.xlu0 %199 }
 0x38c   :  { %v204_v6 = vmul.f32 0.03125, %v200_v5 }
 0x38d   :  { %v203_v7 = vpop.xlane.xlu1 %202 }
 0x38e   :  { %v206_v8 = vsub.f32 %v192_v61, %v204_v6  ;;  %v205_v9 = vmul.f32 0.03125, %v203_v7  ;;  %v344_v61 = vld [vmem:[%s708_s5] sm:$0xff] }
 0x38f   :  { %v349_v63 = vpack.c.bf16 %v345_v62, %v344_v61 }
 0x390   :  { %v207_v10 = vsub.f32 %v195_v1, %v205_v9  ;;  %v208_v11 = vmul.f32 %v206_v8, %v206_v8  ;;  %v346_v1 = vld [vmem:[%s708_s5 + $0x10] sm:$0xff] }
 0x391   :  { %500 = vmatpush3.bf16.msra.mxu0 %v349_v63  ;;  %v350_v3 = vpack.c.bf16 %v347_v2, %v346_v1 }
 0x392   :  { %v210_v12 = vsel %vm94_vm3, %v208_v11, 0.0  ;;  %v209_v13 = vmul.f32 %v207_v10, %v207_v10  ;;  %501 = vmatprep.subr.bf16.mxu0 %v533_v0  ;;  %v455_v11 = vld [vmem:[%s705_s4 + $0x7] ss:$0 sm:$0xff]  ;;  %v456_v0 = vld [vmem:[%s705_s4 + $0x8] ss:$0 sm:$0xff] }
 0x393   :  { %211 = vadd.xlane.f32.xlu0 %v210_v12 }
 0x394   :  { %v213_v14 = vsel %vm94_vm3, %v209_v13, 0.0 }
 0x395   :  { %214 = vadd.xlane.f32.xlu1 %v213_v14  ;;  %502 = vmatpush3.bf16.msra.mxu0 %v350_v3 }
 0x420   :  { %v212_v21 = vpop.xlane.xlu0 %211 }
 0x421   :  { %v216_v22 = vmul.f32 0.03125, %v212_v21 }
 0x422   :  { %v215_v23 = vpop.xlane.xlu1 %214 }
 0x423   :  { %v218_v24 = vadd.f32 1e-05, %v216_v22  ;;  %v217_v25 = vmul.f32 0.03125, %v215_v23 }
 0x425   :  { %513 = vrsqrt.f32 %v218_v24  ;;  %v219_v26 = vadd.f32 1e-05, %v217_v25  ;;  %v457_v24 = vld [vmem:[%s709_s6] ss:$0 sm:$0xff] }
 0x427   :  { %515 = vrsqrt.f32 %v219_v26  ;;  %v459_v26 = vld [vmem:[%s709_s6 + $0x1] ss:$0 sm:$0xff] }
 0x42f   :  { %v514_v27 = vpop.eup %513 }
 0x430   :  { %v222_v29 = vmul.f32 %v514_v27, %v206_v8 }
 0x431   :  { %v516_v30 = vpop.eup %515 }
 0x432   :  { %v228_v32 = vmul.f32 %v451_v28, %v222_v29  ;;  %v223_v33 = vmul.f32 %v516_v30, %v207_v10 }
 0x434   :  { %v234_v34 = vadd.f32 %v452_v31, %v228_v32  ;;  %v229_v35 = vmul.f32 %v451_v28, %v223_v33 }
 0x436   :  { %v235_v36 = vadd.f32 %v452_v31, %v229_v35  ;;  %v238_v37 = vmul.f32 0.01, %v234_v34  ;;  %vm236_vm6 = vcmp.ge.f32.partialorder %v234_v34, 0.0 }
 0x438   :  { %vm237_vm7 = vcmp.ge.f32.partialorder %v235_v36, 0.0  ;;  %v239_v38 = vmul.f32 0.01, %v235_v36  ;;  %v240_v39 = vsel %vm236_vm6, %v234_v34, %v238_v37 }
 0x43a   :  { %v241_v40 = vsel %vm237_vm7, %v235_v36, %v239_v38 }
 0x43b   :  { %v249_v41 = vpack.c.bf16 %v241_v40, %v240_v39 }
 0x43d   :  { %496 = vmatmul.mubr.msk.bf16.vlgmr.msra.gmra.mrb[4].mxu1 %vm94_vm3, %v249_v41 }
 0x510   :  { %v293_v43 = vpop.f32.mrb[4].mxu1 }
 0x511   :  { %v294_v44 = vadd.f32 %v453_v42, %v293_v43  ;;  %v497_v45 = vpop.f32.mrb[5].mxu1 }
 0x512   :  { %v296_v46 = vpop.f32.mrb[6].mxu1 }
 0x513   :  { %v297_v47 = vadd.f32 %v453_v42, %v296_v46  ;;  %v498_v48 = vpop.f32.mrb[7].mxu1  ;;  %v300_v49 = vsel %vm94_vm3, %v294_v44, 0.0 }
 0x514   :  { %301 = vadd.xlane.f32.xlu0 %v300_v49 }
 0x515   :  { %v303_v50 = vsel %vm94_vm3, %v297_v47, 0.0 }
 0x516   :  { %304 = vadd.xlane.f32.xlu1 %v303_v50 }
 0x5a1   :  { %v302_v51 = vpop.xlane.xlu0 %301 }
 0x5a2   :  { %v306_v52 = vmul.f32 0.03125, %v302_v51 }
 0x5a3   :  { %v305_v53 = vpop.xlane.xlu1 %304 }
 0x5a4   :  { %v308_v54 = vsub.f32 %v294_v44, %v306_v52  ;;  %v307_v55 = vmul.f32 0.03125, %v305_v53 }
 0x5a6   :  { %v309_v56 = vsub.f32 %v297_v47, %v307_v55  ;;  %v310_v57 = vmul.f32 %v308_v54, %v308_v54 }
 0x5a8   :  { %v312_v58 = vsel %vm94_vm3, %v310_v57, 0.0  ;;  %v311_v59 = vmul.f32 %v309_v56, %v309_v56 }
 0x5a9   :  { %313 = vadd.xlane.f32.xlu0 %v312_v58 }
 0x5aa   :  { %v315_v60 = vsel %vm94_vm3, %v311_v59, 0.0 }
 0x5ab   :  { %316 = vadd.xlane.f32.xlu1 %v315_v60 }
 0x636   :  { %v314_v4 = vpop.xlane.xlu0 %313 }
 0x637   :  { %v318_v5 = vmul.f32 0.03125, %v314_v4 }
 0x638   :  { %v317_v6 = vpop.xlane.xlu1 %316 }
 0x639   :  { %v320_v7 = vadd.f32 1e-05, %v318_v5  ;;  %v319_v8 = vmul.f32 0.03125, %v317_v6 }
 0x63b   :  { %517 = vrsqrt.f32 %v320_v7  ;;  %v321_v9 = vadd.f32 1e-05, %v319_v8 }
 0x63d   :  { %519 = vrsqrt.f32 %v321_v9 }
 0x645   :  { %v518_v10 = vpop.eup %517 }
 0x646   :  { %v324_v12 = vmul.f32 %v518_v10, %v308_v54 }
 0x647   :  { %v520_v13 = vpop.eup %519 }
 0x648   :  { %v330_v14 = vmul.f32 %v455_v11, %v324_v12  ;;  %v325_v15 = vmul.f32 %v520_v13, %v309_v56 }
 0x64a   :  { %v336_v16 = vadd.f32 %v456_v0, %v330_v14  ;;  %v331_v17 = vmul.f32 %v455_v11, %v325_v15 }
 0x64c   :  { %v337_v18 = vadd.f32 %v456_v0, %v331_v17  ;;  %v340_v19 = vmul.f32 0.01, %v336_v16  ;;  %vm338_vm8 = vcmp.ge.f32.partialorder %v336_v16, 0.0 }
 0x64e   :  { %vm339_vm9 = vcmp.ge.f32.partialorder %v337_v18, 0.0  ;;  %v341_v20 = vmul.f32 0.01, %v337_v18  ;;  %v342_v21 = vsel %vm338_vm8, %v336_v16, %v340_v19 }
 0x650   :  { %v343_v22 = vsel %vm339_vm9, %v337_v18, %v341_v20 }
 0x651   :  { %v348_v23 = vpack.c.bf16 %v343_v22, %v342_v21 }
 0x653   :  { %504 = vmatmul.mubr.msk.bf16.vlgmr.msra.gmra.mrb[4].mxu0 %vm94_vm3, %v348_v23 }
 0x726   :  { %v393_v25 = vpop.f32.mrb[4].mxu0 }
 0x727   :  { %v394_v27 = vadd.f32 %v457_v24, %v393_v25  ;;  %v505_v28 = vpop.f32.mrb[5].mxu0 }
 0x728   :  { %v396_v29 = vpop.f32.mrb[6].mxu0 }
 0x729   :  { %v405_v30 = vadd.f32 %v459_v26, %v394_v27  ;;  %v397_v31 = vadd.f32 %v457_v24, %v396_v29  ;;  %v506_v32 = vpop.f32.mrb[7].mxu0 }
 0x72b   :  { %v411_v33 = vand.u32 2147483647, %v405_v30  ;;  %v406_v34 = vadd.f32 %v459_v26, %v397_v31  ;;  %v407_v44 = vsub.f32 0.0, %v405_v30 }
 0x72d   :  { %v413_v35 = vsub.f32 0.0, %v411_v33  ;;  %v412_v36 = vand.u32 2147483647, %v406_v34  ;;  %v408_v45 = vsub.f32 0.0, %v406_v34  ;;  %v409_v47 = vmax.f32 %v407_v44, 0.0 }
 0x72f   :  { %v415_v37 = vmul.f32 1.442695, %v413_v35  ;;  %v414_v38 = vsub.f32 0.0, %v412_v36  ;;  %v410_v51 = vmax.f32 %v408_v45, 0.0 }
 0x731   :  { %521 = vpow2.f32 %v415_v37  ;;  %v417_v39 = vmul.f32 1.442695, %v414_v38 }
 0x733   :  { %523 = vpow2.f32 %v417_v39 }
 0x73b   :  { %v522_v40 = vpop.eup %521 }
 0x73c   :  { %v419_v41 = vadd.f32 1.0, %v522_v40 }
 0x73d   :  { %v524_v42 = vpop.eup %523 }
 0x73e   :  { %525 = vlog2.f32 %v419_v41  ;;  %v420_v43 = vadd.f32 1.0, %v524_v42 }
 0x740   :  { %527 = vlog2.f32 %v420_v43 }
 0x748   :  { %v526_v46 = vpop.eup %525 }
 0x749   :  { %v422_v48 = vmul.f32 0.6931472, %v526_v46 }
 0x74a   :  { %v528_v49 = vpop.eup %527 }
 0x74b   :  { %v425_v50 = vadd.f32 %v422_v48, %v409_v47  ;;  %v424_v52 = vmul.f32 0.6931472, %v528_v49 }
 0x74d   :  { %v427_v53 = vsub.f32 0.0, %v425_v50  ;;  %v426_v54 = vadd.f32 %v424_v52, %v410_v51 }
 0x74f   :  { %v429_v55 = vmul.f32 2.3025851, %v427_v53  ;;  %v428_v56 = vsub.f32 0.0, %v426_v54 }
 0x751   :  { %v431_v57 = vmul.f32 1.442695, %v429_v55  ;;  %v430_v58 = vmul.f32 2.3025851, %v428_v56 }
 0x753   :  { %529 = vpow2.f32 %v431_v57  ;;  %v433_v59 = vmul.f32 1.442695, %v430_v58 }
 0x755   :  { %531 = vpow2.f32 %v433_v59 }
 0x75d   :  { %v530_v60 = vpop.eup %529 }
 0x75e   :  { %v435_v61 = vmul.f32 2.0, %v530_v60 }
 0x75f   :  { %v532_v62 = vpop.eup %531 }
 0x760   :  { %v437_v63 = vadd.f32 1e-07, %v435_v61  ;;  %v436_v1 = vmul.f32 2.0, %v532_v62 }
 0x762   :  { %439 = vst [vmem:[%s710_s7] sm:$0xff] %v437_v63  ;;  %v438_v2 = vadd.f32 1e-07, %v436_v1 }
 0x764   :  { %440 = vst [vmem:[%s710_s7 + $0x8] sm:$0xff] %v438_v2 }

// kernel: reverse.1
= control target key start
LH: loop header
LB: loop body
LE: loop exit
PB: predicated region body
PF: predicated region fallthrough
CT: control target
= control target key end

     0   :  { %v2_v0 = vlaneseq  ;;  %s117_s0 = inlined_call_operand.vmem [shape: f32[2,8,15], index: 0, kind: input, shape index: {}]   ;;  %s118_s1 = inlined_call_operand.vmem [shape: f32[2,8,15], index: 1, kind: output, shape index: {}]  }
   0x1   :  { %v34_v2 = vld [vmem:[%s117_s0] sm:$0xff]  ;;  %v36_v3 = vld [vmem:[%s117_s0 + $0x8] sm:$0xff] }
   0x2   :  { %v3_v1 = vsub.s32 14, %v2_v0 }
   0x4   :  { %4 = vset.pattern.permute.xlu0 %v3_v1 }
   0x5   :  { %42 = vperm.xlu0 %4, %v34_v2  }
   0x9   :  { %48 = vperm.xlu0 %4, %v36_v3  }
  0x84   :  { %v43_v4 = vpop.permute.xlu0 %42 }
  0x85   :  { %81 = vst [vmem:[%s118_s1] sm:$0xff] %v43_v4 }
  0x88   :  { %v49_v5 = vpop.permute.xlu0 %48 }
  0x89   :  { %83 = vst [vmem:[%s118_s1 + $0x8] sm:$0xff] %v49_v5 }

// kernel: ddsp_vae_forward.11
= control target key start
LH: loop header
LB: loop body
LE: loop exit
PB: predicated region body
PF: predicated region fallthrough
CT: control target
= control target key end

     0   :  { %vm225_vm0 = vcmask 64512   ;;  %v1568_v0 = vmov 0.0   ;;  %vm1569_vm1 = vmmov 0   ;;  %v1570_v23 = vmov 683565275   ;;  %s1794_s2 = inlined_call_operand.vmem [shape: f32[8,128], index: 2, kind: input, shape index: {}]   ;;  %s1795_s1 = inlined_call_operand.vmem [shape: f32[15,2,8], index: 1, kind: input, shape index: {}]   ;;  %s1796_s0 = inlined_call_operand.vmem [shape: f32[2,128], index: 0, kind: input, shape index: {}]   ;;  %s1797_s3 = inlined_call_operand.vmem [shape: f32[2,128], index: 3, kind: output, shape index: {}]  }
   0x1   :  { %1477 = vmatprep.subr.mxu0 %v1568_v0  ;;  %v1600_v1 = vld [vmem:[%s1794_s2] sm:$0xff]  ;;  %1479 = vmatprep.mubr.msk.f32.mxu0 %vm1569_vm1, %v1568_v0  ;;  %v1425_v8 = vld [vmem:[%s1795_s1 + $0x8] sm:$0x3]  ;;  %v1427_v10 = vld [vmem:[%s1795_s1 + $0xa] sm:$0x3] }
   0x2   :  { %v224_v2 = vld [vmem:[%s1795_s1] sm:$0x3]  ;;  %1478 = vmatpush3.msra.mxu0 %v1600_v1  ;;  %1482 = vmatprep.subr.mxu1 %v1568_v0  ;;  %v1419_v3 = vld [vmem:[%s1795_s1 + $0x2] sm:$0x3]  ;;  %v1421_v4 = vld [vmem:[%s1795_s1 + $0x4] sm:$0x3] }
   0x3   :  { %1480 = vmatmul.mubr.msk.f32.vlgmr.msra.gmra.mrb[0].mxu0 %vm225_vm0, %v224_v2  ;;  %1483 = vmatpush3.msra.mxu1 %v1600_v1  ;;  %v1423_v5 = vld [vmem:[%s1795_s1 + $0x6] sm:$0x3]  ;;  %v1631_v6 = vld [vmem:[%s1796_s0] sm:$0x3]  ;;  %v1429_v12 = vld [vmem:[%s1795_s1 + $0xc] sm:$0x3] }
   0x4   :  { %1484 = vmatprep.mubr.msk.f32.mxu1 %vm1569_vm1, %v1568_v0  ;;  %1487 = vmatprep.subr.mxu0 %v1568_v0  ;;  %v19_v7 = vand.u32 2139095040, %v1631_v6  ;;  %v16_v13 = vand.u32 2147483647, %v1631_v6  ;;  %v1431_v15 = vld [vmem:[%s1795_s1 + $0xe] sm:$0x3]  ;;  %vm18_vm9 = vcmp.lt.s32.totalorder %v1631_v6, 0 }
   0x5   :  { %1485 = vmatmul.mubr.msk.f32.vlgmr.msra.gmra.mrb[0].mxu1 %vm225_vm0, %v1419_v3  ;;  %1488 = vmatpush3.msra.mxu0 %v1600_v1  ;;  %v1433_v16 = vld [vmem:[%s1795_s1 + $0x10] sm:$0x3]  ;;  %v1435_v20 = vld [vmem:[%s1795_s1 + $0x12] sm:$0x3]  ;;  %v1571_v25 = vmov 2475754826  }
   0x6   :  { %1492 = vmatprep.subr.mxu1 %v1568_v0  ;;  %1489 = vmatprep.mubr.msk.f32.mxu0 %vm1569_vm1, %v1568_v0  ;;  %v20_v9 = vshrl.u32 %v19_v7, 23  ;;  %v23_v18 = vand.u32 8388607, %v16_v13  ;;  %v1437_v27 = vld [vmem:[%s1795_s1 + $0x14] sm:$0x3] }
   0x7   :  { %1493 = vmatpush3.msra.mxu1 %v1600_v1  ;;  %1490 = vmatmul.mubr.msk.f32.vlgmr.msra.gmra.mrb[2].mxu0 %vm225_vm0, %v1421_v4  ;;  %v1572_v28 = vmov 2131351028   ;;  %v1573_v30 = vmov 2102212464   ;;  %v1574_v32 = vmov 920167782  }
   0x8   :  { %1497 = vmatprep.subr.mxu0 %v1568_v0  ;;  %1494 = vmatprep.mubr.msk.f32.mxu1 %vm1569_vm1, %v1568_v0  ;;  %v1410_v11 = vadd.s32 4294967169, %v20_v9  ;;  %v24_v34 = vor.u32 8388608, %v23_v18  ;;  %v1439_v38 = vld [vmem:[%s1795_s1 + $0x16] sm:$0x3]  ;;  %v1575_v41 = vmov 1326507024  }
   0x9   :  { %1498 = vmatpush3.msra.mxu0 %v1600_v1  ;;  %1495 = vmatmul.mubr.msk.f32.vlgmr.msra.gmra.mrb[2].mxu1 %vm225_vm0, %v1423_v5  ;;  %v1441_v45 = vld [vmem:[%s1795_s1 + $0x18] sm:$0x3]  ;;  %v1443_v49 = vld [vmem:[%s1795_s1 + $0x1a] sm:$0x3]  ;;  %v1445_v60 = vld [vmem:[%s1795_s1 + $0x1c] sm:$0x3] }
   0xa   :  { %1502 = vmatprep.subr.mxu1 %v1568_v0  ;;  %1499 = vmatprep.mubr.msk.f32.mxu0 %vm1569_vm1, %v1568_v0  ;;  %v26_v14 = vadd.s32 1, %v1410_v11  ;;  %v64_v52 = vshll.u32 %v24_v34, 8  ;;  %vm17_vm10 = vcmp.le.f32.partialorder %v16_v13, 0.7853982 }
   0xb   :  { %1503 = vmatpush3.msra.mxu1 %v1600_v1  ;;  %1500 = vmatmul.mubr.msk.f32.vlgmr.msra.gmra.mrb[4].mxu0 %vm225_vm0, %v1425_v8 }
   0xc   :  { %1507 = vmatprep.subr.mxu0 %v1568_v0  ;;  %1504 = vmatprep.mubr.msk.f32.mxu1 %vm1569_vm1, %v1568_v0  ;;  %vm27_vm2 = vcmp.gt.s32.totalorder %v26_v14, 0 }
   0xd   :  { %1508 = vmatpush3.msra.mxu0 %v1600_v1  ;;  %1505 = vmatmul.mubr.msk.f32.vlgmr.msra.gmra.mrb[4].mxu1 %vm225_vm0, %v1427_v10  ;;  %v28_v17 = vsel %vm27_vm2, %v26_v14, 0 }
   0xe   :  { %1512 = vmatprep.subr.mxu1 %v1568_v0  ;;  %1509 = vmatprep.mubr.msk.f32.mxu0 %vm1569_vm1, %v1568_v0  ;;  %v30_v19 = vand.u32 31, %v28_v17  ;;  %v1685_v21 = vshrl.u32 %v28_v17, 5 }
   0xf   :  { %1513 = vmatpush3.msra.mxu1 %v1600_v1  ;;  %1510 = vmatmul.mubr.msk.f32.vlgmr.msra.gmra.mrb[6].mxu0 %vm225_vm0, %v1429_v12 }
  0x10   :  { %1517 = vmatprep.subr.mxu0 %v1568_v0  ;;  %1514 = vmatprep.mubr.msk.f32.mxu1 %vm1569_vm1, %v1568_v0  ;;  %v31_v22 = vsub.s32 32, %v30_v19  ;;  %v33_v24 = vshll.u32 %v1570_v23, %v30_v19  ;;  %v36_v26 = vshll.u32 %v1571_v25, %v30_v19  ;;  %v39_v29 = vshll.u32 %v1572_v28, %v30_v19 }
  0x11   :  { %1518 = vmatpush3.msra.mxu0 %v1600_v1  ;;  %1515 = vmatmul.mubr.msk.f32.vlgmr.msra.gmra.mrb[6].mxu1 %vm225_vm0, %v1431_v15  ;;  %v42_v31 = vshll.u32 %v1573_v30, %v30_v19  ;;  %v45_v33 = vshll.u32 %v1574_v32, %v30_v19  ;;  %vm48_vm3 = vcmp.lt.s32.totalorder %v1685_v21, 1  ;;  %vm51_vm4 = vcmp.lt.s32.totalorder %v1685_v21, 4 }
  0x12   :  { %1522 = vmatprep.subr.mxu1 %v1568_v0  ;;  %1519 = vmatprep.mubr.msk.f32.mxu0 %vm1569_vm1, %v1568_v0  ;;  %v32_v35 = vshrl.u32 %v1570_v23, %v31_v22  ;;  %v34_v36 = vshrl.u32 %v1571_v25, %v31_v22  ;;  %v37_v37 = vshrl.u32 %v1572_v28, %v31_v22  ;;  %vm50_vm5 = vcmp.lt.s32.totalorder %v1685_v21, 3 }
  0x13   :  { %1523 = vmatpush3.msra.mxu1 %v1600_v1  ;;  %1520 = vmatmul.mubr.msk.f32.vlgmr.msra.gmra.mrb[8].mxu0 %vm225_vm0, %v1433_v16  ;;  %v40_v39 = vshrl.u32 %v1573_v30, %v31_v22  ;;  %v43_v40 = vshrl.u32 %v1574_v32, %v31_v22  ;;  %v46_v42 = vshrl.u32 %v1575_v41, %v31_v22  ;;  %vm49_vm6 = vcmp.lt.s32.totalorder %v1685_v21, 2 }
  0x14   :  { %1527 = vmatprep.subr.mxu0 %v1568_v0  ;;  %1524 = vmatprep.mubr.msk.f32.mxu1 %vm1569_vm1, %v1568_v0  ;;  %v35_v43 = vor.u32 %v34_v36, %v33_v24  ;;  %v38_v44 = vor.u32 %v37_v37, %v36_v26 }
  0x15   :  { %1528 = vmatpush3.msra.mxu0 %v1600_v1  ;;  %1525 = vmatmul.mubr.msk.f32.vlgmr.msra.gmra.mrb[8].mxu1 %vm225_vm0, %v1435_v20  ;;  %v41_v46 = vor.u32 %v40_v39, %v39_v29  ;;  %v44_v47 = vor.u32 %v43_v40, %v42_v31  ;;  %v47_v48 = vor.u32 %v46_v42, %v45_v33 }
  0x16   :  { %1532 = vmatprep.subr.mxu1 %v1568_v0  ;;  %1529 = vmatprep.mubr.msk.f32.mxu0 %vm1569_vm1, %v1568_v0  ;;  %v52_v50 = vsel %vm48_vm3, %v32_v35, %v35_v43  ;;  %v56_v51 = vsel %vm48_vm3, %v35_v43, %v38_v44 }
  0x17   :  { %1533 = vmatpush3.msra.mxu1 %v1600_v1  ;;  %1530 = vmatmul.mubr.msk.f32.vlgmr.msra.gmra.mrb[10].mxu0 %vm225_vm0, %v1437_v27  ;;  %v53_v53 = vsel %vm51_vm4, %v41_v46, 2102212464  ;;  %v57_v54 = vsel %vm51_vm4, %v44_v47, 920167782  ;;  %v60_v55 = vsel %vm48_vm3, %v38_v44, %v41_v46  ;;  %v61_v56 = vsel %vm51_vm4, %v47_v48, 1326507024 }
  0x18   :  { %1537 = vmatprep.subr.mxu0 %v1568_v0  ;;  %1534 = vmatprep.mubr.msk.f32.mxu1 %vm1569_vm1, %v1568_v0  ;;  %v54_v57 = vsel %vm50_vm5, %v38_v44, %v53_v53  ;;  %v58_v58 = vsel %vm50_vm5, %v41_v46, %v57_v54  ;;  %v62_v59 = vsel %vm50_vm5, %v44_v47, %v61_v56 }
  0x19   :  { %1538 = vmatpush3.msra.mxu0 %v1600_v1  ;;  %1535 = vmatmul.mubr.msk.f32.vlgmr.msra.gmra.mrb[10].mxu1 %vm225_vm0, %v1439_v38  ;;  %v55_v61 = vsel %vm49_vm6, %v52_v50, %v54_v57  ;;  %v59_v62 = vsel %vm49_vm6, %v56_v51, %v58_v58  ;;  %v63_v63 = vsel %vm49_vm6, %v60_v55, %v62_v59 }
  0x1a   :  { %1542 = vmatprep.subr.mxu1 %v1568_v0  ;;  %1539 = vmatprep.mubr.msk.f32.mxu0 %vm1569_vm1, %v1568_v0  ;;  %v1757_v2 = vmul.u32.u64.low %v64_v52, %v63_v63  ;;  %v1758_v3 = vmul.u32.u64.high %v64_v52, %v63_v63, %v1757_v2  ;;  %v1760_v4 = vmul.u32.u64.low %v64_v52, %v59_v62  ;;  %v1761_v5 = vmul.u32.u64.high %v64_v52, %v59_v62, %v1760_v4 }
  0x1b   :  { %1543 = vmatpush3.msra.mxu1 %v1600_v1  ;;  %1540 = vmatmul.mubr.msk.f32.vlgmr.msra.gmra.mrb[12].mxu0 %vm225_vm0, %v1441_v45  ;;  %v71_v7 = vmul.u32 %v64_v52, %v55_v61 }
  0x1c   :  { %1547 = vmatprep.subr.mxu0 %v1568_v0  ;;  %1544 = vmatprep.mubr.msk.f32.mxu1 %vm1569_vm1, %v1568_v0  ;;  %vm73_vm7 = vc.u32 %v1758_v3, %v1760_v4  ;;  %v74_v8 = vadd.s32 1, %v1761_v5  ;;  %v72_v20 = vadd.s32 %v1760_v4, %v1758_v3 }
  0x1d   :  { %1548 = vmatpush3.msra.mxu0 %v1600_v1  ;;  %1545 = vmatmul.mubr.msk.f32.vlgmr.msra.gmra.mrb[12].mxu1 %vm225_vm0, %v1443_v49 }
  0x1e   :  { %1549 = vmatprep.mubr.msk.f32.mxu0 %vm1569_vm1, %v1568_v0  ;;  %v75_v1 = vsel %vm73_vm7, %v74_v8, %v1761_v5 }
  0x1f   :  { %1550 = vmatmul.mubr.msk.f32.vlgmr.msra.gmra.mrb[14].mxu0 %vm225_vm0, %v1445_v60  ;;  %v76_v9 = vadd.s32 %v75_v1, %v71_v7  ;;  %vm108_vm0 = vweird.f32 %v1631_v6 }
  0x21   :  { %v77_v10 = vadd.s32 536870912, %v76_v9 }
  0x23   :  { %v78_v11 = vshrl.u32 %v77_v10, 30 }
  0x25   :  { %v79_v12 = vshll.u32 %v78_v11, 30  ;;  %v102_v34 = vsub.s32 4, %v78_v11 }
  0x27   :  { %v80_v14 = vsub.s32 %v76_v9, %v79_v12  ;;  %v103_v35 = vsel %vm18_vm9, %v102_v34, %v78_v11 }
  0x28   :  { %v105_v36 = vsel %vm17_vm10, 0, %v103_v35 }
  0x29   :  { %v82_v15 = vsub.s32 0, %v80_v14  ;;  %v109_v39 = vand.u32 3, %v105_v36  ;;  %v213_v40 = vadd.s32 3, %v105_v36 }
  0x2b   :  { %v1411_v16 = vmin.u32 %v82_v15, %v80_v14  ;;  %vm111_vm11 = vcmp.eq.s32.totalorder %v109_v39, 0  ;;  %vm114_vm12 = vcmp.eq.s32.totalorder %v109_v39, 2  ;;  %v214_v43 = vand.u32 3, %v213_v40 }
  0x2c   :  { %vm110_vm13 = vcmp.lt.s32.totalorder %v109_v39, 2 }
  0x2d   :  { %v84_v17 = vclz %v1411_v16  ;;  %vm216_vm14 = vcmp.eq.s32.totalorder %v214_v43, 0  ;;  %vm219_vm15 = vcmp.eq.s32.totalorder %v214_v43, 2  ;;  %vm215_vm1 = vcmp.lt.s32.totalorder %v214_v43, 2 }
  0x2f   :  { %v1412_v18 = vadd.s32 4294967294, %v84_v17 }
  0x31   :  { %vm1413_vm8 = vcmp.lt.s32.totalorder %v1412_v18, 0 }
  0x32   :  { %v87_v0 = vsel %vm1413_vm8, 0, %v1412_v18 }
  0x33   :  { %v92_v19 = vsub.s32 4294967266, %v87_v0  ;;  %v88_v21 = vsub.s32 32, %v87_v0  ;;  %v89_v23 = vshll.u32 %v80_v14, %v87_v0 }
  0x35   :  { %v93_v22 = vadd.s32 127, %v92_v19  ;;  %v90_v24 = vshrl.u32 %v72_v20, %v88_v21 }
  0x37   :  { %v94_v25 = vshll.u32 %v93_v22, 23  ;;  %v91_v26 = vor.u32 %v90_v24, %v89_v23 }
  0x39   :  { %v95_v27 = vor.u32 4788187, %v94_v25  ;;  %v98_v29 = vcvt.s32.f32 %v91_v26 }
  0x3b   :  { %v96_v28 = vand.u32 2147483647, %v95_v27 }
  0x3d   :  { %v99_v30 = vmul.f32 %v98_v29, %v96_v28 }
  0x3f   :  { %v100_v31 = vxor.u32 2147483648, %v99_v30 }
  0x41   :  { %v101_v32 = vsel %vm18_vm9, %v100_v31, %v99_v30 }
  0x42   :  { %v104_v33 = vsel %vm17_vm10, %v1631_v6, %v101_v32 }
  0x43   :  { %1564 = vcosq.f32 %v104_v33 }
  0x44   :  { %1566 = vsinq.f32 %v104_v33 }
  0x4d   :  { %v1565_v37 = vpop.eup %1564 }
  0x4e   :  { %v1567_v38 = vpop.eup %1566  ;;  %v115_v42 = vxor.u32 2147483648, %v1565_v37 }
  0x4f   :  { %v112_v41 = vxor.u32 2147483648, %v1567_v38 }
  0x50   :  { %v116_v13 = vsel %vm114_vm12, %v115_v42, %v1567_v38  ;;  %v221_v47 = vsel %vm219_vm15, %v115_v42, %v1567_v38 }
  0x51   :  { %v113_v44 = vsel %vm111_vm11, %v1565_v37, %v112_v41  ;;  %v218_v46 = vsel %vm216_vm14, %v1565_v37, %v112_v41 }
  0x52   :  { %v117_v45 = vsel %vm110_vm13, %v113_v44, %v116_v13  ;;  %v222_v49 = vsel %vm215_vm1, %v218_v46, %v221_v47 }
  0x53   :  { %v118_v48 = vsel %vm108_vm0, nan, %v117_v45  ;;  %v223_v51 = vsel %vm108_vm0, nan, %v222_v49 }
  0x54   :  { %v1775_v50 = vmul.f32 2.0, %v118_v48 }
  0x56   :  { %v300_v52 = vmul.f32 %v223_v51, %v1775_v50 }
  0x58   :  { %v378_v53 = vmul.f32 %v300_v52, %v1775_v50 }
  0x5a   :  { %v379_v54 = vsub.f32 %v378_v53, %v223_v51 }
  0x5c   :  { %v457_v55 = vmul.f32 %v379_v54, %v1775_v50 }
  0x5e   :  { %v458_v56 = vsub.f32 %v457_v55, %v300_v52 }
  0x60   :  { %v536_v57 = vmul.f32 %v458_v56, %v1775_v50 }
  0x62   :  { %v537_v6 = vsub.f32 %v536_v57, %v379_v54 }
  0x64   :  { %v615_v58 = vmul.f32 %v537_v6, %v1775_v50 }
  0x66   :  { %v616_v59 = vsub.f32 %v615_v58, %v458_v56 }
  0x68   :  { %v694_v60 = vmul.f32 %v616_v59, %v1775_v50 }
  0x6a   :  { %v695_v61 = vsub.f32 %v694_v60, %v537_v6 }
  0x6c   :  { %v773_v62 = vmul.f32 %v695_v61, %v1775_v50 }
  0x6e   :  { %v774_v63 = vsub.f32 %v773_v62, %v616_v59 }
  0x70   :  { %v852_v2 = vmul.f32 %v774_v63, %v1775_v50 }
  0x72   :  { %v853_v3 = vsub.f32 %v852_v2, %v695_v61 }
  0x74   :  { %v931_v4 = vmul.f32 %v853_v3, %v1775_v50 }
  0x76   :  { %v932_v5 = vsub.f32 %v931_v4, %v774_v63 }
  0x78   :  { %v1010_v7 = vmul.f32 %v932_v5, %v1775_v50 }
  0x7a   :  { %v1011_v8 = vsub.f32 %v1010_v7, %v853_v3 }
  0x7c   :  { %v1089_v1 = vmul.f32 %v1011_v8, %v1775_v50 }
  0x7e   :  { %v1090_v12 = vsub.f32 %v1089_v1, %v932_v5 }
  0x80   :  { %v1168_v20 = vmul.f32 %v1090_v12, %v1775_v50 }
  0x82   :  { %v1169_v29 = vsub.f32 %v1168_v20, %v1011_v8 }
  0x84   :  { %v1247_v38 = vmul.f32 %v1169_v29, %v1775_v50 }
  0x86   :  { %v1248_v46 = vsub.f32 %v1247_v38, %v1090_v12 }
  0xd6   :  { %v295_v9 = vpop.f32.mrb[0].mxu0 }
  0xd7   :  { %v299_v10 = vmul.f32 %v295_v9, %v223_v51  ;;  %v1481_v11 = vpop.f32.mrb[1].mxu0 }
  0xd8   :  { %v372_v14 = vpop.f32.mrb[0].mxu1 }
  0xd9   :  { %v376_v15 = vmul.f32 %v372_v14, %v300_v52  ;;  %v1486_v16 = vpop.f32.mrb[1].mxu1 }
  0xda   :  { %v451_v17 = vpop.f32.mrb[2].mxu0 }
  0xdb   :  { %v377_v18 = vadd.f32 %v376_v15, %v299_v10  ;;  %v455_v0 = vmul.f32 %v451_v17, %v379_v54  ;;  %v1491_v19 = vpop.f32.mrb[3].mxu0 }
  0xdc   :  { %v530_v21 = vpop.f32.mrb[2].mxu1 }
  0xdd   :  { %v456_v22 = vadd.f32 %v455_v0, %v377_v18  ;;  %v534_v23 = vmul.f32 %v530_v21, %v458_v56  ;;  %v1496_v24 = vpop.f32.mrb[3].mxu1  ;;  %v1326_v56 = vmul.f32 %v1248_v46, %v1775_v50 }
  0xde   :  { %v609_v25 = vpop.f32.mrb[4].mxu0 }
  0xdf   :  { %v535_v26 = vadd.f32 %v534_v23, %v456_v22  ;;  %v613_v27 = vmul.f32 %v609_v25, %v537_v6  ;;  %v1501_v28 = vpop.f32.mrb[5].mxu0  ;;  %v1327_v2 = vsub.f32 %v1326_v56, %v1169_v29 }
  0xe0   :  { %v688_v30 = vpop.f32.mrb[4].mxu1 }
  0xe1   :  { %v614_v31 = vadd.f32 %v613_v27, %v535_v26  ;;  %v692_v32 = vmul.f32 %v688_v30, %v616_v59  ;;  %v1506_v33 = vpop.f32.mrb[5].mxu1 }
  0xe2   :  { %v767_v34 = vpop.f32.mrb[6].mxu0 }
  0xe3   :  { %v693_v35 = vadd.f32 %v692_v32, %v614_v31  ;;  %v771_v36 = vmul.f32 %v767_v34, %v695_v61  ;;  %v1511_v37 = vpop.f32.mrb[7].mxu0 }
  0xe4   :  { %v846_v39 = vpop.f32.mrb[6].mxu1 }
  0xe5   :  { %v772_v40 = vadd.f32 %v771_v36, %v693_v35  ;;  %v850_v41 = vmul.f32 %v846_v39, %v774_v63  ;;  %v1516_v42 = vpop.f32.mrb[7].mxu1 }
  0xe6   :  { %v925_v43 = vpop.f32.mrb[8].mxu0 }
  0xe7   :  { %v851_v44 = vadd.f32 %v850_v41, %v772_v40  ;;  %v929_v13 = vmul.f32 %v925_v43, %v853_v3  ;;  %v1521_v45 = vpop.f32.mrb[9].mxu0 }
  0xe8   :  { %v1004_v47 = vpop.f32.mrb[8].mxu1 }
  0xe9   :  { %v930_v48 = vadd.f32 %v929_v13, %v851_v44  ;;  %v1008_v49 = vmul.f32 %v1004_v47, %v932_v5  ;;  %v1526_v51 = vpop.f32.mrb[9].mxu1 }
  0xea   :  { %v1083_v52 = vpop.f32.mrb[10].mxu0 }
  0xeb   :  { %v1009_v53 = vadd.f32 %v1008_v49, %v930_v48  ;;  %v1087_v54 = vmul.f32 %v1083_v52, %v1011_v8  ;;  %v1531_v55 = vpop.f32.mrb[11].mxu0 }
  0xec   :  { %v1162_v57 = vpop.f32.mrb[10].mxu1 }
  0xed   :  { %v1088_v6 = vadd.f32 %v1087_v54, %v1009_v53  ;;  %v1166_v58 = vmul.f32 %v1162_v57, %v1090_v12  ;;  %v1536_v59 = vpop.f32.mrb[11].mxu1 }
  0xee   :  { %v1241_v60 = vpop.f32.mrb[12].mxu0 }
  0xef   :  { %v1167_v61 = vadd.f32 %v1166_v58, %v1088_v6  ;;  %v1245_v62 = vmul.f32 %v1241_v60, %v1169_v29  ;;  %v1541_v63 = vpop.f32.mrb[13].mxu0 }
  0xf0   :  { %v1320_v3 = vpop.f32.mrb[12].mxu1 }
  0xf1   :  { %v1246_v4 = vadd.f32 %v1245_v62, %v1167_v61  ;;  %v1324_v7 = vmul.f32 %v1320_v3, %v1248_v46  ;;  %v1546_v5 = vpop.f32.mrb[13].mxu1 }
  0xf2   :  { %v1399_v1 = vpop.f32.mrb[14].mxu0 }
  0xf3   :  { %v1325_v9 = vadd.f32 %v1324_v7, %v1246_v4  ;;  %v1403_v10 = vmul.f32 %v1399_v1, %v1327_v2  ;;  %v1551_v8 = vpop.f32.mrb[15].mxu0 }
  0xf5   :  { %v1404_v11 = vadd.f32 %v1403_v10, %v1325_v9 }
  0xf7   :  { %1405 = vst [vmem:[%s1797_s3] sm:$0x3] %v1404_v11 }

// kernel: reverse.2
= control target key start
LH: loop header
LB: loop body
LE: loop exit
PB: predicated region body
PF: predicated region fallthrough
CT: control target
= control target key end

     0   :  { %v2_v0 = vlaneseq  ;;  %s105_s0 = inlined_call_operand.vmem [shape: f32[2,127], index: 0, kind: input, shape index: {}]   ;;  %s106_s1 = inlined_call_operand.vmem [shape: f32[2,127], index: 1, kind: output, shape index: {}]  }
   0x2   :  { %v3_v1 = vsub.s32 126, %v2_v0 }
   0x4   :  { %4 = vset.pattern.permute.xlu0 %v3_v1 }
   0x5   :  { %v20_v2 = vld [vmem:[%s105_s0] sm:$0x3] }
   0x6   :  { %21 = vst [vmem:[#allocation1] sm:$0x3] %v20_v2 }
   0xd   :  { %v38_v3 = vld [vmem:[#allocation1] sm:$0x3] }
   0xe   :  { %39 = vst [vmem:[#allocation0] sm:$0x3] %v38_v3 }
  0x15   :  { %v40_v4 = vld [vmem:[#allocation0] sm:$0xff] }
  0x16   :  { %41 = vperm.xlu0 %4, %v40_v4  }
  0x95   :  { %v42_v5 = vpop.permute.xlu0 %41 }
  0x96   :  { %43 = vst [vmem:[#allocation2] sm:$0xff] %v42_v5 }
  0x9d   :  { %v47_v6 = vld [vmem:[#allocation2] sm:$0x3] }
  0x9e   :  { %49 = vst [vmem:[#allocation3] sm:$0x3] %v47_v6 }
  0xa5   :  { %v65_v7 = vld [vmem:[#allocation3] sm:$0x3] }
  0xa6   :  { %66 = vst [vmem:[%s106_s1] sm:$0x3] %v65_v7 }

</bundles_post_ra>
